<compile_context>
chip_gen: v7x
topology: tpu7x:2x2x1
jax: 0.10.0
libtpu: 0.0.40
codegen_flags: <defaults>
</compile_context>

<pallas_src>
import jax
import jax.numpy as jnp
from jax.experimental import pallas as pl
from jax.experimental.pallas import tpu as pltpu

OUT_HW = 224

_VQ_MEAN = (0.5, 0.5, 0.5)
_VQ_STD = (0.5, 0.5, 0.5)
_DINO_MEAN = (0.485, 0.456, 0.406)
_DINO_STD = (0.229, 0.224, 0.225)

# Folded affine:  ((x*vq_std + vq_mean) - dino_mean) / dino_std == x*SCALE + BIAS
_SCALE = tuple(vs / ds for vs, ds in zip(_VQ_STD, _DINO_STD))
_BIAS = tuple((vm - dm) / ds for vm, dm, ds in zip(_VQ_MEAN, _DINO_MEAN, _DINO_STD))


def _scaling_kernel(x_ref, ct_ref, rs_ref, o_ref, cols_ref):
    # x_ref   : (BN*3*Hp, W)     flattened input rows for this batch block
    # ct_ref  : (W, 224)         one-hot column selector, pre-transposed
    # rs_ref  : (3, 224, Hp)     one-hot row selector, channel c pre-scaled by SCALE[c]
    # o_ref   : (BN*3, 224, 224) output block
    # cols_ref: (BN*3*Hp, 224)   VMEM scratch for the column-selected intermediate
    hp = rs_ref.shape[2]
    n_imgs = o_ref.shape[0]          # BN * 3
    bn = n_imgs // 3

    # 1) Column (lane) selection: ONE merged MXU matmul per batch block,
    #    lane-dense 224-wide result held in VMEM scratch (computed exactly once).
    cols_ref[...] = jnp.dot(
        x_ref[...], ct_ref[...],
        precision=jax.lax.Precision.HIGHEST,
        preferred_element_type=jnp.float32)

    # 2) Row (sublane) selection per image-channel. The per-channel scale is
    #    folded into rs_ref (MXU work); only the bias add stays on the VPU.
    def body(b, carry):
        for c in range(3):                         # small static channel unroll
            i = b * 3 + c
            row0 = i * hp
            if not isinstance(row0, int):          # Hp % 8 == 0 by construction
                row0 = pl.multiple_of(row0, 8)
            img = cols_ref[pl.ds(row0, hp), :]     # (Hp, 224)
            out = jnp.dot(rs_ref[c], img,
                          precision=jax.lax.Precision.HIGHEST,
                          preferred_element_type=jnp.float32) + _BIAS[c]
            o_ref[i] = out.astype(o_ref.dtype)
        return carry

    jax.lax.fori_loop(0, bn, body, 0, unroll=True)


def _nearest_src(in_size: int, out_size: int) -> jnp.ndarray:
    # PyTorch F.interpolate(mode='nearest'): src = floor(dst * in / out)
    return (jnp.arange(out_size) * in_size) // out_size


def _vmem_capacity_bytes() -> int:
    try:
        info = pltpu.get_tpu_info()
        cap = getattr(info, "vmem_capacity_bytes", None)
        if cap:
            return int(cap)
    except Exception:
        pass
    return 64 * 1024 * 1024  # conservative default: v7x per-TensorCore VMEM


def _block_bytes(bn: int, hp: int, w: int) -> int:
    x_blk = bn * 3 * hp * w * 4 * 2                  # input block, double-buffered
    o_blk = bn * 3 * OUT_HW * OUT_HW * 4 * 2         # output block, double-buffered
    cols = bn * 3 * hp * OUT_HW * 4                  # scratch (single copy)
    sels = (w * OUT_HW + 3 * OUT_HW * hp) * 4 * 2    # selectors, double-buffered
    return x_blk + o_blk + cols + sels + (2 << 20)   # + compiler headroom


def _pick_block_n(n: int, hp: int, w: int, budget: int) -> int:
    fitting = [bn for bn in (8, 4, 2, 1)
               if bn <= max(n, 1) and _block_bytes(bn, hp, w) <= budget]
    if not fitting:
        fitting = [1]
    # Prefer exact divisors of N (no padded images), else the largest fit.
    divisors = [bn for bn in fitting if n % bn == 0]
    block_n = (divisors or fitting)[0]
    # Keep >= 2 grid steps when the batch allows it: lets both v7x TensorCores
    # work ('parallel' batch axis) and overlaps output writeback across steps.
    if n >= 2 and pl.cdiv(n, block_n) < 2:
        smaller = [bn for bn in fitting if pl.cdiv(n, bn) >= 2]
        if smaller:
            div2 = [bn for bn in smaller if n % bn == 0]
            block_n = (div2 or smaller)[0]
    return block_n


def scaling_layer(x: jnp.ndarray, *, out_dtype=jnp.float32) -> jnp.ndarray:
    """x: (N, 3, H, W) float32 -> (N, 3, 224, 224) out_dtype."""
    N, C, H, W = x.shape
    assert C == 3, "ScalingLayer expects 3-channel input"
    x = x.astype(jnp.float32)

    # Pad H to a multiple of 8 (sublane tile). Padded rows are never selected
    # (their one-hot selector columns are all zero), so results are unchanged.
    Hp = -(-H // 8) * 8

    cap = _vmem_capacity_bytes()
    block_n = _pick_block_n(N, Hp, W, int(cap * 0.6))
    Np = pl.cdiv(N, block_n) * block_n

    if (Np, Hp) != (N, H):
        x = jnp.pad(x, ((0, Np - N), (0, 0), (0, Hp - H), (0, 0)))

    # Wrapper-side flatten of a contiguous array; kernel never reshapes x.
    x2d = x.reshape(Np * 3 * Hp, W)

    # Static one-hot selectors (built in plain JAX, outside the kernel).
    c_sel_t = (jnp.arange(W)[:, None]
               == _nearest_src(W, OUT_HW)[None, :]).astype(jnp.float32)   # (W, 224)
    r_onehot = (_nearest_src(H, OUT_HW)[:, None]
                == jnp.arange(Hp)[None, :]).astype(jnp.float32)           # (224, Hp)
    r_scaled = r_onehot[None, :, :] * jnp.array(_SCALE, jnp.float32)[:, None, None]

    cost = pl.CostEstimate(
        flops=2 * Np * 3 * OUT_HW * Hp * (W + OUT_HW),
        transcendentals=0,
        bytes_accessed=(x2d.size * 4
                        + Np * 3 * OUT_HW * OUT_HW * jnp.dtype(out_dtype).itemsize
                        + c_sel_t.size * 4 + r_scaled.size * 4))

    out3d = pl.pallas_call(
        _scaling_kernel,
        out_shape=jax.ShapeDtypeStruct((Np * 3, OUT_HW, OUT_HW), out_dtype),
        grid=(Np // block_n,),
        in_specs=[
            pl.BlockSpec((block_n * 3 * Hp, W), lambda n: (n, 0)),
            pl.BlockSpec((W, OUT_HW), lambda n: (0, 0)),
            pl.BlockSpec((3, OUT_HW, Hp), lambda n: (0, 0, 0)),
        ],
        out_specs=pl.BlockSpec((block_n * 3, OUT_HW, OUT_HW),
                               lambda n: (n, 0, 0)),
        scratch_shapes=[pltpu.VMEM((block_n * 3 * Hp, OUT_HW), jnp.float32)],
        compiler_params=pltpu.CompilerParams(
            dimension_semantics=("parallel",),
            vmem_limit_bytes=int(cap * 0.8)),
        cost_estimate=cost,
    )(x2d, c_sel_t, r_scaled)

    out = out3d.reshape(Np, 3, OUT_HW, OUT_HW)
    return out[:N] if Np != N else out


def _reference(x):
    # pure-JAX reference of the PyTorch forward (original op order)
    vq_mean = jnp.array(_VQ_MEAN, jnp.float32).reshape(1, 3, 1, 1)
    vq_std = jnp.array(_VQ_STD, jnp.float32).reshape(1, 3, 1, 1)
    dino_mean = jnp.array(_DINO_MEAN, jnp.float32).reshape(1, 3, 1, 1)
    dino_std = jnp.array(_DINO_STD, jnp.float32).reshape(1, 3, 1, 1)
    y = x * vq_std + vq_mean
    H, W = x.shape[2], x.shape[3]
    ri = (jnp.arange(OUT_HW) * H) // OUT_HW
    ci = (jnp.arange(OUT_HW) * W) // OUT_HW
    y = y[:, :, ri, :][:, :, :, ci]
    return (y - dino_mean) / dino_std


if __name__ == "__main__":
    key = jax.random.PRNGKey(0)
    # |values| small -> max < 10 after the vq de-normalisation
    x = jax.random.normal(key, (2, 3, 16, 16), dtype=jnp.float32) * 0.3
    out = jax.block_until_ready(scaling_layer(x))
    ref = _reference(x)
    assert out.shape == (2, 3, 224, 224)
    err = float(jnp.max(jnp.abs(out - ref)))
    assert err < 1e-4, err
    print("KERNEL_OK")
</pallas_src>

<mosaic_0001>
module attributes {stable_mosaic.version = 11 : i64} {
  func.func @_scaling_kernel(%arg0: i32, %arg1: memref<48x16xf32, #tpu.memory_space<vmem>>, %arg2: memref<16x224xf32, #tpu.memory_space<vmem>>, %arg3: memref<3x224x16xf32, #tpu.memory_space<vmem>>, %arg4: memref<3x224x224xf32, #tpu.memory_space<vmem>>, %arg5: memref<48x224xf32, #tpu.memory_space<vmem>>) attributes {dimension_semantics = [#tpu.dimension_semantics<parallel>], iteration_bounds = array<i64: 2>, scalar_prefetch = 0 : i64, scratch_operands = 1 : i64, tpu.core_type = #tpu.core_type<tc>, window_params = [{transform_indices = @transform_0, window_bounds = array<i64: 48, 16>}, {pipeline_mode = #tpu.pipeline_mode<synchronous>, transform_indices = @transform_1, window_bounds = array<i64: 16, 224>}, {pipeline_mode = #tpu.pipeline_mode<synchronous>, transform_indices = @transform_2, window_bounds = array<i64: 3, 224, 16>}, {transform_indices = @transform_3, window_bounds = array<i64: 3, 224, 224>}]} {
    %c0 = arith.constant 0 : index
    %c0_0 = arith.constant 0 : index
    %0 = vector.load %arg1[%c0, %c0_0] : memref<48x16xf32, #tpu.memory_space<vmem>>, vector<48x16xf32>
    %c0_1 = arith.constant 0 : index
    %c0_2 = arith.constant 0 : index
    %1 = vector.load %arg2[%c0_1, %c0_2] : memref<16x224xf32, #tpu.memory_space<vmem>>, vector<16x224xf32>
    %cst = arith.constant dense<0.000000e+00> : vector<48x224xf32>
    %2 = tpu.matmul %0, %1, %cst {dimension_numbers = #tpu.dot_dimension_numbers<[1], [0], [0], [1], [0, 0, 1, 1], [], []>, precision = #tpu.contract_precision<fp32>} : vector<48x16xf32>, vector<16x224xf32>, vector<48x224xf32> -> vector<48x224xf32>
    %c0_3 = arith.constant 0 : index
    %c0_4 = arith.constant 0 : index
    %3 = vector.load %arg5[%c0_3, %c0_4] : memref<48x224xf32, #tpu.memory_space<vmem>>, vector<48x224xf32>
    tpu.vector_store %arg5[%c0_3, %c0_4], %2 {strides = array<i32>} : memref<48x224xf32, #tpu.memory_space<vmem>>, vector<48x224xf32>,
    %c0_i32 = arith.constant 0 : i32
    %c3_i32 = arith.constant 3 : i32
    %4 = arith.muli %c0_i32, %c3_i32 : i32
    %c0_i32_5 = arith.constant 0 : i32
    %5 = arith.addi %4, %c0_i32_5 : i32
    %c16_i32 = arith.constant 16 : i32
    %6 = arith.muli %5, %c16_i32 : i32
    %7 = tpu.assume_multiple %6, 8 : i32
    %8 = arith.index_cast %7 : i32 to index
    %c0_6 = arith.constant 0 : index
    %9 = vector.load %arg5[%8, %c0_6] : memref<48x224xf32, #tpu.memory_space<vmem>>, vector<16x224xf32>
    %c0_7 = arith.constant 0 : index
    %c0_8 = arith.constant 0 : index
    %c0_9 = arith.constant 0 : index
    %10 = vector.load %arg3[%c0_7, %c0_8, %c0_9] : memref<3x224x16xf32, #tpu.memory_space<vmem>>, vector<1x224x16xf32>
    %11 = vector.shape_cast %10 : vector<1x224x16xf32> to vector<224x16xf32>
    %cst_10 = arith.constant dense<0.000000e+00> : vector<224x224xf32>
    %12 = tpu.matmul %11, %9, %cst_10 {dimension_numbers = #tpu.dot_dimension_numbers<[1], [0], [0], [1], [0, 0, 1, 1], [], []>, precision = #tpu.contract_precision<fp32>} : vector<224x16xf32>, vector<16x224xf32>, vector<224x224xf32> -> vector<224x224xf32>
    %cst_11 = arith.constant 0.0655021816 : f32
    %13 = vector.broadcast %cst_11 : f32 to vector<224x224xf32>
    %14 = arith.addf %12, %13 : vector<224x224xf32>
    %15 = arith.index_cast %5 : i32 to index
    %c0_12 = arith.constant 0 : index
    %c0_13 = arith.constant 0 : index
    %16 = vector.load %arg4[%15, %c0_12, %c0_13] : memref<3x224x224xf32, #tpu.memory_space<vmem>>, vector<1x224x224xf32>
    %17 = vector.shape_cast %16 : vector<1x224x224xf32> to vector<224x224xf32>
    %18 = vector.shape_cast %14 : vector<224x224xf32> to vector<1x224x224xf32>
    tpu.vector_store %arg4[%15, %c0_12, %c0_13], %18 {strides = array<i32>} : memref<3x224x224xf32, #tpu.memory_space<vmem>>, vector<1x224x224xf32>,
    %c3_i32_14 = arith.constant 3 : i32
    %19 = arith.muli %c0_i32, %c3_i32_14 : i32
    %c1_i32 = arith.constant 1 : i32
    %20 = arith.addi %19, %c1_i32 : i32
    %c16_i32_15 = arith.constant 16 : i32
    %21 = arith.muli %20, %c16_i32_15 : i32
    %22 = tpu.assume_multiple %21, 8 : i32
    %23 = arith.index_cast %22 : i32 to index
    %c0_16 = arith.constant 0 : index
    %24 = vector.load %arg5[%23, %c0_16] : memref<48x224xf32, #tpu.memory_space<vmem>>, vector<16x224xf32>
    %c1 = arith.constant 1 : index
    %c0_17 = arith.constant 0 : index
    %c0_18 = arith.constant 0 : index
    %25 = vector.load %arg3[%c1, %c0_17, %c0_18] : memref<3x224x16xf32, #tpu.memory_space<vmem>>, vector<1x224x16xf32>
    %26 = vector.shape_cast %25 : vector<1x224x16xf32> to vector<224x16xf32>
    %cst_19 = arith.constant dense<0.000000e+00> : vector<224x224xf32>
    %27 = tpu.matmul %26, %24, %cst_19 {dimension_numbers = #tpu.dot_dimension_numbers<[1], [0], [0], [1], [0, 0, 1, 1], [], []>, precision = #tpu.contract_precision<fp32>} : vector<224x16xf32>, vector<16x224xf32>, vector<224x224xf32> -> vector<224x224xf32>
    %cst_20 = arith.constant 0.196428567 : f32
    %28 = vector.broadcast %cst_20 : f32 to vector<224x224xf32>
    %29 = arith.addf %27, %28 : vector<224x224xf32>
    %30 = arith.index_cast %20 : i32 to index
    %c0_21 = arith.constant 0 : index
    %c0_22 = arith.constant 0 : index
    %31 = vector.load %arg4[%30, %c0_21, %c0_22] : memref<3x224x224xf32, #tpu.memory_space<vmem>>, vector<1x224x224xf32>
    %32 = vector.shape_cast %31 : vector<1x224x224xf32> to vector<224x224xf32>
    %33 = vector.shape_cast %29 : vector<224x224xf32> to vector<1x224x224xf32>
    tpu.vector_store %arg4[%30, %c0_21, %c0_22], %33 {strides = array<i32>} : memref<3x224x224xf32, #tpu.memory_space<vmem>>, vector<1x224x224xf32>,
    %c3_i32_23 = arith.constant 3 : i32
    %34 = arith.muli %c0_i32, %c3_i32_23 : i32
    %c2_i32 = arith.constant 2 : i32
    %35 = arith.addi %34, %c2_i32 : i32
    %c16_i32_24 = arith.constant 16 : i32
    %36 = arith.muli %35, %c16_i32_24 : i32
    %37 = tpu.assume_multiple %36, 8 : i32
    %38 = arith.index_cast %37 : i32 to index
    %c0_25 = arith.constant 0 : index
    %39 = vector.load %arg5[%38, %c0_25] : memref<48x224xf32, #tpu.memory_space<vmem>>, vector<16x224xf32>
    %c2 = arith.constant 2 : index
    %c0_26 = arith.constant 0 : index
    %c0_27 = arith.constant 0 : index
    %40 = vector.load %arg3[%c2, %c0_26, %c0_27] : memref<3x224x16xf32, #tpu.memory_space<vmem>>, vector<1x224x16xf32>
    %41 = vector.shape_cast %40 : vector<1x224x16xf32> to vector<224x16xf32>
    %cst_28 = arith.constant dense<0.000000e+00> : vector<224x224xf32>
    %42 = tpu.matmul %41, %39, %cst_28 {dimension_numbers = #tpu.dot_dimension_numbers<[1], [0], [0], [1], [0, 0, 1, 1], [], []>, precision = #tpu.contract_precision<fp32>} : vector<224x16xf32>, vector<16x224xf32>, vector<224x224xf32> -> vector<224x224xf32>
    %cst_29 = arith.constant 0.417777777 : f32
    %43 = vector.broadcast %cst_29 : f32 to vector<224x224xf32>
    %44 = arith.addf %42, %43 : vector<224x224xf32>
    %45 = arith.index_cast %35 : i32 to index
    %c0_30 = arith.constant 0 : index
    %c0_31 = arith.constant 0 : index
    %46 = vector.load %arg4[%45, %c0_30, %c0_31] : memref<3x224x224xf32, #tpu.memory_space<vmem>>, vector<1x224x224xf32>
    %47 = vector.shape_cast %46 : vector<1x224x224xf32> to vector<224x224xf32>
    %48 = vector.shape_cast %44 : vector<224x224xf32> to vector<1x224x224xf32>
    tpu.vector_store %arg4[%45, %c0_30, %c0_31], %48 {strides = array<i32>} : memref<3x224x224xf32, #tpu.memory_space<vmem>>, vector<1x224x224xf32>,
    %c1_i32_32 = arith.constant 1 : i32
    return
  }
  func.func @transform_0(%arg0: i32) -> (i32, i32) {
    %c0_i32 = arith.constant 0 : i32
    %c0_i32_0 = arith.constant 0 : i32
    return %arg0, %c0_i32 : i32, i32
  }
  func.func @transform_1(%arg0: i32) -> (i32, i32) {
    %c0_i32 = arith.constant 0 : i32
    %c0_i32_0 = arith.constant 0 : i32
    %c0_i32_1 = arith.constant 0 : i32
    return %c0_i32, %c0_i32_0 : i32, i32
  }
  func.func @transform_2(%arg0: i32) -> (i32, i32, i32) {
    %c0_i32 = arith.constant 0 : i32
    %c0_i32_0 = arith.constant 0 : i32
    %c0_i32_1 = arith.constant 0 : i32
    %c0_i32_2 = arith.constant 0 : i32
    return %c0_i32, %c0_i32_0, %c0_i32_1 : i32, i32, i32
  }
  func.func @transform_3(%arg0: i32) -> (i32, i32, i32) {
    %c0_i32 = arith.constant 0 : i32
    %c0_i32_0 = arith.constant 0 : i32
    %c0_i32_1 = arith.constant 0 : i32
    return %arg0, %c0_i32, %c0_i32_0 : i32, i32, i32
  }
}

</mosaic_0001>

<bundles_post_ra>
// kernel: tpu_custom_call.1
= control target key start
LH: loop header
LB: loop body
LE: loop exit
PB: predicated region body
PF: predicated region fallthrough
CT: control target
= control target key end

     0   :  { %8 = vsyncpa [#allocation4], 0  ;;  %s11576_s0 = inlined_call_operand.vmem [shape: f32[96,16], index: 0, kind: input, shape index: {}]   ;;  %s11577_s1 = inlined_call_operand.hbm [shape: f32[16,224], index: 1, kind: input, shape index: {}]   ;;  %s11578_s2 = inlined_call_operand.vmem [shape: f32[3,224,16], index: 2, kind: input, shape index: {}]   ;;  %s11579_s3 = inlined_call_operand.hbm [shape: f32[6,224,224], index: 3, kind: output, shape index: {}]  }
   0x1   :  { %9 = vsyncpa [#allocation5], 0 }
   0x2   :  { %11 = vsyncpa [#allocation5 + $0x1], 0  ;;  %s8552_s12 = smov 0   ;;  %s8554_s13 = smov 0  }
   0x3   :  { %s8556_s14 = smov 0   ;;  %s8558_s15 = smov 0  }
   0x4 LB: > { %s8573_s16 = sadd.s32 4294967295, %s8523_s15   ;;  %s7027_s17 = sadd.s32 4294967294, %s8523_s15   ;;  %s8523_s15 = sphi %s8558_s15, %s12311_s15   ;;  %s8519_s14 = sphi %s8556_s14, %s12310_s14   ;;  %s8515_s13 = sphi %s8554_s13, %s12309_s13   ;;  %s8511_s12 = sphi %s8552_s12, %s12308_s12  }
   0x5   : > { %s8577_s18 = sadd.s32 1, %s8523_s15   ;;  %s92_s19 = sadd.s32 1, %s8519_s14 }
   0x6   : > { %s89_s20 = ssub.s32 %s8523_s15, %s8577_s18  ;;  %p102_p0 = scmp.ne.s32.totalorder %s8519_s14, %s8515_s13 }
   0x7   : > { %p90_p1 = scmp.eq.s32.totalorder %s89_s20, 0  ;;  %p103_p2 = scmp.eq.s32.totalorder %s8573_s16, 1 }
   0x8   : > { %p108_p3 = scmp.ne.s32.totalorder %s8515_s13, %s8511_s12  ;;  %p109_p4 = scmp.eq.s32.totalorder %s7027_s17, 1 }
   0x9   : > { %s8588_s21 = scalar_select %p90_p1, %s8519_s14, %s92_s19  }
   0xa   : > { %p8590_p5 = por %p103_p2, %p102_p0  ;;  %p8594_p6 = por %p109_p4, %p108_p3 }
   0xb   : > { %p7028_p7 = scmp.ge.s32.totalorder %s8523_s15, 1  ;;  %p116_p8 = scmp.lt.s32.totalorder %s8523_s15, 3 }
   0xc   : > { %s11886_s22 = scalar_select %p8590_p5, 1, 0 }
   0xd   : > { %s11887_s23 = scalar_select %p8594_p6, 1, 0 }
   0xe   : > { %p11580_p9 = scmp.eq.s32.totalorder %s8573_s16, 0  ;;  %p8601_p10 = pnand %p7028_p7, %p116_p8 }
   0xf   : > { %s8525_s25 = smov [#allocation3]   ;;  %s8429_s30 = scalar_lea.hbm %s11577_s1, 512 }
  0x10   : > { %s11888_s24 = scalar_select %p8601_p10, 1, 0 }
  0x11   : > { %s128_s26 = sshll.u32 %s8525_s25, 4  ;;  %p8379_p11 = pneg %p8601_p10  ;;  %s129_s26 = int_to_ptr.vmem [resolvable:$true] %s128_s26 }
  0x12   : > { %p8430_p13 = scmp.ne.s32.totalorder %s11577_s1, %s8429_s30  ;;  %p8436_p3 = scmp.lt.u32.totalorder %s8429_s30, %s11577_s1 }
  0x13   : > { %p8609_p12 = pnand %p11580_p9, %p8379_p11 }
  0x15   : > { %p8431_p0 = pneg %p8609_p12 }
  0x17   : > { %p8432_p1 = pnand %p8431_p0, %p8430_p13 }
  0x19   : > { %p8433_p2 = pneg %p8432_p1 }
  0x1b   : > { %p8438_p4 = pnand %p8436_p3, %p8433_p2 }
  0x1d   : > { %8441 = shalt.err (!%p8438_p4)
}
  0x1e   : > { %s8442_s8 = scalar_lea.vmem %s129_s26, 512  ;;  %p8450_p9 = scmp.lt.s32.totalorder %s129_s26, %s129_s26 }
  0x1f   : > { %p8443_p7 = scmp.ne.s32.totalorder %s129_s26, %s8442_s8  ;;  %p8451_p6 = scmp.lt.s32.totalorder %s8442_s8, %s8442_s8 }
  0x21   : > { %p8445_p8 = pnand %p8443_p7, %p8431_p0  ;;  %p8452_p5 = por %p8451_p6, %p8450_p9 }
  0x23   : > { %p8446_p11 = pneg %p8445_p8 }
  0x25   : > { %p8453_p10 = pnand %p8452_p5, %p8446_p11 }
  0x27   : > { %8456 = shalt.err (!%p8453_p10)
}
  0x28   : > { %s8526_s9 = smov 256   ;;  %s8527_s10 = smov 16  }
  0x29   : > { %8382 = dma.hbm_to_vmem [thread:$0]  (!%p8609_p12), %s11577_s1, 512, %s129_s26, [#allocation4], %s8526_s9, %s8526_s9, %s8527_s10  }
  0x2a   : > { %p11890_p13 = scmp.ne.s32.totalorder %s11888_s24, 0 }
  0x2c   : > { %156 = sbr.rel (%p11890_p13) target bundleno = 1734 (0x6c6), region = 32 }
  0x33   : > { %p11891_p1 = scmp.eq.s32.totalorder %s8573_s16, 0 }
  0x35   : > { %8502 = dma.done.wait (%p11891_p1), [#allocation4], 512   ;;  %p11892_p0 = pmov %p11891_p1 }
  0x36   : > { %s180_s19 = smul.u32 6, %s8573_s16  ;;  %v11667_v0 = vmov 0.0   ;;  %vm197_vm0 = vcmask 130048   ;;  %v194_v1 = vld [vmem:[#allocation3 + $0x8] sm:$0xff]  ;;  %v196_v2 = vld [vmem:[#allocation3 + $0x18] sm:$0xff]  ;;  %v193_v3 = vld [vmem:[#allocation3] sm:$0xff] }
  0x37   : > { %8504 = vsyncadd (%p11892_p0), [#allocation4], 4294966784  ;;  %284 = vmatprep.mubr.f32.mxu0 %v11667_v0  ;;  %1894 = vmatprep.mubr.f32.mxu1 %v11667_v0  ;;  %v216_v4 = vand.u32 4294901760, %v194_v1  ;;  %v220_v5 = vand.u32 4294901760, %v196_v2  ;;  %v195_v6 = vld [vmem:[#allocation3 + $0x10] sm:$0xff]  ;;  %v218_v7 = vand.u32 4294901760, %v193_v3 }
  0x38   : > { %p181_p5 = scmp.lt.s32.totalorder %s180_s19, 11  ;;  %v222_v10 = vand.u32 4294901760, %v195_v6  ;;  %vm953_vm1 = vcmask 785408   ;;  %s177_s6 = sand.u32 1, %s8515_s13  }
  0x39   : > { %v8648_v14 = vpack.c.bf16 %v220_v5, %v216_v4  ;;  %v8650_v15 = vsub.f32 %v194_v1, %v216_v4  ;;  %v8652_v16 = vsub.f32 %v196_v2, %v220_v5  ;;  %v8654_v17 = vsub.f32 %v193_v3, %v218_v7  ;;  %s8371_s7 = smul.u32 1344, %s177_s6  ;;  %p12306_p9 = scmp.ne.s32.totalorder %s11886_s22, 0 }
  0x3a   : > { %s12313_s19 = smov (!%p181_p5, %s180_s19), 11  ;;  %v8656_v18 = vpack.c.bf16 %v222_v10, %v218_v7  ;;  %v8658_v19 = vsub.f32 %v195_v6, %v222_v10  ;;  %s8389_s9 = smul.u32 21504, %s8573_s16 }
  0x3b   : > { %s7033_s20 = sshll.u32 %s12313_s19, 3  ;;  %7206 = vmatprep.subr.bf16.mxu0 %v8648_v14  ;;  %v353_v23 = vand.u32 4294901760, %v8650_v15  ;;  %v365_v24 = vand.u32 4294901760, %v8652_v16  ;;  %v359_v25 = vand.u32 4294901760, %v8654_v17  ;;  %v7213_v57 = vpack.c.bf16 %v8652_v16, %v8650_v15  ;;  %s10657_s8 = scalar_lea.vmem [#allocation6], %s8371_s7 }
  0x3c   : > { %s8641_s26 = scalar_lea.vmem %s11576_s0, %s7033_s20  ;;  %7208 = vmatpush1.bf16.msra.mxu0 %v8656_v18  ;;  %v371_v28 = vand.u32 4294901760, %v8658_v19  ;;  %v7215_v10 = vpack.c.bf16 %v8658_v19, %v8654_v17  ;;  %s6951_s10 = sshll.u32 %s10657_s8, 4  ;;  %s11528_s10 = int_to_ptr.vmem [resolvable:$true] %s6951_s10 }
  0x3d   : > { %v187_v8 = vld [vmem:[%s8641_s26] sm:$0xff]  ;;  %v188_v9 = vld [vmem:[%s8641_s26 + $0x8] sm:$0xff]  ;;  %v189_v13 = vld [vmem:[%s8641_s26 + $0x10] sm:$0xff]  ;;  %v354_v31 = vsub.f32 %v8650_v15, %v353_v23  ;;  %v366_v32 = vsub.f32 %v8652_v16, %v365_v24  ;;  %v360_v33 = vsub.f32 %v8654_v17, %v359_v25  ;;  %s11526_s19 = scalar_lea.hbm %s11579_s3, %s8389_s9  ;;  %s11535_s16 = scalar_lea.sflag [#allocation5], %s177_s6 }
  0x3e   : > { %v199_v11 = vsel %vm197_vm0, %v187_v8, 0  ;;  %v202_v12 = vsel %vm197_vm0, %v188_v9, 0  ;;  %v190_v22 = vld [vmem:[%s8641_s26 + $0x18] sm:$0xff]  ;;  %v205_v26 = vsel %vm197_vm0, %v189_v13, 0  ;;  %v372_v36 = vsub.f32 %v8658_v19, %v371_v28  ;;  %v191_v39 = vld [vmem:[%s8641_s26 + $0x20] sm:$0xff]  ;;  %v192_v40 = vld [vmem:[%s8641_s26 + $0x28] sm:$0xff] }
  0x3f   : > { %v8660_v20 = vand.u32 4294901760, %v199_v11  ;;  %v8662_v21 = vand.u32 4294901760, %v202_v12  ;;  %v8678_v30 = vand.u32 4294901760, %v205_v26  ;;  %v208_v34 = vsel %vm197_vm0, %v190_v22, 0  ;;  %v974_v17 = vld [vmem:[%s11578_s2 + $0x10] sm:$0xff]  ;;  %s8457_s20 = scalar_lea.vmem %s11528_s10, 21504 }
  0x40   : > { %v355_v41 = vand.u32 4294901760, %v354_v31  ;;  %v367_v42 = vand.u32 4294901760, %v366_v32  ;;  %v361_v43 = vand.u32 4294901760, %v360_v33  ;;  %v8696_v44 = vand.u32 4294901760, %v208_v34  ;;  %p8458_p6 = scmp.ne.s32.totalorder %s11528_s10, %s8457_s20  ;;  %s8529_s24 = smov [#allocation6]  }
  0x41   : > { %v8672_v27 = vsub.f32 %v199_v11, %v8660_v20  ;;  %v8676_v29 = vsub.f32 %v202_v12, %v8662_v21  ;;  %v8692_v38 = vsub.f32 %v205_v26, %v8678_v30  ;;  %v373_v46 = vand.u32 4294901760, %v372_v36  ;;  %v972_v12 = vld [vmem:[%s11578_s2] sm:$0xff]  ;;  %s8461_s25 = sshll.u32 %s8529_s24, 4  ;;  %s8462_s25 = int_to_ptr.vmem [resolvable:$false] %s8461_s25 }
  0x42   : > { %v7209_v49 = vpack.c.bf16 %v367_v42, %v355_v41  ;;  %v8706_v50 = vsub.f32 %v208_v34, %v8696_v44  ;;  %v211_v51 = vsel %vm197_vm0, %v191_v39, 0  ;;  %v214_v52 = vsel %vm197_vm0, %v192_v40, 0  ;;  %v976_v40 = vld [vmem:[%s11578_s2 + $0x20] sm:$0xff]  ;;  %p8459_p10 = pnand %p8458_p6, %p12306_p9  ;;  %s8463_s26 = scalar_lea.vmem %s8462_s25, 43008 }
  0x43   : > { %v287_v35 = vand.u32 4294901760, %v8672_v27  ;;  %v298_v37 = vand.u32 4294901760, %v8676_v29  ;;  %v309_v48 = vand.u32 4294901760, %v8692_v38  ;;  %v7211_v54 = vpack.c.bf16 %v373_v46, %v361_v43  ;;  %p8464_p2 = scmp.lt.s32.totalorder %s11528_s10, %s8462_s25  ;;  %p8465_p3 = scmp.lt.s32.totalorder %s8463_s26, %s8457_s20 }
  0x44   : > { %7210 = vmatprep.subr.bf16.mxu0 %v7209_v49  ;;  %v8710_v56 = vand.u32 4294901760, %v211_v51  ;;  %v320_v59 = vand.u32 4294901760, %v8706_v50  ;;  %v8718_v60 = vand.u32 4294901760, %v214_v52  ;;  %v7223_v61 = vpack.c.bf16 %v371_v28, %v359_v25  ;;  %v982_v25 = vld [vmem:[%s11578_s2 + $0x50] sm:$0xff]  ;;  %v983_v28 = vld [vmem:[%s11578_s2 + $0x58] sm:$0xff]  ;;  %p8460_p12 = pneg %p8459_p10 }
  0x45   : > { %v288_v45 = vsub.f32 %v8672_v27, %v287_v35  ;;  %v299_v47 = vsub.f32 %v8676_v29, %v298_v37  ;;  %v310_v58 = vsub.f32 %v8692_v38, %v309_v48  ;;  %v7221_v11 = vpack.c.bf16 %v365_v24, %v353_v23  ;;  %p8466_p4 = por %p8465_p3, %p8464_p2 }
  0x46   : > { %v330_v62 = vsub.f32 %v211_v51, %v8710_v56  ;;  %v321_v1 = vsub.f32 %v8706_v50, %v320_v59  ;;  %v341_v3 = vsub.f32 %v214_v52, %v8718_v60  ;;  %v1001_v13 = vsel %vm197_vm0, %v972_v12, 0 }
  0x47   : > { %v289_v53 = vand.u32 4294901760, %v288_v45  ;;  %v300_v55 = vand.u32 4294901760, %v299_v47  ;;  %v311_v63 = vand.u32 4294901760, %v310_v58  ;;  %v8808_v15 = vand.u32 4294901760, %v1001_v13  ;;  %p8467_p7 = pnand %p8466_p4, %p8460_p12 }
  0x48   : > { %v331_v2 = vand.u32 4294901760, %v330_v62  ;;  %v322_v4 = vand.u32 4294901760, %v321_v1  ;;  %v342_v6 = vand.u32 4294901760, %v341_v3  ;;  %v1007_v19 = vsel %vm197_vm0, %v974_v17, 0 }
  0x49   : > { %290 = vmatmul.mubr.f32.vlgmr.msra.gmra.mrb[0].mxu0 %v289_v53  ;;  %v1031_v31 = vsel %vm197_vm0, %v982_v25, 0  ;;  %v1034_v39 = vsel %vm197_vm0, %v983_v28, 0  ;;  %v985_v25 = vld [vmem:[%s11578_s2 + $0x68] sm:$0xff] }
  0x4a   : > { %7212 = vmatpush1.bf16.msra.mxu0 %v7211_v54  ;;  %295 = vmatprep.mubr.f32.mxu0 %v11667_v0  ;;  %v332_v5 = vsub.f32 %v330_v62, %v331_v2  ;;  %v343_v8 = vsub.f32 %v341_v3, %v342_v6  ;;  %v8851_v41 = vand.u32 4294901760, %v1031_v31  ;;  %v8863_v49 = vand.u32 4294901760, %v1034_v39 }
  0x4b   : > { %7214 = vmatprep.subr.bf16.mxu0 %v7213_v57 }
  0x4c   : > { %v333_v7 = vand.u32 4294901760, %v332_v5  ;;  %v344_v9 = vand.u32 4294901760, %v343_v8  ;;  %v8890_v5 = vsub.f32 %v1034_v39, %v8863_v49  ;;  %v977_v8 = vld [vmem:[%s11578_s2 + $0x28] sm:$0xff]  ;;  %v1040_v39 = vsel %vm197_vm0, %v985_v25, 0 }
  0x4d   : > { %301 = vmatmul.mubr.f32.gmra.mrb[2].mxu0 %v300_v55 }
  0x4e   : > { %306 = vmatprep.mubr.f32.mxu0 %v11667_v0 }
  0x51   : > { %312 = vmatmul.mubr.f32.gmra.mrb[4].mxu0 %v311_v63 }
  0x52   : > { %317 = vmatprep.mubr.f32.mxu0 %v11667_v0 }
  0x55   : > { %323 = vmatmul.mubr.f32.gmra.mrb[6].mxu0 %v322_v4 }
  0x56   : > { %328 = vmatprep.mubr.f32.mxu0 %v11667_v0 }
  0x59   : > { %334 = vmatmul.mubr.f32.gmra.mrb[8].mxu0 %v333_v7 }
  0x5a   : > { %339 = vmatprep.mubr.f32.mxu0 %v11667_v0 }
  0x5d   : > { %345 = vmatmul.mubr.f32.gmra.mrb[10].mxu0 %v344_v9 }
  0x5e   : > { %435 = vmatprep.mubr.f32.mxu0 %v11667_v0 }
  0x61   : > { %437 = vmatmul.mubr.f32.vlgmr.msra.gmra.mrb[0].mxu0 %v8660_v20 }
  0x62   : > { %7216 = vmatpush1.bf16.msra.mxu0 %v7215_v10  ;;  %442 = vmatprep.mubr.f32.mxu0 %v11667_v0 }
  0x63   : > { %7218 = vmatprep.subr.bf16.mxu0 %v8648_v14 }
  0x65   : > { %444 = vmatmul.mubr.f32.gmra.mrb[2].mxu0 %v8662_v21 }
  0x66   : > { %449 = vmatprep.mubr.f32.mxu0 %v11667_v0 }
  0x69   : > { %451 = vmatmul.mubr.f32.gmra.mrb[4].mxu0 %v8678_v30 }
  0x6a   : > { %456 = vmatprep.mubr.f32.mxu0 %v11667_v0 }
  0x6d   : > { %458 = vmatmul.mubr.f32.gmra.mrb[6].mxu0 %v8696_v44 }
  0x6e   : > { %463 = vmatprep.mubr.f32.mxu0 %v11667_v0 }
  0x71   : > { %465 = vmatmul.mubr.f32.gmra.mrb[8].mxu0 %v8710_v56 }
  0x72   : > { %470 = vmatprep.mubr.f32.mxu0 %v11667_v0 }
  0x75   : > { %472 = vmatmul.mubr.f32.gmra.mrb[10].mxu0 %v8718_v60 }
  0x76   : > { %550 = vmatprep.mubr.f32.mxu0 %v11667_v0 }
  0x79   : > { %553 = vmatmul.mubr.f32.vlgmr.msra.gmra.mrb[0].mxu0 %v8672_v27 }
  0x7a   : > { %7220 = vmatpush1.bf16.msra.mxu0 %v8656_v18  ;;  %558 = vmatprep.mubr.f32.mxu0 %v11667_v0 }
  0x7b   : > { %7222 = vmatprep.subr.bf16.mxu0 %v7221_v11 }
  0x7d   : > { %561 = vmatmul.mubr.f32.gmra.mrb[2].mxu0 %v8676_v29 }
  0x7e   : > { %566 = vmatprep.mubr.f32.mxu0 %v11667_v0 }
  0x81   : > { %569 = vmatmul.mubr.f32.gmra.mrb[4].mxu0 %v8692_v38 }
  0x82   : > { %574 = vmatprep.mubr.f32.mxu0 %v11667_v0 }
  0x85   : > { %577 = vmatmul.mubr.f32.gmra.mrb[6].mxu0 %v8706_v50  ;;  %v1013_v50 = vsel %vm197_vm0, %v976_v40, 0  ;;  %v978_v40 = vld [vmem:[%s11578_s2 + $0x30] sm:$0xff] }
  0x86   : > { %582 = vmatprep.mubr.f32.mxu0 %v11667_v0  ;;  %v8893_v7 = vand.u32 4294901760, %v1013_v50 }
  0x89   : > { %585 = vmatmul.mubr.f32.gmra.mrb[8].mxu0 %v330_v62 }
  0x8a   : > { %590 = vmatprep.mubr.f32.mxu0 %v11667_v0 }
  0x8d   : > { %593 = vmatmul.mubr.f32.gmra.mrb[10].mxu0 %v341_v3 }
  0x8e   : > { %667 = vmatprep.mubr.f32.mxu0 %v11667_v0 }
  0x91   : > { %671 = vmatmul.mubr.f32.vlgmr.msra.gmra.mrb[0].mxu0 %v287_v35  ;;  %v975_v35 = vld [vmem:[%s11578_s2 + $0x18] sm:$0xff] }
  0x92   : > { %7224 = vmatpush1.bf16.msra.mxu0 %v7223_v61  ;;  %676 = vmatprep.mubr.f32.mxu0 %v11667_v0  ;;  %v1010_v46 = vsel %vm197_vm0, %v975_v35, 0 }
  0x93   : > { %7226 = vmatprep.subr.bf16.mxu0 %v8648_v14  ;;  %v973_v14 = vld [vmem:[%s11578_s2 + $0x8] sm:$0xff]  ;;  %v8880_v61 = vand.u32 4294901760, %v1010_v46 }
  0x94   : > { %v1004_v16 = vsel %vm197_vm0, %v973_v14, 0 }
  0x95   : > { %680 = vmatmul.mubr.f32.gmra.mrb[2].mxu0 %v298_v37 }
  0x96   : > { %685 = vmatprep.mubr.f32.mxu0 %v11667_v0 }
  0x99   : > { %689 = vmatmul.mubr.f32.gmra.mrb[4].mxu0 %v309_v48 }
  0x9a   : > { %694 = vmatprep.mubr.f32.mxu0 %v11667_v0 }
  0x9d   : > { %698 = vmatmul.mubr.f32.gmra.mrb[6].mxu0 %v320_v59  ;;  %v8873_v59 = vsub.f32 %v1031_v31, %v8851_v41 }
  0x9e   : > { %703 = vmatprep.mubr.f32.mxu0 %v11667_v0 }
  0xa1   : > { %707 = vmatmul.mubr.f32.gmra.mrb[8].mxu0 %v331_v2 }
  0xa2   : > { %712 = vmatprep.mubr.f32.mxu0 %v11667_v0 }
  0xa5   : > { %716 = vmatmul.mubr.f32.gmra.mrb[10].mxu0 %v342_v6 }
  0xa6   : > { %798 = vmatprep.mubr.f32.mxu0 %v11667_v0 }
  0xa9   : > { %800 = vmatmul.mubr.f32.vlgmr.msra.gmra.mrb[0].mxu0 %v8660_v20 }
  0xaa   : > { %7228 = vmatpush1.bf16.msra.mxu0 %v8656_v18  ;;  %805 = vmatprep.mubr.f32.mxu0 %v11667_v0  ;;  %v8814_v18 = vand.u32 4294901760, %v1004_v16 }
  0xac   : > { %v8823_v22 = vsub.f32 %v1004_v16, %v8814_v18 }
  0xad   : > { %807 = vmatmul.mubr.f32.gmra.mrb[2].mxu0 %v8662_v21 }
  0xae   : > { %812 = vmatprep.mubr.f32.mxu0 %v11667_v0  ;;  %v11590_v32 = vand.u32 4294901760, %v8823_v22 }
  0xb0   : > { %v8859_v45 = vsub.f32 %v8823_v22, %v11590_v32 }
  0xb1   : > { %814 = vmatmul.mubr.f32.gmra.mrb[4].mxu0 %v8678_v30 }
  0xb2   : > { %819 = vmatprep.mubr.f32.mxu0 %v11667_v0  ;;  %v1168_v62 = vand.u32 4294901760, %v8859_v45 }
  0xb5   : > { %821 = vmatmul.mubr.f32.gmra.mrb[6].mxu0 %v8696_v44 }
  0xb6   : > { %826 = vmatprep.mubr.f32.mxu0 %v11667_v0 }
  0xb9   : > { %828 = vmatmul.mubr.f32.gmra.mrb[8].mxu0 %v8710_v56 }
  0xba   : > { %833 = vmatprep.mubr.f32.mxu0 %v11667_v0 }
  0xbd   : > { %835 = vmatmul.mubr.f32.gmra.mrb[10].mxu0 %v8718_v60 }
  0xbe   : > { %909 = vmatprep.mubr.f32.mxu0 %v11667_v0 }
  0xc1   : > { %911 = vmatmul.mubr.f32.vlgmr.msra.gmra.mrb[0].mxu0 %v8660_v20  ;;  %v8818_v20 = vsub.f32 %v1001_v13, %v8808_v15 }
  0xc2   : > { %916 = vmatprep.mubr.f32.mxu0 %v11667_v0 }
  0xc3   : > { %v11591_v24 = vand.u32 4294901760, %v8818_v20 }
  0xc5   : > { %918 = vmatmul.mubr.f32.gmra.mrb[2].mxu0 %v8662_v21  ;;  %v8820_v21 = vand.u32 4294901760, %v1007_v19  ;;  %v8841_v34 = vsub.f32 %v8818_v20, %v11591_v24 }
  0xc6   : > { %923 = vmatprep.mubr.f32.mxu0 %v11667_v0 }
  0xc7   : > { %v8834_v29 = vsub.f32 %v1007_v19, %v8820_v21  ;;  %v1157_v48 = vand.u32 4294901760, %v8841_v34 }
  0xc9   : > { %925 = vmatmul.mubr.f32.gmra.mrb[4].mxu0 %v8678_v30  ;;  %v11589_v42 = vand.u32 4294901760, %v8834_v29 }
  0xca   : > { %930 = vmatprep.mubr.f32.mxu0 %v11667_v0 }
  0xcd   : > { %932 = vmatmul.mubr.f32.gmra.mrb[6].mxu0 %v8696_v44 }
  0xce   : > { %937 = vmatprep.mubr.f32.mxu0 %v11667_v0 }
  0xd1   : > { %939 = vmatmul.mubr.f32.gmra.mrb[8].mxu0 %v8710_v56  ;;  %v984_v56 = vld [vmem:[%s11578_s2 + $0x60] sm:$0xff] }
  0xd2   : > { %944 = vmatprep.mubr.f32.mxu0 %v11667_v0  ;;  %v1037_v6 = vsel %vm197_vm0, %v984_v56, 0 }
  0xd5   : > { %946 = vmatmul.mubr.f32.gmra.mrb[10].mxu0 %v8718_v60  ;;  %v8878_v60 = vsub.f32 %v8834_v29, %v11589_v42 }
  0xd6   : > { %1152 = vmatprep.mubr.f32.mxu0 %v11667_v0 }
  0xd7   : > { %v1179_v19 = vand.u32 4294901760, %v8878_v60 }
 0x194   : > { %v912_v23 = vpop.f32.mrb[0].mxu0 }
 0x195   : > { %v914_v26 = vpop.f32.mrb[1].mxu0  ;;  %v1086_v27 = vand.u32 4294901760, %v912_v23 }
 0x196   : > { %954 = vst.msk [vmem:[#allocation2 + $0x8] sm:$0xff] %vm953_vm1, %v914_v26 }
 0x197   : > { %v1468_v30 = vsub.f32 %v912_v23, %v1086_v27  ;;  %v8903_v23 = vsub.f32 %v1010_v46, %v8880_v61 }
 0x198   : > { %v919_v33 = vpop.f32.mrb[2].mxu0 }
 0x199   : > { %v921_v36 = vpop.f32.mrb[3].mxu0  ;;  %v1090_v37 = vand.u32 4294901760, %v919_v33  ;;  %v1469_v38 = vand.u32 4294901760, %v1468_v30  ;;  %v11588_v56 = vand.u32 4294901760, %v8903_v23 }
 0x19a   : > { %956 = vst.msk [vmem:[#allocation2 + $0x18] sm:$0xff] %vm953_vm1, %v921_v36  ;;  %v8919_v36 = vsub.f32 %v1013_v50, %v8893_v7 }
 0x19b   : > { %v8854_v43 = vpack.c.bf16 %v1090_v37, %v1086_v27  ;;  %v1480_v44 = vsub.f32 %v919_v33, %v1090_v37  ;;  %v1470_v55 = vsub.f32 %v1468_v30, %v1469_v38  ;;  %v8910_v27 = vand.u32 4294901760, %v1037_v6 }
 0x19c   : > { %v926_v47 = vpop.f32.mrb[4].mxu0  ;;  %v1016_v37 = vsel %vm197_vm0, %v977_v8, 0 }
 0x19d   : > { %11893 = vst [vmem:[#allocation9_spill] sm:$0xff] %v8854_v43  ;;  %v928_v51 = vpop.f32.mrb[5].mxu0  ;;  %v969_v52 = vld [vmem:[#allocation2 + $0x8] sm:$0xff]  ;;  %v1481_v53 = vand.u32 4294901760, %v1480_v44  ;;  %v8866_v54 = vpack.c.bf16 %v1480_v44, %v1468_v30  ;;  %v3076_v57 = vand.u32 4294901760, %v926_v47  ;;  %v1471_v11 = vand.u32 4294901760, %v1470_v55 }
 0x19e   : > { %958 = vst.msk [vmem:[#allocation2 + $0x28] sm:$0xff] %vm953_vm1, %v928_v51  ;;  %v1084_v58 = vand.u32 4294901760, %v969_v52 }
 0x19f   : > { %v1482_v63 = vsub.f32 %v1480_v44, %v1481_v53  ;;  %v8883_v1 = vpack.c.bf16 %v1481_v53, %v1469_v38  ;;  %v8885_v2 = vsub.f32 %v926_v47, %v3076_v57 }
 0x1a0   : > { %v933_v3 = vpop.f32.mrb[6].mxu0  ;;  %v8887_v4 = vsub.f32 %v969_v52, %v1084_v58 }
 0x1a1   : > { %11894 = vst [vmem:[#allocation10_spill] sm:$0xff] %v8885_v2  ;;  %v935_v9 = vpop.f32.mrb[7].mxu0  ;;  %v971_v10 = vld [vmem:[#allocation2 + $0x18] sm:$0xff]  ;;  %v1483_v12 = vand.u32 4294901760, %v1482_v63  ;;  %v3080_v13 = vand.u32 4294901760, %v933_v3  ;;  %v3459_v14 = vand.u32 4294901760, %v8885_v2 }
 0x1a2   : > { %960 = vst.msk [vmem:[#allocation2 + $0x38] sm:$0xff] %vm953_vm1, %v935_v9  ;;  %v1088_v16 = vand.u32 4294901760, %v971_v10  ;;  %v1463_v17 = vand.u32 4294901760, %v8887_v4  ;;  %v8946_v9 = vand.u32 4294901760, %v1040_v39 }
 0x1a3   : > { %v8908_v26 = vpack.c.bf16 %v1483_v12, %v1471_v11  ;;  %v8912_v28 = vpack.c.bf16 %v3080_v13, %v3076_v57  ;;  %v8914_v30 = vsub.f32 %v933_v3, %v3080_v13  ;;  %v3460_v46 = vsub.f32 %v8885_v2, %v3459_v14 }
 0x1a4   : > { %v940_v31 = vpop.f32.mrb[8].mxu0  ;;  %v8916_v33 = vpack.c.bf16 %v1088_v16, %v1084_v58  ;;  %v1474_v35 = vsub.f32 %v971_v10, %v1088_v16  ;;  %v1464_v52 = vsub.f32 %v8887_v4, %v1463_v17  ;;  %v8941_v57 = vand.u32 4294901760, %v1016_v37  ;;  %v986_v16 = vld [vmem:[%s11578_s2 + $0x70] sm:$0xff] }
 0x1a5   : > { %11895 = vst [vmem:[#allocation11_spill] sm:$0xff] %v8912_v28  ;;  %11896 = vst [vmem:[#allocation12_spill] sm:$0xff] %v8914_v30  ;;  %v942_v38 = vpop.f32.mrb[9].mxu0  ;;  %v8926_v44 = vld [vmem:[#allocation2 + $0x28] sm:$0xff]  ;;  %v3471_v47 = vand.u32 4294901760, %v8914_v30  ;;  %v1019_v10 = vsel %vm197_vm0, %v978_v40, 0  ;;  %v8956_v13 = vsub.f32 %v1037_v6, %v8910_v27 }
 0x1a6   : > { %961 = vst [vmem:[#allocation2 + $0x40] sm:$0xff] %v940_v31  ;;  %962 = vst.msk [vmem:[#allocation2 + $0x48] sm:$0xff] %vm953_vm1, %v942_v38  ;;  %7230 = vmatprep.subr.bf16.mxu0 %v8916_v33  ;;  %v7237_v51 = vpack.c.bf16 %v1474_v35, %v8887_v4  ;;  %v1475_v53 = vand.u32 4294901760, %v1474_v35  ;;  %v11583_v55 = vand.u32 4294901760, %v8926_v44  ;;  %v3461_v31 = vand.u32 4294901760, %v3460_v46  ;;  %v979_v40 = vld [vmem:[%s11578_s2 + $0x38] sm:$0xff] }
 0x1a7   : > { %7232 = vmatpush1.bf16.msra.mxu0 %v8854_v43  ;;  %v3472_v58 = vsub.f32 %v8914_v30, %v3471_v47  ;;  %v8944_v63 = vpack.c.bf16 %v3471_v47, %v3459_v14  ;;  %v11587_v14 = vand.u32 4294901760, %v8919_v36  ;;  %v1465_v38 = vand.u32 4294901760, %v1464_v52 }
 0x1a8   : > { %v947_v3 = vpop.f32.mrb[10].mxu0  ;;  %7301 = vmatprep.subr.bf16.mxu1 %v7237_v51  ;;  %v1476_v8 = vsub.f32 %v1474_v35, %v1475_v53  ;;  %v8952_v11 = vsub.f32 %v8926_v44, %v11583_v55  ;;  %v8977_v46 = vsub.f32 %v8903_v23, %v11588_v56  ;;  %v8980_v34 = vsub.f32 %v1016_v37, %v8941_v57 }
 0x1a9   : > { %11897 = vst [vmem:[#allocation13_spill] sm:$0xff] %v8944_v63  ;;  %963 = vst [vmem:[#allocation2 + $0x50] sm:$0xff] %v947_v3  ;;  %v949_v12 = vpop.f32.mrb[11].mxu0  ;;  %7302 = vmatpush1.bf16.msra.mxu1 %v8866_v54  ;;  %v8962_v25 = vld [vmem:[#allocation2 + $0x38] sm:$0xff]  ;;  %v3473_v35 = vand.u32 4294901760, %v3472_v58  ;;  %v7245_v37 = vpack.c.bf16 %v1475_v53, %v1463_v17 }
 0x1aa   : > { %11898 = vst [vmem:[#allocation14_spill] sm:$0xff] %v8952_v11  ;;  %964 = vst.msk [vmem:[#allocation2 + $0x58] sm:$0xff] %vm953_vm1, %v949_v12  ;;  %1158 = vmatmul.mubr.f32.vlgmr.msra.gmra.mrb[12].mxu0 %v1157_v48  ;;  %7242 = vmatprep.subr.bf16.mxu1 %v8916_v33  ;;  %v1477_v6 = vand.u32 4294901760, %v1476_v8  ;;  %v11585_v47 = vand.u32 4294901760, %v8962_v25  ;;  %v3453_v3 = vand.u32 4294901760, %v8952_v11  ;;  %v8982_v48 = vand.u32 4294901760, %v1019_v10 }
 0x1ab   : > { %1163 = vmatprep.mubr.f32.mxu0 %v11667_v0  ;;  %v8984_v52 = vpack.c.bf16 %v3473_v35, %v3461_v31  ;;  %v8988_v8 = vsub.f32 %v1040_v39, %v8946_v9  ;;  %v1043_v12 = vsel %vm197_vm0, %v986_v16, 0  ;;  %v9005_v39 = vsub.f32 %v8919_v36, %v11587_v14 }
 0x1ac   : > { %1897 = vmatmul.mubr.f32.vlgmr.msra.gmra.mrb[0].mxu1 %v8873_v59  ;;  %v7233_v58 = vpack.c.bf16 %v1477_v6, %v1465_v38  ;;  %v8994_v50 = vsub.f32 %v8962_v25, %v11585_v47  ;;  %v1022_v16 = vsel %vm197_vm0, %v979_v40, 0  ;;  %v3454_v17 = vsub.f32 %v8952_v11, %v3453_v3 }
 0x1ad   : > { %11899 = vst [vmem:[#allocation15_spill] sm:$0xff] %v8984_v52  ;;  %v8996_v55 = vld [vmem:[#allocation2 + $0x40] sm:$0xff]  ;;  %7244 = vmatpush1.bf16.msra.mxu1 %v8854_v43  ;;  %1902 = vmatprep.mubr.f32.mxu1 %v11667_v0  ;;  %v9008_v31 = vld [vmem:[#allocation2 + $0x48] sm:$0xff]  ;;  %v9019_v6 = vand.u32 4294901760, %v1043_v12  ;;  %v11592_v40 = vand.u32 4294901760, %v8980_v34  ;;  %v9023_v45 = vsub.f32 %v1019_v10, %v8982_v48  ;;  %v9051_v47 = vand.u32 4294901760, %v1022_v16 }
 0x1ae   : > { %11900 = vst [vmem:[#allocation16_spill] sm:$0xff] %v8994_v50  ;;  %11901 = vst [vmem:[#allocation17_spill] sm:$0xff] %v8996_v55  ;;  %v11584_v35 = vand.u32 4294901760, %v8996_v55  ;;  %1169 = vmatmul.mubr.f32.gmra.mrb[14].mxu0 %v1168_v62  ;;  %7234 = vmatprep.subr.bf16.mxu0 %v7233_v58  ;;  %v11586_v4 = vand.u32 4294901760, %v9008_v31  ;;  %v3465_v53 = vand.u32 4294901760, %v8994_v50  ;;  %v1190_v58 = vand.u32 4294901760, %v8977_v46 }
 0x1af   : > { %7246 = vmatprep.subr.bf16.mxu1 %v7245_v37  ;;  %7236 = vmatpush1.bf16.msra.mxu0 %v8908_v26  ;;  %v980_v26 = vld [vmem:[%s11578_s2 + $0x40] sm:$0xff]  ;;  %v987_v46 = vld [vmem:[%s11578_s2 + $0x78] sm:$0xff]  ;;  %v9063_v32 = vsub.f32 %v1043_v12, %v9019_v6  ;;  %v1211_v24 = vsub.f32 %v8980_v34, %v11592_v40  ;;  %v981_v12 = vld [vmem:[%s11578_s2 + $0x48] sm:$0xff]  ;;  %v11613_v52 = vand.u32 4294901760, %v8988_v8 }
 0x1b0   : > { %v9028_v62 = vsub.f32 %v8996_v55, %v11584_v35  ;;  %7238 = vmatprep.subr.bf16.mxu0 %v7237_v51  ;;  %1905 = vmatmul.mubr.f32.gmra.mrb[2].mxu1 %v8890_v5  ;;  %v9038_v37 = vsub.f32 %v9008_v31, %v11586_v4  ;;  %v3466_v10 = vsub.f32 %v8994_v50, %v3465_v53  ;;  %v9041_v38 = vld [vmem:[#allocation2 + $0x50] sm:$0xff]  ;;  %v1201_v51 = vand.u32 4294901760, %v9005_v39 }
 0x1b1   : > { %11904 = vst [vmem:[#allocation20_spill] sm:$0xff] %v9041_v38  ;;  %v9043_v35 = vpack.c.bf16 %v3465_v53, %v3453_v3  ;;  %1174 = vmatprep.mubr.f32.mxu0 %v11667_v0  ;;  %1910 = vmatprep.mubr.f32.mxu1 %v11667_v0  ;;  %v9053_v4 = vld [vmem:[#allocation2 + $0x58] sm:$0xff]  ;;  %v3455_v53 = vand.u32 4294901760, %v3454_v17  ;;  %v1025_v14 = vsel %vm197_vm0, %v980_v26, 0  ;;  %v11907_v60 = vand.u32 4294901760, %v9041_v38  ;;  %v994_v50 = vld [vmem:[%s11578_s2 + $0xb0] sm:$0xff] }
 0x1b2   : > { %11902 = vst [vmem:[#allocation18_spill] sm:$0xff] %v9028_v62  ;;  %11903 = vst [vmem:[#allocation19_spill] sm:$0xff] %v9038_v37  ;;  %v5450_v56 = vand.u32 4294901760, %v9028_v62  ;;  %1180 = vmatmul.mubr.f32.gmra.mrb[16].mxu0 %v1179_v19  ;;  %v11593_v3 = vand.u32 4294901760, %v9053_v4  ;;  %v3467_v42 = vand.u32 4294901760, %v3466_v10  ;;  %v5444_v39 = vand.u32 4294901760, %v9038_v37 }
 0x1b3   : > { %11905 = vst [vmem:[#allocation21_spill] sm:$0xff] %v9043_v35  ;;  %11906 = vst [vmem:[#allocation22_spill] sm:$0xff] %v9053_v4  ;;  %1185 = vmatprep.mubr.f32.mxu0 %v11667_v0  ;;  %v9072_v19 = vsub.f32 %v9041_v38, %v11907_v60  ;;  %v1046_v17 = vsel %vm197_vm0, %v987_v46, 0  ;;  %v9089_v60 = vsub.f32 %v1022_v16, %v9051_v47  ;;  %v9098_v35 = vand.u32 4294901760, %v1025_v14  ;;  %v998_v43 = vld [vmem:[%s11578_s2 + $0xd0] sm:$0xff] }
 0x1b4   : > { %1913 = vmatmul.mubr.f32.gmra.mrb[4].mxu1 %v8956_v13  ;;  %v9083_v40 = vsub.f32 %v9053_v4, %v11593_v3  ;;  %v9085_v26 = vpack.c.bf16 %v3467_v42, %v3455_v53  ;;  %v5451_v46 = vsub.f32 %v9028_v62, %v5450_v56  ;;  %v988_v3 = vld [vmem:[%s11578_s2 + $0x80] sm:$0xff]  ;;  %v5445_v42 = vsub.f32 %v9038_v37, %v5444_v39  ;;  %v999_v4 = vld [vmem:[%s11578_s2 + $0xd8] sm:$0xff] }
 0x1b5   : > { %11908 = vst [vmem:[#allocation23_spill] sm:$0xff] %v9072_v19  ;;  %1918 = vmatprep.mubr.f32.mxu1 %v11667_v0  ;;  %v5462_v10 = vand.u32 4294901760, %v9072_v19  ;;  %v1212_v2 = vand.u32 4294901760, %v1211_v24  ;;  %v1028_v30 = vsel %vm197_vm0, %v981_v12, 0  ;;  %v9110_v62 = vand.u32 4294901760, %v1046_v17  ;;  %v992_v37 = vld [vmem:[%s11578_s2 + $0xa0] sm:$0xff] }
 0x1b6   : > { %11909 = vst [vmem:[#allocation24_spill] sm:$0xff] %v9083_v40  ;;  %11910 = vst [vmem:[#allocation25_spill] sm:$0xff] %v9085_v26  ;;  %1191 = vmatmul.mubr.f32.gmra.mrb[18].mxu0 %v1190_v58  ;;  %v5456_v53 = vand.u32 4294901760, %v9083_v40  ;;  %v11912_v38 = vand.u32 4294901760, %v9023_v45  ;;  %v1049_v24 = vsel %vm197_vm0, %v988_v3, 0  ;;  %v11602_v12 = vand.u32 4294901760, %v9089_v60 }
 0x1b7   : > { %1196 = vmatprep.mubr.f32.mxu0 %v11667_v0  ;;  %v5463_v58 = vsub.f32 %v9072_v19, %v5462_v10  ;;  %v9107_v63 = vpack.c.bf16 %v5462_v10, %v5450_v56  ;;  %v5452_v56 = vand.u32 4294901760, %v5451_v46  ;;  %v9125_v19 = vsub.f32 %v1025_v14, %v9098_v35  ;;  %v995_v26 = vld [vmem:[%s11578_s2 + $0xb8] sm:$0xff] }
 0x1b8   : > { %1921 = vmatmul.mubr.f32.gmra.mrb[6].mxu1 %v8988_v8  ;;  %v1222_v55 = vsub.f32 %v9023_v45, %v11912_v38  ;;  %v5457_v11 = vsub.f32 %v9083_v40, %v5456_v53  ;;  %v9116_v16 = vpack.c.bf16 %v5456_v53, %v5444_v39  ;;  %v9127_v38 = vand.u32 4294901760, %v1028_v30 }
 0x1b9   : > { %11911 = vst [vmem:[#allocation26_spill] sm:$0xff] %v9107_v63  ;;  %1926 = vmatprep.mubr.f32.mxu1 %v11667_v0  ;;  %v5464_v10 = vand.u32 4294901760, %v5463_v58  ;;  %v989_v63 = vld [vmem:[%s11578_s2 + $0x88] sm:$0xff]  ;;  %v5446_v39 = vand.u32 4294901760, %v5445_v42  ;;  %v9134_v3 = vsub.f32 %v1046_v17, %v9110_v62  ;;  %v11601_v58 = vand.u32 4294901760, %v9125_v19  ;;  %v990_v17 = vld [vmem:[%s11578_s2 + $0x90] sm:$0xff] }
 0x1ba   : > { %11913 = vst [vmem:[#allocation27_spill] sm:$0xff] %v9116_v16  ;;  %1202 = vmatmul.mubr.f32.gmra.mrb[20].mxu0 %v1201_v51  ;;  %v5458_v53 = vand.u32 4294901760, %v5457_v11  ;;  %v9136_v51 = vand.u32 4294901760, %v1049_v24  ;;  %v1052_v14 = vsel %vm197_vm0, %v989_v63, 0  ;;  %v1223_v42 = vand.u32 4294901760, %v1222_v55 }
 0x1bb   : > { %1207 = vmatprep.mubr.f32.mxu0 %v11667_v0  ;;  %v9130_v16 = vpack.c.bf16 %v5464_v10, %v5452_v56  ;;  %v1233_v11 = vsub.f32 %v9089_v60, %v11602_v12  ;;  %v9150_v56 = vsub.f32 %v1028_v30, %v9127_v38  ;;  %v9157_v55 = vand.u32 4294901760, %v1052_v14 }
 0x1bc   : > { %1929 = vmatmul.mubr.f32.gmra.mrb[8].mxu1 %v9063_v32  ;;  %v9138_v46 = vpack.c.bf16 %v5458_v53, %v5446_v39  ;;  %v1055_v63 = vsel %vm197_vm0, %v990_v17, 0  ;;  %v1244_v30 = vsub.f32 %v9125_v19, %v11601_v58  ;;  %v991_v53 = vld [vmem:[%s11578_s2 + $0x98] sm:$0xff]  ;;  %v11606_v12 = vand.u32 4294901760, %v8873_v59 }
 0x1bd   : > { %11914 = vst [vmem:[#allocation28_spill] sm:$0xff] %v9130_v16  ;;  %1934 = vmatprep.mubr.f32.mxu1 %v11667_v0  ;;  %v1234_v10 = vand.u32 4294901760, %v1233_v11  ;;  %v11604_v39 = vand.u32 4294901760, %v9150_v56  ;;  %v9173_v17 = vand.u32 4294901760, %v1055_v63  ;;  %v11608_v40 = vand.u32 4294901760, %v8890_v5  ;;  %v993_v16 = vld [vmem:[%s11578_s2 + $0xa8] sm:$0xff] }
 0x1be   : > { %11915 = vst [vmem:[#allocation29_spill] sm:$0xff] %v9138_v46  ;;  %1213 = vmatmul.mubr.f32.gmra.mrb[22].mxu0 %v1212_v2  ;;  %v9155_v2 = vsub.f32 %v1049_v24, %v9136_v51  ;;  %v9171_v24 = vsub.f32 %v1052_v14, %v9157_v55  ;;  %v1245_v11 = vand.u32 4294901760, %v1244_v30  ;;  %v11609_v46 = vand.u32 4294901760, %v8956_v13 }
 0x1bf   : > { %1218 = vmatprep.mubr.f32.mxu0 %v11667_v0  ;;  %v1255_v58 = vsub.f32 %v9150_v56, %v11604_v39  ;;  %v9187_v14 = vsub.f32 %v1055_v63, %v9173_v17  ;;  %v1266_v39 = vsub.f32 %v8873_v59, %v11606_v12  ;;  %v1277_v12 = vsub.f32 %v8890_v5, %v11608_v40 }
 0x1c0   : > { %1937 = vmatmul.mubr.f32.gmra.mrb[10].mxu1 %v9134_v3  ;;  %v1288_v40 = vsub.f32 %v8956_v13, %v11609_v46  ;;  %v1299_v46 = vsub.f32 %v8988_v8, %v11613_v52  ;;  %v11618_v28 = vand.u32 4294901760, %v9063_v32 }
 0x1c1   : > { %1942 = vmatprep.mubr.f32.mxu1 %v11667_v0  ;;  %v1256_v30 = vand.u32 4294901760, %v1255_v58  ;;  %v1064_v58 = vsel %vm197_vm0, %v993_v16, 0 }
 0x1c2   : > { %1224 = vmatmul.mubr.f32.gmra.mrb[24].mxu0 %v1223_v42  ;;  %v1058_v42 = vsel %vm197_vm0, %v991_v53, 0  ;;  %v9221_v16 = vand.u32 4294901760, %v1064_v58  ;;  %v1310_v52 = vsub.f32 %v9063_v32, %v11618_v28 }
 0x1c3   : > { %1229 = vmatprep.mubr.f32.mxu0 %v11667_v0  ;;  %v9189_v53 = vand.u32 4294901760, %v1058_v42 }
 0x1c4   : > { %1945 = vmatmul.mubr.f32.gmra.mrb[12].mxu1 %v9155_v2  ;;  %11918 = vst [vmem:[#allocation32_spill] sm:$0xff] %v9221_v16 }
 0x1c5   : > { %1950 = vmatprep.mubr.f32.mxu1 %v11667_v0  ;;  %11916 = vst [vmem:[#allocation30_spill] sm:$0xff] %v9189_v53  ;;  %v9203_v63 = vsub.f32 %v1058_v42, %v9189_v53  ;;  %v997_v53 = vld [vmem:[%s11578_s2 + $0xc8] sm:$0xff] }
 0x1c6   : > { %1235 = vmatmul.mubr.f32.gmra.mrb[26].mxu0 %v1234_v10  ;;  %v1061_v10 = vsel %vm197_vm0, %v992_v37, 0 }
 0x1c7   : > { %1240 = vmatprep.mubr.f32.mxu0 %v11667_v0  ;;  %v9205_v37 = vand.u32 4294901760, %v1061_v10 }
 0x1c8   : > { %1953 = vmatmul.mubr.f32.gmra.mrb[14].mxu1 %v9171_v24 }
 0x1c9   : > { %1958 = vmatprep.mubr.f32.mxu1 %v11667_v0  ;;  %11917 = vst [vmem:[#allocation31_spill] sm:$0xff] %v9205_v37  ;;  %v9219_v42 = vsub.f32 %v1061_v10, %v9205_v37  ;;  %v9235_v10 = vsub.f32 %v1064_v58, %v9221_v16  ;;  %v996_v37 = vld [vmem:[%s11578_s2 + $0xc0] sm:$0xff]  ;;  %v11622_v16 = vand.u32 4294901760, %v9134_v3 }
 0x1ca   : > { %1246 = vmatmul.mubr.f32.gmra.mrb[28].mxu0 %v1245_v11  ;;  %v1267_v11 = vand.u32 4294901760, %v1266_v39  ;;  %v1067_v39 = vsel %vm197_vm0, %v994_v50, 0 }
 0x1cb   : > { %1251 = vmatprep.mubr.f32.mxu0 %v11667_v0  ;;  %v9237_v50 = vand.u32 4294901760, %v1067_v39  ;;  %v1321_v28 = vsub.f32 %v9134_v3, %v11622_v16 }
 0x1cc   : > { %1961 = vmatmul.mubr.f32.gmra.mrb[16].mxu1 %v9187_v14 }
 0x1cd   : > { %1966 = vmatprep.mubr.f32.mxu1 %v11667_v0  ;;  %11919 = vst [vmem:[#allocation33_spill] sm:$0xff] %v9237_v50  ;;  %v9251_v58 = vsub.f32 %v1067_v39, %v9237_v50  ;;  %v11626_v50 = vand.u32 4294901760, %v9155_v2 }
 0x1ce   : > { %1257 = vmatmul.mubr.f32.gmra.mrb[30].mxu0 %v1256_v30  ;;  %v1278_v30 = vand.u32 4294901760, %v1277_v12  ;;  %v1070_v12 = vsel %vm197_vm0, %v995_v26, 0 }
 0x1cf   : > { %1262 = vmatprep.mubr.f32.mxu0 %v11667_v0  ;;  %v9253_v26 = vand.u32 4294901760, %v1070_v12  ;;  %v1332_v16 = vsub.f32 %v9155_v2, %v11626_v50 }
 0x1d0   : > { %1969 = vmatmul.mubr.f32.gmra.mrb[18].mxu1 %v9203_v63 }
 0x1d1   : > { %1974 = vmatprep.mubr.f32.mxu1 %v11667_v0  ;;  %11920 = vst [vmem:[#allocation34_spill] sm:$0xff] %v9253_v26  ;;  %v9267_v39 = vsub.f32 %v1070_v12, %v9253_v26  ;;  %v11631_v26 = vand.u32 4294901760, %v9171_v24 }
 0x1d2   : > { %1268 = vmatmul.mubr.f32.gmra.mrb[32].mxu0 %v1267_v11  ;;  %v1289_v11 = vand.u32 4294901760, %v1288_v40  ;;  %v1073_v40 = vsel %vm197_vm0, %v996_v37, 0 }
 0x1d3   : > { %1273 = vmatprep.mubr.f32.mxu0 %v11667_v0  ;;  %v9269_v37 = vand.u32 4294901760, %v1073_v40  ;;  %v1343_v50 = vsub.f32 %v9171_v24, %v11631_v26 }
 0x1d4   : > { %1977 = vmatmul.mubr.f32.gmra.mrb[20].mxu1 %v9219_v42 }
 0x1d5   : > { %1982 = vmatprep.mubr.f32.mxu1 %v11667_v0  ;;  %11921 = vst [vmem:[#allocation35_spill] sm:$0xff] %v9269_v37  ;;  %v9283_v12 = vsub.f32 %v1073_v40, %v9269_v37  ;;  %v11632_v37 = vand.u32 4294901760, %v9187_v14 }
 0x1d6   : > { %1279 = vmatmul.mubr.f32.gmra.mrb[34].mxu0 %v1278_v30  ;;  %v1300_v30 = vand.u32 4294901760, %v1299_v46  ;;  %v1076_v46 = vsel %vm197_vm0, %v997_v53, 0 }
 0x1d7   : > { %1284 = vmatprep.mubr.f32.mxu0 %v11667_v0  ;;  %v9285_v53 = vand.u32 4294901760, %v1076_v46 }
 0x1d8   : > { %1985 = vmatmul.mubr.f32.gmra.mrb[22].mxu1 %v9235_v10 }
 0x1d9   : > { %1990 = vmatprep.mubr.f32.mxu1 %v11667_v0  ;;  %11922 = vst [vmem:[#allocation36_spill] sm:$0xff] %v9285_v53  ;;  %v9299_v40 = vsub.f32 %v1076_v46, %v9285_v53 }
 0x1da   : > { %1290 = vmatmul.mubr.f32.gmra.mrb[36].mxu0 %v1289_v11  ;;  %v1311_v11 = vand.u32 4294901760, %v1310_v52  ;;  %v1079_v52 = vsel %vm197_vm0, %v998_v43, 0 }
 0x1db   : > { %1295 = vmatprep.mubr.f32.mxu0 %v11667_v0  ;;  %v9301_v43 = vand.u32 4294901760, %v1079_v52 }
 0x1dc   : > { %1993 = vmatmul.mubr.f32.gmra.mrb[24].mxu1 %v9251_v58 }
 0x1dd   : > { %1998 = vmatprep.mubr.f32.mxu1 %v11667_v0  ;;  %v9312_v46 = vsub.f32 %v1079_v52, %v9301_v43 }
 0x1de   : > { %1301 = vmatmul.mubr.f32.gmra.mrb[38].mxu0 %v1300_v30  ;;  %v1322_v30 = vand.u32 4294901760, %v1321_v28  ;;  %v1082_v28 = vsel %vm197_vm0, %v999_v4, 0  ;;  %v1344_v4 = vand.u32 4294901760, %v1343_v50 }
 0x1df   : > { %1306 = vmatprep.mubr.f32.mxu0 %v11667_v0  ;;  %v9314_v53 = vand.u32 4294901760, %v1082_v28 }
 0x1e0   : > { %2001 = vmatmul.mubr.f32.gmra.mrb[26].mxu1 %v9267_v39 }
 0x1e1   : > { %2006 = vmatprep.mubr.f32.mxu1 %v11667_v0  ;;  %v9324_v26 = vsub.f32 %v1082_v28, %v9314_v53 }
 0x1e2   : > { %1312 = vmatmul.mubr.f32.gmra.mrb[40].mxu0 %v1311_v11  ;;  %v1333_v11 = vand.u32 4294901760, %v1332_v16  ;;  %v1354_v16 = vsub.f32 %v9187_v14, %v11632_v37 }
 0x1e3   : > { %1317 = vmatprep.mubr.f32.mxu0 %v11667_v0 }
 0x1e4   : > { %2009 = vmatmul.mubr.f32.gmra.mrb[28].mxu1 %v9283_v12  ;;  %v1355_v52 = vand.u32 4294901760, %v1354_v16  ;;  %v11923_v16 = vand.u32 4294901760, %v8818_v20 }
 0x1e5   : > { %2014 = vmatprep.mubr.f32.mxu1 %v11667_v0 }
 0x1e6   : > { %1323 = vmatmul.mubr.f32.gmra.mrb[42].mxu0 %v1322_v30  ;;  %v11634_v30 = vand.u32 4294901760, %v9203_v63 }
 0x1e7   : > { %1328 = vmatprep.mubr.f32.mxu0 %v11667_v0 }
 0x1e8   : > { %2017 = vmatmul.mubr.f32.gmra.mrb[30].mxu1 %v9299_v40  ;;  %v1365_v50 = vsub.f32 %v9203_v63, %v11634_v30  ;;  %v11924_v30 = vand.u32 4294901760, %v8823_v22 }
 0x1e9   : > { %2022 = vmatprep.mubr.f32.mxu1 %v11667_v0 }
 0x1ea   : > { %1334 = vmatmul.mubr.f32.gmra.mrb[44].mxu0 %v1333_v11  ;;  %v11633_v11 = vand.u32 4294901760, %v9219_v42  ;;  %v1366_v37 = vand.u32 4294901760, %v1365_v50 }
 0x1eb   : > { %1339 = vmatprep.mubr.f32.mxu0 %v11667_v0 }
 0x1ec   : > { %2025 = vmatmul.mubr.f32.gmra.mrb[32].mxu1 %v9312_v46  ;;  %v1376_v28 = vsub.f32 %v9219_v42, %v11633_v11  ;;  %v11635_v11 = vand.u32 4294901760, %v9251_v58 }
 0x1ed   : > { %2030 = vmatprep.mubr.f32.mxu1 %v11667_v0 }
 0x1ee   : > { %1345 = vmatmul.mubr.f32.gmra.mrb[46].mxu0 %v1344_v4  ;;  %v1386_v4 = vand.u32 4294901760, %v9235_v10 }
 0x1ef   : > { %1350 = vmatprep.mubr.f32.mxu0 %v11667_v0 }
 0x1f0   : > { %2033 = vmatmul.mubr.f32.gmra.mrb[34].mxu1 %v9324_v26  ;;  %v1387_v50 = vsub.f32 %v9235_v10, %v1386_v4  ;;  %v11951_v10 = vand.u32 4294901760, %v9008_v31  ;;  %v11958_v31 = vld [vmem:[#allocation32_spill] sm:$0xff] }
 0x1f1   : > { %2107 = vmatprep.mubr.f32.mxu1 %v11667_v0 }
 0x1f2   : > { %1356 = vmatmul.mubr.f32.gmra.mrb[48].mxu0 %v1355_v52  ;;  %v1377_v52 = vand.u32 4294901760, %v1376_v28  ;;  %v11925_v28 = vand.u32 4294901760, %v8834_v29 }
 0x1f3   : > { %1361 = vmatprep.mubr.f32.mxu0 %v11667_v0 }
 0x1f4   : > { %2111 = vmatmul.mubr.f32.vlgmr.msra.gmra.mrb[36].mxu1 %v11923_v16 }
 0x1f5   : > { %7248 = vmatpush1.bf16.msra.mxu1 %v8883_v1  ;;  %2116 = vmatprep.mubr.f32.mxu1 %v11667_v0  ;;  %v1388_v1 = vand.u32 4294901760, %v1387_v50  ;;  %v11926_v50 = vand.u32 4294901760, %v8903_v23 }
 0x1f6   : > { %7250 = vmatprep.subr.bf16.mxu1 %v8916_v33  ;;  %1367 = vmatmul.mubr.f32.gmra.mrb[50].mxu0 %v1366_v37  ;;  %v1398_v33 = vsub.f32 %v9251_v58, %v11635_v11  ;;  %v11636_v37 = vand.u32 4294901760, %v9267_v39 }
 0x1f7   : > { %1372 = vmatprep.mubr.f32.mxu0 %v11667_v0 }
 0x1f8   : > { %2120 = vmatmul.mubr.f32.gmra.mrb[38].mxu1 %v11924_v30  ;;  %v1399_v16 = vand.u32 4294901760, %v1398_v33  ;;  %v1409_v30 = vsub.f32 %v9267_v39, %v11636_v37  ;;  %v11638_v33 = vand.u32 4294901760, %v9299_v40 }
 0x1f9   : > { %2125 = vmatprep.mubr.f32.mxu1 %v11667_v0 }
 0x1fa   : > { %1378 = vmatmul.mubr.f32.gmra.mrb[52].mxu0 %v1377_v52  ;;  %v11637_v52 = vand.u32 4294901760, %v9283_v12  ;;  %v1410_v11 = vand.u32 4294901760, %v1409_v30  ;;  %v1441_v30 = vand.u32 4294901760, %v9312_v46 }
 0x1fb   : > { %1383 = vmatprep.mubr.f32.mxu0 %v11667_v0 }
 0x1fc   : > { %2129 = vmatmul.mubr.f32.gmra.mrb[40].mxu1 %v11925_v28  ;;  %v11927_v28 = vand.u32 4294901760, %v8919_v36 }
 0x1fd   : > { %2134 = vmatprep.mubr.f32.mxu1 %v11667_v0 }
 0x1fe   : > { %1389 = vmatmul.mubr.f32.gmra.mrb[54].mxu0 %v1388_v1  ;;  %v1420_v1 = vsub.f32 %v9283_v12, %v11637_v52 }
 0x1ff   : > { %1394 = vmatprep.mubr.f32.mxu0 %v11667_v0 }
 0x200   : > { %2138 = vmatmul.mubr.f32.gmra.mrb[42].mxu1 %v11926_v50  ;;  %v1421_v37 = vand.u32 4294901760, %v1420_v1  ;;  %v11928_v50 = vand.u32 4294901760, %v8980_v34  ;;  %v1452_v1 = vand.u32 4294901760, %v9324_v26 }
 0x201   : > { %2143 = vmatprep.mubr.f32.mxu1 %v11667_v0 }
 0x202   : > { %1400 = vmatmul.mubr.f32.gmra.mrb[56].mxu0 %v1399_v16  ;;  %v1431_v16 = vsub.f32 %v9299_v40, %v11638_v33 }
 0x203   : > { %1405 = vmatprep.mubr.f32.mxu0 %v11667_v0 }
 0x204   : > { %2147 = vmatmul.mubr.f32.gmra.mrb[44].mxu1 %v11927_v28  ;;  %v1432_v52 = vand.u32 4294901760, %v1431_v16  ;;  %v11929_v28 = vand.u32 4294901760, %v9023_v45  ;;  %v11930_v16 = vand.u32 4294901760, %v9089_v60 }
 0x205   : > { %2152 = vmatprep.mubr.f32.mxu1 %v11667_v0 }
 0x206   : > { %1411 = vmatmul.mubr.f32.gmra.mrb[58].mxu0 %v1410_v11  ;;  %v1442_v11 = vsub.f32 %v9312_v46, %v1441_v30  ;;  %v11957_v46 = vld [vmem:[#allocation31_spill] sm:$0xff] }
 0x207   : > { %1416 = vmatprep.mubr.f32.mxu0 %v11667_v0 }
 0x208   : > { %2156 = vmatmul.mubr.f32.gmra.mrb[46].mxu1 %v11928_v50  ;;  %v1443_v33 = vand.u32 4294901760, %v1442_v11  ;;  %v11934_v11 = vand.u32 4294901760, %v8962_v25  ;;  %v11942_v25 = vand.u32 4294901760, %v9155_v2  ;;  %v11946_v2 = vand.u32 4294901760, %v9219_v42 }
 0x209   : > { %2161 = vmatprep.mubr.f32.mxu1 %v11667_v0  ;;  %v11950_v42 = vand.u32 4294901760, %v9299_v40  ;;  %v11955_v40 = vld [vmem:[#allocation9_spill] sm:$0xff] }
 0x20a   : > { %1422 = vmatmul.mubr.f32.gmra.mrb[60].mxu0 %v1421_v37  ;;  %v1453_v37 = vsub.f32 %v9324_v26, %v1452_v1  ;;  %v11956_v26 = vld [vmem:[#allocation30_spill] sm:$0xff] }
 0x20b   : > { %1427 = vmatprep.mubr.f32.mxu0 %v11667_v0 }
 0x20c   : > { %2165 = vmatmul.mubr.f32.gmra.mrb[48].mxu1 %v11929_v28  ;;  %v1454_v50 = vand.u32 4294901760, %v1453_v37  ;;  %v11931_v28 = vand.u32 4294901760, %v9125_v19 }
 0x20d   : > { %2170 = vmatprep.mubr.f32.mxu1 %v11667_v0 }
 0x20e   : > { %1433 = vmatmul.mubr.f32.gmra.mrb[62].mxu0 %v1432_v52  ;;  %v11932_v52 = vand.u32 4294901760, %v9150_v56 }
 0x20f   : > { %1438 = vmatprep.mubr.f32.mxu0 %v11667_v0 }
 0x210   : > { %2174 = vmatmul.mubr.f32.gmra.mrb[50].mxu1 %v11930_v16  ;;  %v11936_v16 = vand.u32 4294901760, %v8873_v59  ;;  %v11939_v59 = vand.u32 4294901760, %v8988_v8  ;;  %v11944_v8 = vand.u32 4294901760, %v9187_v14  ;;  %v11948_v14 = vand.u32 4294901760, %v9267_v39 }
 0x211   : > { %2179 = vmatprep.mubr.f32.mxu1 %v11667_v0 }
 0x212   : > { %1444 = vmatmul.mubr.f32.gmra.mrb[64].mxu0 %v1443_v33  ;;  %v11933_v33 = vand.u32 4294901760, %v8926_v44  ;;  %v11937_v44 = vand.u32 4294901760, %v8890_v5  ;;  %v11940_v5 = vand.u32 4294901760, %v9063_v32  ;;  %v11943_v32 = vand.u32 4294901760, %v9171_v24 }
 0x213   : > { %1449 = vmatprep.mubr.f32.mxu0 %v11667_v0  ;;  %v11947_v24 = vand.u32 4294901760, %v9251_v58  ;;  %v11952_v58 = vld [vmem:[#allocation22_spill] sm:$0xff] }
 0x214   : > { %2183 = vmatmul.mubr.f32.gmra.mrb[52].mxu1 %v11931_v28  ;;  %v9412_v37 = vpack.c.bf16 %v11934_v11, %v11933_v33  ;;  %v11953_v39 = vand.u32 4294901760, %v11952_v58  ;;  %v11963_v28 = vld [vmem:[#allocation11_spill] sm:$0xff] }
 0x215   : > { %2188 = vmatprep.mubr.f32.mxu1 %v11667_v0  ;;  %v7036_v33 = vld [vmem:[%s11578_s2 + $0xf0] sm:$0xff] }
 0x216   : > { %1455 = vmatmul.mubr.f32.gmra.mrb[66].mxu0 %v1454_v50  ;;  %11935 = vst [vmem:[#allocation37_spill] sm:$0xff] %v9412_v37  ;;  %v11962_v50 = vld [vmem:[#allocation36_spill] sm:$0xff]  ;;  %v7040_v58 = vld [vmem:[%s11578_s2 + $0x110] sm:$0xff] }
 0x217   : > { %1545 = vmatprep.mubr.f32.mxu0 %v11667_v0 }
 0x218   : > { %2192 = vmatmul.mubr.f32.gmra.mrb[54].mxu1 %v11932_v52  ;;  %v11964_v52 = vld [vmem:[#allocation25_spill] sm:$0xff] }
 0x219   : > { %2197 = vmatprep.mubr.f32.mxu1 %v11667_v0 }
 0x21a   : > { %1547 = vmatmul.mubr.f32.vlgmr.msra.gmra.mrb[12].mxu0 %v8808_v15 }
 0x21b   : > { %7240 = vmatpush1.bf16.msra.mxu0 %v8866_v54  ;;  %1552 = vmatprep.mubr.f32.mxu0 %v11667_v0  ;;  %v11938_v54 = vand.u32 4294901760, %v8956_v13  ;;  %v11941_v13 = vand.u32 4294901760, %v9134_v3  ;;  %v11945_v3 = vand.u32 4294901760, %v9203_v63  ;;  %v11949_v63 = vand.u32 4294901760, %v9283_v12 }
 0x21c   : > { %7254 = vmatprep.subr.bf16.mxu0 %v9412_v37  ;;  %2201 = vmatmul.mubr.f32.gmra.mrb[0].mxu1 %v11936_v16  ;;  %v9512_v12 = vpack.c.bf16 %v11953_v39, %v11951_v10  ;;  %v2997_v16 = vsel %vm197_vm0, %v7036_v33, 0  ;;  %v11976_v33 = vld [vmem:[#allocation14_spill] sm:$0xff] }
 0x21d   : > { %2206 = vmatprep.mubr.f32.mxu1 %v11667_v0 }
 0x21e   : > { %1554 = vmatmul.mubr.f32.gmra.mrb[14].mxu0 %v8814_v18  ;;  %11954 = vst [vmem:[#allocation22_spill] sm:$0xff] %v9512_v12 }
 0x21f   : > { %1559 = vmatprep.mubr.f32.mxu0 %v11667_v0 }
 0x220   : > { %2210 = vmatmul.mubr.f32.gmra.mrb[2].mxu1 %v11937_v44  ;;  %v7037_v44 = vld [vmem:[%s11578_s2 + $0xf8] sm:$0xff] }
 0x221   : > { %2215 = vmatprep.mubr.f32.mxu1 %v11667_v0 }
 0x222   : > { %1561 = vmatmul.mubr.f32.gmra.mrb[16].mxu0 %v8820_v21 }
 0x223   : > { %1566 = vmatprep.mubr.f32.mxu0 %v11667_v0 }
 0x224   : > { %2219 = vmatmul.mubr.f32.gmra.mrb[4].mxu1 %v11938_v54 }
 0x225   : > { %2224 = vmatprep.mubr.f32.mxu1 %v11667_v0 }
 0x226   : > { %1568 = vmatmul.mubr.f32.gmra.mrb[18].mxu0 %v8880_v61 }
 0x227   : > { %1573 = vmatprep.mubr.f32.mxu0 %v11667_v0 }
 0x228   : > { %2228 = vmatmul.mubr.f32.gmra.mrb[6].mxu1 %v11939_v59  ;;  %v9610_v59 = vand.u32 4294901760, %v2997_v16 }
 0x229   : > { %2233 = vmatprep.mubr.f32.mxu1 %v11667_v0 }
 0x22a   : > { %1575 = vmatmul.mubr.f32.gmra.mrb[20].mxu0 %v8893_v7  ;;  %11967 = vst [vmem:[#allocation31_spill] sm:$0xff] %v9610_v59 }
 0x22b   : > { %1580 = vmatprep.mubr.f32.mxu0 %v11667_v0 }
 0x22c   : > { %2237 = vmatmul.mubr.f32.gmra.mrb[8].mxu1 %v11940_v5  ;;  %v3000_v5 = vsel %vm197_vm0, %v7037_v44, 0  ;;  %v7041_v44 = vld [vmem:[%s11578_s2 + $0x118] sm:$0xff] }
 0x22d   : > { %2242 = vmatprep.mubr.f32.mxu1 %v11667_v0 }
 0x22e   : > { %1582 = vmatmul.mubr.f32.gmra.mrb[22].mxu0 %v8941_v57 }
 0x22f   : > { %1587 = vmatprep.mubr.f32.mxu0 %v11667_v0 }
 0x230   : > { %2246 = vmatmul.mubr.f32.gmra.mrb[10].mxu1 %v11941_v13  ;;  %v7038_v13 = vld [vmem:[%s11578_s2 + $0x100] sm:$0xff] }
 0x231   : > { %2251 = vmatprep.mubr.f32.mxu1 %v11667_v0 }
 0x232   : > { %1589 = vmatmul.mubr.f32.gmra.mrb[24].mxu0 %v8982_v48 }
 0x233   : > { %1594 = vmatprep.mubr.f32.mxu0 %v11667_v0 }
 0x234   : > { %2255 = vmatmul.mubr.f32.gmra.mrb[12].mxu1 %v11942_v25 }
 0x235   : > { %2260 = vmatprep.mubr.f32.mxu1 %v11667_v0 }
 0x236   : > { %1596 = vmatmul.mubr.f32.gmra.mrb[26].mxu0 %v9051_v47 }
 0x237   : > { %1601 = vmatprep.mubr.f32.mxu0 %v11667_v0 }
 0x238   : > { %2264 = vmatmul.mubr.f32.gmra.mrb[14].mxu1 %v11943_v32 }
 0x239   : > { %2269 = vmatprep.mubr.f32.mxu1 %v11667_v0 }
 0x23a   : > { %1603 = vmatmul.mubr.f32.gmra.mrb[28].mxu0 %v9098_v35 }
 0x23b   : > { %1608 = vmatprep.mubr.f32.mxu0 %v11667_v0 }
 0x23c   : > { %2273 = vmatmul.mubr.f32.gmra.mrb[16].mxu1 %v11944_v8  ;;  %v9627_v8 = vsub.f32 %v2997_v16, %v9610_v59 }
 0x23d   : > { %2278 = vmatprep.mubr.f32.mxu1 %v11667_v0 }
 0x23e   : > { %1610 = vmatmul.mubr.f32.gmra.mrb[30].mxu0 %v9127_v38 }
 0x23f   : > { %1615 = vmatprep.mubr.f32.mxu0 %v11667_v0 }
 0x240   : > { %2282 = vmatmul.mubr.f32.gmra.mrb[18].mxu1 %v11945_v3  ;;  %v3003_v3 = vsel %vm197_vm0, %v7038_v13, 0 }
 0x241   : > { %2287 = vmatprep.mubr.f32.mxu1 %v11667_v0 }
 0x242   : > { %1617 = vmatmul.mubr.f32.gmra.mrb[32].mxu0 %v8851_v41 }
 0x243   : > { %1622 = vmatprep.mubr.f32.mxu0 %v11667_v0 }
 0x244   : > { %2291 = vmatmul.mubr.f32.gmra.mrb[20].mxu1 %v11946_v2  ;;  %v7039_v2 = vld [vmem:[%s11578_s2 + $0x108] sm:$0xff] }
 0x245   : > { %2296 = vmatprep.mubr.f32.mxu1 %v11667_v0  ;;  %v3006_v10 = vsel %vm197_vm0, %v7039_v2, 0 }
 0x246   : > { %1624 = vmatmul.mubr.f32.gmra.mrb[34].mxu0 %v8863_v49 }
 0x247   : > { %1629 = vmatprep.mubr.f32.mxu0 %v11667_v0 }
 0x248   : > { %2300 = vmatmul.mubr.f32.gmra.mrb[22].mxu1 %v1386_v4  ;;  %v11959_v4 = vld [vmem:[#allocation33_spill] sm:$0xff] }
 0x249   : > { %2305 = vmatprep.mubr.f32.mxu1 %v11667_v0  ;;  %11969 = vst [vmem:[#allocation33_spill] sm:$0xff] %v9627_v8 }
 0x24a   : > { %1631 = vmatmul.mubr.f32.gmra.mrb[36].mxu0 %v8910_v27 }
 0x24b   : > { %1636 = vmatprep.mubr.f32.mxu0 %v11667_v0 }
 0x24c   : > { %2309 = vmatmul.mubr.f32.gmra.mrb[24].mxu1 %v11947_v24  ;;  %v9639_v24 = vand.u32 4294901760, %v3003_v3 }
 0x24d   : > { %2314 = vmatprep.mubr.f32.mxu1 %v11667_v0 }
 0x24e   : > { %1638 = vmatmul.mubr.f32.gmra.mrb[38].mxu0 %v8946_v9  ;;  %v9655_v39 = vsub.f32 %v3003_v3, %v9639_v24 }
 0x24f   : > { %1643 = vmatprep.mubr.f32.mxu0 %v11667_v0 }
 0x250   : > { %2318 = vmatmul.mubr.f32.gmra.mrb[26].mxu1 %v11948_v14  ;;  %11972 = vst [vmem:[#allocation36_spill] sm:$0xff] %v9655_v39  ;;  %v11640_v13 = vand.u32 4294901760, %v9655_v39 }
 0x251   : > { %2323 = vmatprep.mubr.f32.mxu1 %v11667_v0 }
 0x252   : > { %1645 = vmatmul.mubr.f32.gmra.mrb[40].mxu0 %v9019_v6 }
 0x253   : > { %1650 = vmatprep.mubr.f32.mxu0 %v11667_v0 }
 0x254   : > { %2327 = vmatmul.mubr.f32.gmra.mrb[28].mxu1 %v11949_v63 }
 0x255   : > { %2332 = vmatprep.mubr.f32.mxu1 %v11667_v0 }
 0x256   : > { %1652 = vmatmul.mubr.f32.gmra.mrb[42].mxu0 %v9110_v62 }
 0x257   : > { %1657 = vmatprep.mubr.f32.mxu0 %v11667_v0 }
 0x258   : > { %2336 = vmatmul.mubr.f32.gmra.mrb[30].mxu1 %v11950_v42  ;;  %v11643_v42 = vand.u32 4294901760, %v9627_v8 }
 0x259   : > { %2341 = vmatprep.mubr.f32.mxu1 %v11667_v0 }
 0x25a   : > { %1659 = vmatmul.mubr.f32.gmra.mrb[44].mxu0 %v9136_v51 }
 0x25b   : > { %1664 = vmatprep.mubr.f32.mxu0 %v11667_v0 }
 0x25c   : > { %2345 = vmatmul.mubr.f32.gmra.mrb[32].mxu1 %v1441_v30  ;;  %v11960_v30 = vld [vmem:[#allocation34_spill] sm:$0xff] }
 0x25d   : > { %2350 = vmatprep.mubr.f32.mxu1 %v11667_v0 }
 0x25e   : > { %1666 = vmatmul.mubr.f32.gmra.mrb[46].mxu0 %v9157_v55 }
 0x25f   : > { %1671 = vmatprep.mubr.f32.mxu0 %v11667_v0 }
 0x260   : > { %2354 = vmatmul.mubr.f32.gmra.mrb[34].mxu1 %v1452_v1  ;;  %v11961_v1 = vld [vmem:[#allocation35_spill] sm:$0xff] }
 0x261   : > { %2436 = vmatprep.mubr.f32.mxu1 %v11667_v0  ;;  %11971 = vst [vmem:[#allocation35_spill] sm:$0xff] %v9639_v24 }
 0x262   : > { %1673 = vmatmul.mubr.f32.gmra.mrb[48].mxu0 %v9173_v17 }
 0x263   : > { %1678 = vmatprep.mubr.f32.mxu0 %v11667_v0 }
 0x264   : > { %2438 = vmatmul.mubr.f32.vlgmr.msra.gmra.mrb[36].mxu1 %v8808_v15 }
 0x265   : > { %7252 = vmatpush1.bf16.msra.mxu1 %v11955_v40  ;;  %2443 = vmatprep.mubr.f32.mxu1 %v11667_v0 }
 0x266   : > { %7278 = vmatprep.subr.bf16.mxu1 %v9512_v12  ;;  %1680 = vmatmul.mubr.f32.gmra.mrb[50].mxu0 %v11956_v26 }
 0x267   : > { %1685 = vmatprep.mubr.f32.mxu0 %v11667_v0 }
 0x268   : > { %2445 = vmatmul.mubr.f32.gmra.mrb[38].mxu1 %v8814_v18 }
 0x269   : > { %2450 = vmatprep.mubr.f32.mxu1 %v11667_v0 }
 0x26a   : > { %1687 = vmatmul.mubr.f32.gmra.mrb[52].mxu0 %v11957_v46 }
 0x26b   : > { %1692 = vmatprep.mubr.f32.mxu0 %v11667_v0 }
 0x26c   : > { %2452 = vmatmul.mubr.f32.gmra.mrb[40].mxu1 %v8820_v21 }
 0x26d   : > { %2457 = vmatprep.mubr.f32.mxu1 %v11667_v0 }
 0x26e   : > { %1694 = vmatmul.mubr.f32.gmra.mrb[54].mxu0 %v11958_v31 }
 0x26f   : > { %1699 = vmatprep.mubr.f32.mxu0 %v11667_v0 }
 0x270   : > { %2459 = vmatmul.mubr.f32.gmra.mrb[42].mxu1 %v8880_v61 }
 0x271   : > { %2464 = vmatprep.mubr.f32.mxu1 %v11667_v0 }
 0x272   : > { %1701 = vmatmul.mubr.f32.gmra.mrb[56].mxu0 %v11959_v4 }
 0x273   : > { %1706 = vmatprep.mubr.f32.mxu0 %v11667_v0 }
 0x274   : > { %2466 = vmatmul.mubr.f32.gmra.mrb[44].mxu1 %v8893_v7 }
 0x275   : > { %2471 = vmatprep.mubr.f32.mxu1 %v11667_v0 }
 0x276   : > { %1708 = vmatmul.mubr.f32.gmra.mrb[58].mxu0 %v11960_v30 }
 0x277   : > { %1713 = vmatprep.mubr.f32.mxu0 %v11667_v0 }
 0x278   : > { %2473 = vmatmul.mubr.f32.gmra.mrb[46].mxu1 %v8941_v57 }
 0x279   : > { %2478 = vmatprep.mubr.f32.mxu1 %v11667_v0 }
 0x27a   : > { %1715 = vmatmul.mubr.f32.gmra.mrb[60].mxu0 %v11961_v1 }
 0x27b   : > { %1720 = vmatprep.mubr.f32.mxu0 %v11667_v0 }
 0x27c   : > { %2480 = vmatmul.mubr.f32.gmra.mrb[48].mxu1 %v8982_v48 }
 0x27d   : > { %2485 = vmatprep.mubr.f32.mxu1 %v11667_v0 }
 0x27e   : > { %1722 = vmatmul.mubr.f32.gmra.mrb[62].mxu0 %v11962_v50 }
 0x27f   : > { %1727 = vmatprep.mubr.f32.mxu0 %v11667_v0 }
 0x280   : > { %2487 = vmatmul.mubr.f32.gmra.mrb[50].mxu1 %v9051_v47 }
 0x281   : > { %2492 = vmatprep.mubr.f32.mxu1 %v11667_v0 }
 0x282   : > { %1729 = vmatmul.mubr.f32.gmra.mrb[64].mxu0 %v9301_v43 }
 0x283   : > { %1734 = vmatprep.mubr.f32.mxu0 %v11667_v0 }
 0x284   : > { %2494 = vmatmul.mubr.f32.gmra.mrb[52].mxu1 %v9098_v35 }
 0x285   : > { %2499 = vmatprep.mubr.f32.mxu1 %v11667_v0 }
 0x286   : > { %1736 = vmatmul.mubr.f32.gmra.mrb[66].mxu0 %v9314_v53 }
 0x287   : > { %1814 = vmatprep.mubr.f32.mxu0 %v11667_v0 }
 0x288   : > { %2501 = vmatmul.mubr.f32.gmra.mrb[54].mxu1 %v9127_v38 }
 0x289   : > { %2506 = vmatprep.mubr.f32.mxu1 %v11667_v0 }
 0x28a   : > { %1817 = vmatmul.mubr.f32.vlgmr.msra.gmra.mrb[12].mxu0 %v8818_v20  ;;  %v7034_v20 = vld [vmem:[%s11578_s2 + $0xe0] sm:$0xff] }
 0x28b   : > { %7256 = vmatpush1.bf16.msra.mxu0 %v11963_v28  ;;  %1822 = vmatprep.mubr.f32.mxu0 %v11667_v0 }
 0x28c   : > { %7258 = vmatprep.subr.bf16.mxu0 %v11964_v52  ;;  %2508 = vmatmul.mubr.f32.gmra.mrb[0].mxu1 %v8851_v41  ;;  %v3168_v52 = vsub.f32 %v9627_v8, %v11643_v42 }
 0x28d   : > { %2513 = vmatprep.mubr.f32.mxu1 %v11667_v0 }
 0x28e   : > { %1825 = vmatmul.mubr.f32.gmra.mrb[14].mxu0 %v8823_v22  ;;  %v2991_v22 = vsel %vm197_vm0, %v7034_v20, 0  ;;  %v9660_v20 = vand.u32 4294901760, %v3006_v10 }
 0x28f   : > { %1830 = vmatprep.mubr.f32.mxu0 %v11667_v0 }
 0x290   : > { %2515 = vmatmul.mubr.f32.gmra.mrb[2].mxu1 %v8863_v49  ;;  %11973 = vst [vmem:[#allocation25_spill] sm:$0xff] %v9660_v20  ;;  %v9678_v3 = vsub.f32 %v3006_v10, %v9660_v20  ;;  %v3190_v10 = vsub.f32 %v9655_v39, %v11640_v13 }
 0x291   : > { %2520 = vmatprep.mubr.f32.mxu1 %v11667_v0 }
 0x292   : > { %1833 = vmatmul.mubr.f32.gmra.mrb[16].mxu0 %v8834_v29  ;;  %v7035_v29 = vld [vmem:[%s11578_s2 + $0xe8] sm:$0xff] }
 0x293   : > { %1838 = vmatprep.mubr.f32.mxu0 %v11667_v0 }
 0x294   : > { %2522 = vmatmul.mubr.f32.gmra.mrb[4].mxu1 %v8910_v27 }
 0x295   : > { %2527 = vmatprep.mubr.f32.mxu1 %v11667_v0 }
 0x296   : > { %1841 = vmatmul.mubr.f32.gmra.mrb[18].mxu0 %v8903_v23  ;;  %v9583_v23 = vand.u32 4294901760, %v2991_v22 }
 0x297   : > { %1846 = vmatprep.mubr.f32.mxu0 %v11667_v0 }
 0x298   : > { %2529 = vmatmul.mubr.f32.gmra.mrb[6].mxu1 %v8946_v9  ;;  %11965 = vst [vmem:[#allocation9_spill] sm:$0xff] %v9583_v23  ;;  %v9594_v11 = vsub.f32 %v2991_v22, %v9583_v23  ;;  %v11974_v22 = vld [vmem:[#allocation15_spill] sm:$0xff] }
 0x299   : > { %2534 = vmatprep.mubr.f32.mxu1 %v11667_v0  ;;  %11978 = vst [vmem:[#allocation15_spill] sm:$0xff] %v9678_v3 }
 0x29a   : > { %1849 = vmatmul.mubr.f32.gmra.mrb[20].mxu0 %v8919_v36  ;;  %v2994_v36 = vsel %vm197_vm0, %v7035_v29, 0  ;;  %v3009_v29 = vsel %vm197_vm0, %v7040_v58, 0 }
 0x29b   : > { %1854 = vmatprep.mubr.f32.mxu0 %v11667_v0  ;;  %v9680_v2 = vand.u32 4294901760, %v3009_v29 }
 0x29c   : > { %2536 = vmatmul.mubr.f32.gmra.mrb[8].mxu1 %v9019_v6 }
 0x29d   : > { %2541 = vmatprep.mubr.f32.mxu1 %v11667_v0 }
 0x29e   : > { %1857 = vmatmul.mubr.f32.gmra.mrb[22].mxu0 %v8980_v34  ;;  %v9596_v34 = vand.u32 4294901760, %v2994_v36 }
 0x29f   : > { %1862 = vmatprep.mubr.f32.mxu0 %v11667_v0 }
 0x2a0   : > { %2543 = vmatmul.mubr.f32.gmra.mrb[10].mxu1 %v9110_v62  ;;  %11966 = vst [vmem:[#allocation30_spill] sm:$0xff] %v9596_v34  ;;  %v9608_v54 = vsub.f32 %v2994_v36, %v9596_v34  ;;  %v11975_v36 = vld [vmem:[#allocation16_spill] sm:$0xff] }
 0x2a1   : > { %2548 = vmatprep.mubr.f32.mxu1 %v11667_v0  ;;  %v11977_v16 = vpack.c.bf16 %v11975_v36, %v11976_v33  ;;  %11979 = vst [vmem:[#allocation16_spill] sm:$0xff] %v9680_v2  ;;  %v7043_v33 = vld [vmem:[%s11578_s2 + $0x128] sm:$0xff] }
 0x2a2   : > { %1865 = vmatmul.mubr.f32.gmra.mrb[24].mxu0 %v9023_v45  ;;  %v11645_v45 = vand.u32 4294901760, %v9594_v11  ;;  %v11644_v32 = vand.u32 4294901760, %v9608_v54 }
 0x2a3   : > { %1870 = vmatprep.mubr.f32.mxu0 %v11667_v0 }
 0x2a4   : > { %2550 = vmatmul.mubr.f32.gmra.mrb[12].mxu1 %v9136_v51  ;;  %v3146_v25 = vsub.f32 %v9594_v11, %v11645_v45  ;;  %v3157_v63 = vsub.f32 %v9608_v54, %v11644_v32  ;;  %v7046_v45 = vld [vmem:[%s11578_s2 + $0x140] sm:$0xff] }
 0x2a5   : > { %2555 = vmatprep.mubr.f32.mxu1 %v11667_v0  ;;  %v3027_v12 = vsel %vm197_vm0, %v7046_v45, 0 }
 0x2a6   : > { %1873 = vmatmul.mubr.f32.gmra.mrb[26].mxu0 %v9089_v60  ;;  %v9619_v60 = vand.u32 4294901760, %v3000_v5  ;;  %v3147_v14 = vand.u32 4294901760, %v3146_v25  ;;  %v3158_v40 = vand.u32 4294901760, %v3157_v63  ;;  %v3169_v25 = vand.u32 4294901760, %v3168_v52  ;;  %v7042_v63 = vld [vmem:[%s11578_s2 + $0x120] sm:$0xff] }
 0x2a7   : > { %1878 = vmatprep.mubr.f32.mxu0 %v11667_v0  ;;  %v9694_v52 = vsub.f32 %v3009_v29, %v9680_v2  ;;  %v3015_v36 = vsel %vm197_vm0, %v7042_v63, 0  ;;  %v3018_v63 = vsel %vm197_vm0, %v7043_v33, 0  ;;  %v9776_v45 = vand.u32 4294901760, %v3027_v12 }
 0x2a8   : > { %2557 = vmatmul.mubr.f32.gmra.mrb[14].mxu1 %v9157_v55  ;;  %11968 = vst [vmem:[#allocation32_spill] sm:$0xff] %v9619_v60 }
 0x2a9   : > { %2562 = vmatprep.mubr.f32.mxu1 %v11667_v0  ;;  %11980 = vst [vmem:[#allocation14_spill] sm:$0xff] %v9694_v52  ;;  %11989 = vst [vmem:[#allocation46_spill] sm:$0xff] %v9776_v45 }
 0x2aa   : > { %1881 = vmatmul.mubr.f32.gmra.mrb[28].mxu0 %v9125_v19  ;;  %v9637_v19 = vsub.f32 %v3000_v5, %v9619_v60 }
 0x2ab   : > { %1886 = vmatprep.mubr.f32.mxu0 %v11667_v0 }
 0x2ac   : > { %2564 = vmatmul.mubr.f32.gmra.mrb[16].mxu1 %v9173_v17  ;;  %11970 = vst [vmem:[#allocation34_spill] sm:$0xff] %v9637_v19 }
 0x2ad   : > { %2569 = vmatprep.mubr.f32.mxu1 %v11667_v0 }
 0x2ae   : > { %1889 = vmatmul.mubr.f32.gmra.mrb[30].mxu0 %v9150_v56  ;;  %v11641_v56 = vand.u32 4294901760, %v9637_v19 }
 0x2af   : > { %3142 = vmatprep.mubr.f32.mxu0 %v11667_v0 }
 0x2b0   : > { %2571 = vmatmul.mubr.f32.gmra.mrb[18].mxu1 %v11956_v26  ;;  %v3179_v5 = vsub.f32 %v9637_v19, %v11641_v56  ;;  %v11993_v19 = vld [vmem:[#allocation20_spill] sm:$0xff] }
 0x2b1   : > { %2576 = vmatprep.mubr.f32.mxu1 %v11667_v0  ;;  %v11994_v8 = vand.u32 4294901760, %v11993_v19  ;;  %v11999_v19 = vld [vmem:[#allocation29_spill] sm:$0xff] }
 0x2b2   : > { %3148 = vmatmul.mubr.f32.vlgmr.msra.gmra.mrb[68].mxu0 %v3147_v14  ;;  %v3012_v14 = vsel %vm197_vm0, %v7041_v44, 0  ;;  %v3180_v58 = vand.u32 4294901760, %v3179_v5  ;;  %v9705_v44 = vand.u32 4294901760, %v3015_v36  ;;  %v11642_v5 = vand.u32 4294901760, %v9694_v52 }
 0x2b3   : > { %7260 = vmatpush1.bf16.msra.mxu0 %v11974_v22  ;;  %3153 = vmatprep.mubr.f32.mxu0 %v11667_v0  ;;  %v9696_v22 = vand.u32 4294901760, %v3012_v14 }
 0x2b4   : > { %7262 = vmatprep.subr.bf16.mxu0 %v11977_v16  ;;  %2578 = vmatmul.mubr.f32.gmra.mrb[20].mxu1 %v11957_v46  ;;  %v3191_v16 = vand.u32 4294901760, %v3190_v10  ;;  %11982 = vst [vmem:[#allocation39_spill] sm:$0xff] %v9705_v44  ;;  %v7044_v10 = vld [vmem:[%s11578_s2 + $0x130] sm:$0xff]  ;;  %v3212_v33 = vsub.f32 %v9694_v52, %v11642_v5 }
 0x2b5   : > { %2583 = vmatprep.mubr.f32.mxu1 %v11667_v0  ;;  %11981 = vst [vmem:[#allocation38_spill] sm:$0xff] %v9696_v22  ;;  %v3021_v56 = vsel %vm197_vm0, %v7044_v10, 0 }
 0x2b6   : > { %3159 = vmatmul.mubr.f32.gmra.mrb[70].mxu0 %v3158_v40  ;;  %v11639_v40 = vand.u32 4294901760, %v9678_v3  ;;  %v3213_v5 = vand.u32 4294901760, %v3212_v33  ;;  %v9744_v10 = vand.u32 4294901760, %v3021_v56 }
 0x2b7   : > { %3164 = vmatprep.mubr.f32.mxu0 %v11667_v0 }
 0x2b8   : > { %2585 = vmatmul.mubr.f32.gmra.mrb[22].mxu1 %v11958_v31  ;;  %v3201_v29 = vsub.f32 %v9678_v3, %v11639_v40  ;;  %v9724_v40 = vand.u32 4294901760, %v3018_v63  ;;  %11987 = vst [vmem:[#allocation44_spill] sm:$0xff] %v9744_v10  ;;  %v11991_v3 = vld [vmem:[#allocation17_spill] sm:$0xff] }
 0x2b9   : > { %2590 = vmatprep.mubr.f32.mxu1 %v11667_v0  ;;  %v11992_v39 = vand.u32 4294901760, %v11991_v3 }
 0x2ba   : > { %3170 = vmatmul.mubr.f32.gmra.mrb[72].mxu0 %v3169_v25  ;;  %v9712_v25 = vsub.f32 %v3012_v14, %v9696_v22  ;;  %11985 = vst [vmem:[#allocation42_spill] sm:$0xff] %v9724_v40  ;;  %v3202_v14 = vand.u32 4294901760, %v3201_v29  ;;  %v9739_v29 = vsub.f32 %v3018_v63, %v9724_v40 }
 0x2bb   : > { %3175 = vmatprep.mubr.f32.mxu0 %v11667_v0 }
 0x2bc   : > { %2592 = vmatmul.mubr.f32.gmra.mrb[24].mxu1 %v11959_v4  ;;  %11983 = vst [vmem:[#allocation40_spill] sm:$0xff] %v9712_v25  ;;  %v11646_v13 = vand.u32 4294901760, %v9712_v25  ;;  %11986 = vst [vmem:[#allocation43_spill] sm:$0xff] %v9739_v29 }
 0x2bd   : > { %2597 = vmatprep.mubr.f32.mxu1 %v11667_v0 }
 0x2be   : > { %3181 = vmatmul.mubr.f32.gmra.mrb[74].mxu0 %v3180_v58  ;;  %v9722_v58 = vsub.f32 %v3015_v36, %v9705_v44  ;;  %v7045_v36 = vld [vmem:[%s11578_s2 + $0x138] sm:$0xff]  ;;  %v3223_v42 = vsub.f32 %v9712_v25, %v11646_v13  ;;  %v9758_v13 = vsub.f32 %v3021_v56, %v9744_v10  ;;  %v7047_v25 = vld [vmem:[%s11578_s2 + $0x148] sm:$0xff] }
 0x2bf   : > { %3186 = vmatprep.mubr.f32.mxu0 %v11667_v0  ;;  %v3024_v32 = vsel %vm197_vm0, %v7045_v36, 0 }
 0x2c0   : > { %2599 = vmatmul.mubr.f32.gmra.mrb[26].mxu1 %v11960_v30  ;;  %11984 = vst [vmem:[#allocation41_spill] sm:$0xff] %v9722_v58  ;;  %v3224_v33 = vand.u32 4294901760, %v3223_v42  ;;  %v9760_v36 = vand.u32 4294901760, %v3024_v32  ;;  %v11670_v56 = vand.u32 4294901760, %v9758_v13 }
 0x2c1   : > { %2604 = vmatprep.mubr.f32.mxu1 %v11667_v0 }
 0x2c2   : > { %3192 = vmatmul.mubr.f32.gmra.mrb[76].mxu0 %v3191_v16  ;;  %v11651_v16 = vand.u32 4294901760, %v9722_v58  ;;  %11988 = vst [vmem:[#allocation45_spill] sm:$0xff] %v9760_v36 }
 0x2c3   : > { %3197 = vmatprep.mubr.f32.mxu0 %v11667_v0 }
 0x2c4   : > { %2606 = vmatmul.mubr.f32.gmra.mrb[28].mxu1 %v11961_v1  ;;  %v3234_v63 = vsub.f32 %v9722_v58, %v11651_v16  ;;  %v3030_v58 = vsel %vm197_vm0, %v7047_v25, 0 }
 0x2c5   : > { %2611 = vmatprep.mubr.f32.mxu1 %v11667_v0 }
 0x2c6   : > { %3203 = vmatmul.mubr.f32.gmra.mrb[78].mxu0 %v3202_v14  ;;  %v11654_v14 = vand.u32 4294901760, %v9739_v29  ;;  %v3235_v16 = vand.u32 4294901760, %v3234_v63  ;;  %v7048_v63 = vld [vmem:[%s11578_s2 + $0x150] sm:$0xff] }
 0x2c7   : > { %3208 = vmatprep.mubr.f32.mxu0 %v11667_v0  ;;  %v3033_v52 = vsel %vm197_vm0, %v7048_v63, 0 }
 0x2c8   : > { %2613 = vmatmul.mubr.f32.gmra.mrb[30].mxu1 %v11962_v50  ;;  %v3245_v42 = vsub.f32 %v9739_v29, %v11654_v14  ;;  %v9785_v14 = vand.u32 4294901760, %v3030_v58  ;;  %v9792_v29 = vsub.f32 %v3027_v12, %v9776_v45  ;;  %v9811_v3 = vand.u32 4294901760, %v3033_v52 }
 0x2c9   : > { %2618 = vmatprep.mubr.f32.mxu1 %v11667_v0 }
 0x2ca   : > { %3214 = vmatmul.mubr.f32.gmra.mrb[80].mxu0 %v3213_v5  ;;  %v9774_v5 = vsub.f32 %v3024_v32, %v9760_v36  ;;  %11990 = vst [vmem:[#allocation47_spill] sm:$0xff] %v9785_v14  ;;  %v3256_v32 = vsub.f32 %v9758_v13, %v11670_v56  ;;  %v9809_v12 = vsub.f32 %v3030_v58, %v9785_v14  ;;  %11998 = vst [vmem:[#allocation48_spill] sm:$0xff] %v9811_v3  ;;  %v7050_v58 = vld [vmem:[%s11578_s2 + $0x160] sm:$0xff]  ;;  %v7051_v56 = vld [vmem:[%s11578_s2 + $0x168] sm:$0xff] }
 0x2cb   : > { %3219 = vmatprep.mubr.f32.mxu0 %v11667_v0 }
 0x2cc   : > { %2620 = vmatmul.mubr.f32.gmra.mrb[32].mxu1 %v9301_v43  ;;  %v11669_v25 = vand.u32 4294901760, %v9774_v5  ;;  %11997 = vst [vmem:[#allocation20_spill] sm:$0xff] %v9809_v12 }
 0x2cd   : > { %2625 = vmatprep.mubr.f32.mxu1 %v11667_v0 }
 0x2ce   : > { %3225 = vmatmul.mubr.f32.gmra.mrb[82].mxu0 %v3224_v33  ;;  %v3246_v33 = vand.u32 4294901760, %v3245_v42  ;;  %v11996_v42 = vmov 0.0  }
 0x2cf   : > { %3230 = vmatprep.mubr.f32.mxu0 %v11667_v0 }
 0x2d0   : > { %2627 = vmatmul.mubr.f32.gmra.mrb[34].mxu1 %v9314_v53 }
 0x2d1   : > { %2701 = vmatprep.mubr.f32.mxu1 %v11667_v0  ;;  %v9799_v0 = vpack.c.bf16 %v11994_v8, %v11992_v39  ;;  %v3257_v8 = vand.u32 4294901760, %v3256_v32  ;;  %v11671_v39 = vand.u32 4294901760, %v9792_v29  ;;  %v9827_v32 = vsub.f32 %v3033_v52, %v9811_v3 }
 0x2d2   : > { %3236 = vmatmul.mubr.f32.gmra.mrb[84].mxu0 %v3235_v16  ;;  %v7049_v16 = vld [vmem:[%s11578_s2 + $0x158] sm:$0xff] }
 0x2d3   : > { %11995 = vst [vmem:[#allocation17_spill] sm:$0xff] %v9799_v0  ;;  %3241 = vmatprep.mubr.f32.mxu0 %v11996_v42  ;;  %v3036_v63 = vsel %vm197_vm0, %v7049_v16, 0  ;;  %12000 = vst [vmem:[#allocation29_spill] sm:$0xff] %v9827_v32 }
 0x2d4   : > { %2703 = vmatmul.mubr.f32.vlgmr.msra.gmra.mrb[36].mxu1 %v8808_v15  ;;  %v3267_v15 = vsub.f32 %v9774_v5, %v11669_v25  ;;  %v3278_v25 = vsub.f32 %v9792_v29, %v11671_v39  ;;  %v9832_v16 = vand.u32 4294901760, %v3036_v63 }
 0x2d5   : > { %7280 = vmatpush1.bf16.msra.mxu1 %v9799_v0  ;;  %2708 = vmatprep.mubr.f32.mxu1 %v11996_v42  ;;  %v7052_v0 = vld [vmem:[%s11578_s2 + $0x170] sm:$0xff] }
 0x2d6   : > { %7282 = vmatprep.subr.bf16.mxu1 %v11999_v19  ;;  %3247 = vmatmul.mubr.f32.gmra.mrb[86].mxu0 %v3246_v33  ;;  %v11674_v33 = vand.u32 4294901760, %v9809_v12  ;;  %v3268_v19 = vand.u32 4294901760, %v3267_v15  ;;  %12001 = vst [vmem:[#allocation49_spill] sm:$0xff] %v9832_v16  ;;  %v3279_v15 = vand.u32 4294901760, %v3278_v25  ;;  %v9846_v39 = vsub.f32 %v3036_v63, %v9832_v16 }
 0x2d7   : > { %3252 = vmatprep.mubr.f32.mxu0 %v11996_v42 }
 0x2d8   : > { %2710 = vmatmul.mubr.f32.gmra.mrb[38].mxu1 %v8814_v18  ;;  %v3039_v18 = vsel %vm197_vm0, %v7050_v58, 0  ;;  %v3289_v52 = vsub.f32 %v9809_v12, %v11674_v33  ;;  %12002 = vst [vmem:[#allocation50_spill] sm:$0xff] %v9846_v39  ;;  %v11680_v63 = vand.u32 4294901760, %v9846_v39  ;;  %v3045_v12 = vsel %vm197_vm0, %v7052_v0, 0 }
 0x2d9   : > { %2715 = vmatprep.mubr.f32.mxu1 %v11996_v42  ;;  %v9848_v58 = vand.u32 4294901760, %v3039_v18 }
 0x2da   : > { %3258 = vmatmul.mubr.f32.gmra.mrb[88].mxu0 %v3257_v8  ;;  %v11677_v8 = vand.u32 4294901760, %v9827_v32  ;;  %v3290_v33 = vand.u32 4294901760, %v3289_v52 }
 0x2db   : > { %3263 = vmatprep.mubr.f32.mxu0 %v11996_v42  ;;  %12003 = vst [vmem:[#allocation51_spill] sm:$0xff] %v9848_v58 }
 0x2dc   : > { %2717 = vmatmul.mubr.f32.gmra.mrb[40].mxu1 %v8820_v21  ;;  %v3042_v21 = vsel %vm197_vm0, %v7051_v56, 0  ;;  %v3300_v25 = vsub.f32 %v9827_v32, %v11677_v8 }
 0x2dd   : > { %2722 = vmatprep.mubr.f32.mxu1 %v11996_v42  ;;  %v9864_v56 = vand.u32 4294901760, %v3042_v21 }
 0x2de   : > { %3269 = vmatmul.mubr.f32.gmra.mrb[90].mxu0 %v3268_v19  ;;  %v9862_v19 = vsub.f32 %v3039_v18, %v9848_v58  ;;  %v3301_v52 = vand.u32 4294901760, %v3300_v25  ;;  %v3311_v18 = vsub.f32 %v9846_v39, %v11680_v63  ;;  %v7057_v39 = vld [vmem:[%s11578_s2 + $0x198] sm:$0xff] }
 0x2df   : > { %3274 = vmatprep.mubr.f32.mxu0 %v11996_v42  ;;  %12005 = vst [vmem:[#allocation53_spill] sm:$0xff] %v9864_v56  ;;  %v9880_v8 = vsub.f32 %v3042_v21, %v9864_v56 }
 0x2e0   : > { %2724 = vmatmul.mubr.f32.gmra.mrb[42].mxu1 %v8880_v61  ;;  %12004 = vst [vmem:[#allocation52_spill] sm:$0xff] %v9862_v19  ;;  %v7053_v61 = vld [vmem:[%s11578_s2 + $0x178] sm:$0xff]  ;;  %v11681_v0 = vand.u32 4294901760, %v9862_v19  ;;  %v3312_v21 = vand.u32 4294901760, %v3311_v18 }
 0x2e1   : > { %2729 = vmatprep.mubr.f32.mxu1 %v11996_v42  ;;  %12007 = vst [vmem:[#allocation55_spill] sm:$0xff] %v9880_v8  ;;  %v3048_v32 = vsel %vm197_vm0, %v7053_v61, 0  ;;  %v11684_v63 = vand.u32 4294901760, %v9880_v8 }
 0x2e2   : > { %3280 = vmatmul.mubr.f32.gmra.mrb[92].mxu0 %v3279_v15  ;;  %v9873_v15 = vand.u32 4294901760, %v3045_v12  ;;  %v9892_v25 = vand.u32 4294901760, %v3048_v32  ;;  %v3322_v61 = vsub.f32 %v9862_v19, %v11681_v0 }
 0x2e3   : > { %3285 = vmatprep.mubr.f32.mxu0 %v11996_v42  ;;  %v3333_v19 = vsub.f32 %v9880_v8, %v11684_v63 }
 0x2e4   : > { %2731 = vmatmul.mubr.f32.gmra.mrb[44].mxu1 %v8893_v7  ;;  %12006 = vst [vmem:[#allocation54_spill] sm:$0xff] %v9873_v15  ;;  %v7054_v7 = vld [vmem:[%s11578_s2 + $0x180] sm:$0xff]  ;;  %12009 = vst [vmem:[#allocation57_spill] sm:$0xff] %v9892_v25  ;;  %v9907_v18 = vsub.f32 %v3048_v32, %v9892_v25  ;;  %v3323_v0 = vand.u32 4294901760, %v3322_v61 }
 0x2e5   : > { %2736 = vmatprep.mubr.f32.mxu1 %v11996_v42  ;;  %v3334_v63 = vand.u32 4294901760, %v3333_v19 }
 0x2e6   : > { %3291 = vmatmul.mubr.f32.gmra.mrb[94].mxu0 %v3290_v33  ;;  %v9890_v33 = vsub.f32 %v3045_v12, %v9873_v15  ;;  %v7055_v12 = vld [vmem:[%s11578_s2 + $0x188] sm:$0xff]  ;;  %12010 = vst [vmem:[#allocation58_spill] sm:$0xff] %v9907_v18  ;;  %v11691_v61 = vand.u32 4294901760, %v9907_v18 }
 0x2e7   : > { %3296 = vmatprep.mubr.f32.mxu0 %v11996_v42 }
 0x2e8   : > { %2738 = vmatmul.mubr.f32.gmra.mrb[46].mxu1 %v8941_v57  ;;  %12008 = vst [vmem:[#allocation56_spill] sm:$0xff] %v9890_v33  ;;  %v3051_v57 = vsel %vm197_vm0, %v7054_v7, 0  ;;  %v12012_v32 = vand.u32 4294901760, %v9890_v33  ;;  %v3355_v19 = vsub.f32 %v9907_v18, %v11691_v61 }
 0x2e9   : > { %2743 = vmatprep.mubr.f32.mxu1 %v11996_v42  ;;  %v9912_v7 = vand.u32 4294901760, %v3051_v57 }
 0x2ea   : > { %3302 = vmatmul.mubr.f32.gmra.mrb[96].mxu0 %v3301_v52  ;;  %v7056_v52 = vld [vmem:[%s11578_s2 + $0x190] sm:$0xff] }
 0x2eb   : > { %3307 = vmatprep.mubr.f32.mxu0 %v11996_v42  ;;  %12011 = vst [vmem:[#allocation59_spill] sm:$0xff] %v9912_v7  ;;  %v9926_v8 = vsub.f32 %v3051_v57, %v9912_v7 }
 0x2ec   : > { %2745 = vmatmul.mubr.f32.gmra.mrb[48].mxu1 %v8982_v48  ;;  %v3054_v48 = vsel %vm197_vm0, %v7055_v12, 0 }
 0x2ed   : > { %2750 = vmatprep.mubr.f32.mxu1 %v11996_v42  ;;  %12013 = vst [vmem:[#allocation60_spill] sm:$0xff] %v9926_v8  ;;  %v9928_v12 = vand.u32 4294901760, %v3054_v48 }
 0x2ee   : > { %3313 = vmatmul.mubr.f32.gmra.mrb[98].mxu0 %v3312_v21  ;;  %v3344_v21 = vsub.f32 %v9890_v33, %v12012_v32  ;;  %v3060_v33 = vsel %vm197_vm0, %v7057_v39, 0 }
 0x2ef   : > { %3318 = vmatprep.mubr.f32.mxu0 %v11996_v42  ;;  %12014 = vst [vmem:[#allocation61_spill] sm:$0xff] %v9928_v12  ;;  %v9942_v57 = vsub.f32 %v3054_v48, %v9928_v12 }
 0x2f0   : > { %2752 = vmatmul.mubr.f32.gmra.mrb[50].mxu1 %v9051_v47  ;;  %v3057_v47 = vsel %vm197_vm0, %v7056_v52, 0  ;;  %v3345_v32 = vand.u32 4294901760, %v3344_v21  ;;  %v3356_v21 = vand.u32 4294901760, %v3355_v19 }
 0x2f1   : > { %2757 = vmatprep.mubr.f32.mxu1 %v11996_v42  ;;  %12015 = vst [vmem:[#allocation62_spill] sm:$0xff] %v9942_v57  ;;  %v9944_v52 = vand.u32 4294901760, %v3057_v47  ;;  %v11695_v39 = vand.u32 4294901760, %v9942_v57 }
 0x2f2   : > { %3324 = vmatmul.mubr.f32.gmra.mrb[100].mxu0 %v3323_v0  ;;  %v11692_v0 = vand.u32 4294901760, %v9926_v8 }
 0x2f3   : > { %3329 = vmatprep.mubr.f32.mxu0 %v11996_v42  ;;  %12016 = vst [vmem:[#allocation63_spill] sm:$0xff] %v9944_v52  ;;  %v9960_v61 = vsub.f32 %v3057_v47, %v9944_v52  ;;  %v3377_v47 = vsub.f32 %v9942_v57, %v11695_v39 }
 0x2f4   : > { %2759 = vmatmul.mubr.f32.gmra.mrb[52].mxu1 %v9098_v35  ;;  %v7058_v35 = vld [vmem:[%s11578_s2 + $0x1a0] sm:$0xff]  ;;  %v3366_v48 = vsub.f32 %v9926_v8, %v11692_v0 }
 0x2f5   : > { %2764 = vmatprep.mubr.f32.mxu1 %v11996_v42  ;;  %12018 = vst [vmem:[#allocation65_spill] sm:$0xff] %v9960_v61  ;;  %v11698_v8 = vand.u32 4294901760, %v9960_v61 }
 0x2f6   : > { %3335 = vmatmul.mubr.f32.gmra.mrb[102].mxu0 %v3334_v63  ;;  %v9953_v63 = vand.u32 4294901760, %v3060_v33  ;;  %v3367_v0 = vand.u32 4294901760, %v3366_v48  ;;  %v3378_v48 = vand.u32 4294901760, %v3377_v47 }
 0x2f7   : > { %3340 = vmatprep.mubr.f32.mxu0 %v11996_v42  ;;  %v3388_v39 = vsub.f32 %v9960_v61, %v11698_v8 }
 0x2f8   : > { %2766 = vmatmul.mubr.f32.gmra.mrb[54].mxu1 %v9127_v38  ;;  %12017 = vst [vmem:[#allocation64_spill] sm:$0xff] %v9953_v63  ;;  %v3063_v38 = vsel %vm197_vm0, %v7058_v35, 0  ;;  %v9970_v19 = vsub.f32 %v3060_v33, %v9953_v63  ;;  %v7060_v33 = vld [vmem:[%s11578_s2 + $0x1b0] sm:$0xff] }
 0x2f9   : > { %2771 = vmatprep.mubr.f32.mxu1 %v11996_v42  ;;  %v9976_v35 = vand.u32 4294901760, %v3063_v38 }
 0x2fa   : > { %3346 = vmatmul.mubr.f32.gmra.mrb[104].mxu0 %v3345_v32  ;;  %v7059_v32 = vld [vmem:[%s11578_s2 + $0x1a8] sm:$0xff]  ;;  %12019 = vst [vmem:[#allocation66_spill] sm:$0xff] %v9970_v19 }
 0x2fb   : > { %3351 = vmatprep.mubr.f32.mxu0 %v11996_v42  ;;  %12020 = vst [vmem:[#allocation67_spill] sm:$0xff] %v9976_v35  ;;  %v9990_v57 = vsub.f32 %v3063_v38, %v9976_v35  ;;  %v3389_v38 = vand.u32 4294901760, %v3388_v39 }
 0x2fc   : > { %2773 = vmatmul.mubr.f32.gmra.mrb[0].mxu1 %v8851_v41  ;;  %v3066_v41 = vsel %vm197_vm0, %v7059_v32, 0 }
 0x2fd   : > { %2778 = vmatprep.mubr.f32.mxu1 %v11996_v42  ;;  %12021 = vst [vmem:[#allocation68_spill] sm:$0xff] %v9990_v57  ;;  %v9992_v32 = vand.u32 4294901760, %v3066_v41  ;;  %v11707_v8 = vand.u32 4294901760, %v9990_v57 }
 0x2fe   : > { %3357 = vmatmul.mubr.f32.gmra.mrb[106].mxu0 %v3356_v21  ;;  %v11703_v21 = vand.u32 4294901760, %v9970_v19 }
 0x2ff   : > { %3362 = vmatprep.mubr.f32.mxu0 %v11996_v42  ;;  %12022 = vst [vmem:[#allocation69_spill] sm:$0xff] %v9992_v32  ;;  %v10006_v61 = vsub.f32 %v3066_v41, %v9992_v32  ;;  %v3410_v39 = vsub.f32 %v9990_v57, %v11707_v8  ;;  %v7119_v8 = vld [vmem:[%s11578_s2 + $0x1c8] sm:$0xff] }
 0x300   : > { %2780 = vmatmul.mubr.f32.gmra.mrb[2].mxu1 %v8863_v49  ;;  %v3069_v49 = vsel %vm197_vm0, %v7060_v33, 0  ;;  %v3399_v47 = vsub.f32 %v9970_v19, %v11703_v21 }
 0x301   : > { %2785 = vmatprep.mubr.f32.mxu1 %v11996_v42  ;;  %12023 = vst [vmem:[#allocation70_spill] sm:$0xff] %v10006_v61  ;;  %v10008_v33 = vand.u32 4294901760, %v3069_v49 }
 0x302   : > { %3368 = vmatmul.mubr.f32.gmra.mrb[108].mxu0 %v3367_v0  ;;  %v7061_v0 = vld [vmem:[%s11578_s2 + $0x1b8] sm:$0xff]  ;;  %v3400_v18 = vand.u32 4294901760, %v3399_v47 }
 0x303   : > { %3373 = vmatprep.mubr.f32.mxu0 %v11996_v42  ;;  %12024 = vst [vmem:[#allocation71_spill] sm:$0xff] %v10008_v33  ;;  %v10019_v41 = vsub.f32 %v3069_v49, %v10008_v33 }
 0x304   : > { %2787 = vmatmul.mubr.f32.gmra.mrb[4].mxu1 %v8910_v27  ;;  %v3072_v27 = vsel %vm197_vm0, %v7061_v0, 0 }
 0x305   : > { %2792 = vmatprep.mubr.f32.mxu1 %v11996_v42  ;;  %12025 = vst [vmem:[#allocation72_spill] sm:$0xff] %v10019_v41  ;;  %v10021_v21 = vand.u32 4294901760, %v3072_v27  ;;  %v11704_v47 = vand.u32 4294901760, %v10019_v41 }
 0x306   : > { %3379 = vmatmul.mubr.f32.gmra.mrb[110].mxu0 %v3378_v48  ;;  %v11706_v48 = vand.u32 4294901760, %v10006_v61 }
 0x307   : > { %3384 = vmatprep.mubr.f32.mxu0 %v11996_v42  ;;  %12026 = vst [vmem:[#allocation73_spill] sm:$0xff] %v10021_v21 }
 0x308   : > { %2794 = vmatmul.mubr.f32.gmra.mrb[6].mxu1 %v8946_v9  ;;  %v3411_v9 = vand.u32 4294901760, %v3410_v39  ;;  %v3421_v0 = vsub.f32 %v10006_v61, %v11706_v48 }
 0x309   : > { %2799 = vmatprep.mubr.f32.mxu1 %v11996_v42 }
 0x30a   : > { %3390 = vmatmul.mubr.f32.gmra.mrb[112].mxu0 %v3389_v38  ;;  %v10031_v38 = vsub.f32 %v3072_v27, %v10021_v21 }
 0x30b   : > { %3395 = vmatprep.mubr.f32.mxu0 %v11996_v42 }
 0x30c   : > { %2801 = vmatmul.mubr.f32.gmra.mrb[8].mxu1 %v9019_v6  ;;  %12027 = vst [vmem:[#allocation74_spill] sm:$0xff] %v10031_v38  ;;  %v3422_v6 = vand.u32 4294901760, %v3421_v0  ;;  %v11705_v49 = vand.u32 4294901760, %v10031_v38 }
 0x30d   : > { %2806 = vmatprep.mubr.f32.mxu1 %v11996_v42 }
 0x30e   : > { %3401 = vmatmul.mubr.f32.gmra.mrb[114].mxu0 %v3400_v18  ;;  %v3432_v18 = vsub.f32 %v10019_v41, %v11704_v47  ;;  %v3443_v39 = vsub.f32 %v10031_v38, %v11705_v49 }
 0x30f   : > { %3406 = vmatprep.mubr.f32.mxu0 %v11996_v42 }
 0x310   : > { %2808 = vmatmul.mubr.f32.gmra.mrb[10].mxu1 %v9110_v62  ;;  %v3433_v62 = vand.u32 4294901760, %v3432_v18 }
 0x311   : > { %2813 = vmatprep.mubr.f32.mxu1 %v11996_v42 }
 0x312   : > { %3412 = vmatmul.mubr.f32.gmra.mrb[116].mxu0 %v3411_v9 }
 0x313   : > { %3417 = vmatprep.mubr.f32.mxu0 %v11996_v42 }
 0x314   : > { %2815 = vmatmul.mubr.f32.gmra.mrb[12].mxu1 %v9136_v51  ;;  %v3444_v51 = vand.u32 4294901760, %v3443_v39  ;;  %v12029_v39 = vld [vmem:[#allocation10_spill] sm:$0xff] }
 0x315   : > { %2820 = vmatprep.mubr.f32.mxu1 %v11996_v42  ;;  %v10043_v27 = vpop.f32.mrb[32].mxu0 }
 0x316   : > { %3423 = vmatmul.mubr.f32.gmra.mrb[118].mxu0 %v3422_v6  ;;  %v10048_v9 = vpop.f32.mrb[33].mxu0 }
 0x317   : > { %3428 = vmatprep.mubr.f32.mxu0 %v11996_v42 }
 0x318   : > { %2822 = vmatmul.mubr.f32.gmra.mrb[14].mxu1 %v9157_v55 }
 0x319   : > { %2827 = vmatprep.mubr.f32.mxu1 %v11996_v42  ;;  %v10053_v0 = vpop.f32.mrb[34].mxu0 }
 0x31a   : > { %3434 = vmatmul.mubr.f32.gmra.mrb[120].mxu0 %v3433_v62  ;;  %v10055_v47 = vpop.f32.mrb[35].mxu0 }
 0x31b   : > { %3439 = vmatprep.mubr.f32.mxu0 %v11996_v42 }
 0x31c   : > { %2829 = vmatmul.mubr.f32.gmra.mrb[16].mxu1 %v9173_v17  ;;  %v12028_v17 = vld [vmem:[#allocation12_spill] sm:$0xff] }
 0x31d   : > { %2834 = vmatprep.mubr.f32.mxu1 %v11996_v42  ;;  %v10060_v6 = vpop.f32.mrb[36].mxu0  ;;  %v12030_v49 = vpack.c.bf16 %v12028_v17, %v12029_v39 }
 0x31e   : > { %3445 = vmatmul.mubr.f32.gmra.mrb[122].mxu0 %v3444_v51  ;;  %v10062_v18 = vpop.f32.mrb[37].mxu0 }
 0x31f   : > { %3535 = vmatprep.mubr.f32.mxu0 %v11996_v42 }
 0x320   : > { %2836 = vmatmul.mubr.f32.gmra.mrb[18].mxu1 %v11956_v26 }
 0x321   : > { %2841 = vmatprep.mubr.f32.mxu1 %v11996_v42  ;;  %v10067_v55 = vpop.f32.mrb[38].mxu0 }
 0x322   : > { %3537 = vmatmul.mubr.f32.vlgmr.msra.gmra.mrb[68].mxu0 %v9583_v23  ;;  %v10070_v62 = vpop.f32.mrb[39].mxu0 }
 0x323   : > { %7264 = vmatpush1.bf16.msra.mxu0 %v12030_v49  ;;  %3542 = vmatprep.mubr.f32.mxu0 %v11996_v42 }
 0x324   : > { %7266 = vmatprep.subr.bf16.mxu0 %v9412_v37  ;;  %2843 = vmatmul.mubr.f32.gmra.mrb[20].mxu1 %v11957_v46  ;;  %v7118_v46 = vld [vmem:[%s11578_s2 + $0x1c0] sm:$0xff]  ;;  %v7121_v37 = vld [vmem:[%s11578_s2 + $0x1d8] sm:$0xff] }
 0x325   : > { %2848 = vmatprep.mubr.f32.mxu1 %v11996_v42  ;;  %v10079_v26 = vpop.f32.mrb[40].mxu0 }
 0x326   : > { %12031 = vst [vmem:[#allocation12_spill] sm:$0xff] %v10079_v26  ;;  %3544 = vmatmul.mubr.f32.gmra.mrb[70].mxu0 %v9596_v34  ;;  %v10082_v51 = vpop.f32.mrb[41].mxu0  ;;  %v7120_v34 = vld [vmem:[%s11578_s2 + $0x1d0] sm:$0xff] }
 0x327   : > { %12032 = vst [vmem:[#allocation10_spill] sm:$0xff] %v10082_v51  ;;  %3549 = vmatprep.mubr.f32.mxu0 %v11996_v42 }
 0x328   : > { %2850 = vmatmul.mubr.f32.gmra.mrb[22].mxu1 %v11958_v31  ;;  %v4982_v31 = vsel %vm197_vm0, %v7118_v46, 0  ;;  %v4985_v46 = vsel %vm197_vm0, %v7119_v8, 0 }
 0x329   : > { %2855 = vmatprep.mubr.f32.mxu1 %v11996_v42  ;;  %v10087_v49 = vpop.f32.mrb[42].mxu0  ;;  %v10126_v23 = vand.u32 4294901760, %v4985_v46 }
 0x32a   : > { %12033 = vst [vmem:[#allocation75_spill] sm:$0xff] %v10087_v49  ;;  %3551 = vmatmul.mubr.f32.gmra.mrb[72].mxu0 %v9610_v59  ;;  %v10090_v17 = vpop.f32.mrb[43].mxu0  ;;  %v10109_v59 = vand.u32 4294901760, %v4982_v31  ;;  %v7136_v49 = vld [vmem:[%s11578_s2 + $0x250] sm:$0xff] }
 0x32b   : > { %12034 = vst [vmem:[#allocation76_spill] sm:$0xff] %v10090_v17  ;;  %3556 = vmatprep.mubr.f32.mxu0 %v11996_v42 }
 0x32c   : > { %2857 = vmatmul.mubr.f32.gmra.mrb[24].mxu1 %v11959_v4 }
 0x32d   : > { %2862 = vmatprep.mubr.f32.mxu1 %v11996_v42  ;;  %v10099_v39 = vpop.f32.mrb[44].mxu0 }
 0x32e   : > { %12035 = vst [vmem:[#allocation77_spill] sm:$0xff] %v10099_v39  ;;  %3558 = vmatmul.mubr.f32.gmra.mrb[74].mxu0 %v9619_v60  ;;  %v10102_v48 = vpop.f32.mrb[45].mxu0 }
 0x32f   : > { %12036 = vst [vmem:[#allocation78_spill] sm:$0xff] %v10102_v48  ;;  %3563 = vmatprep.mubr.f32.mxu0 %v11996_v42 }
 0x330   : > { %2864 = vmatmul.mubr.f32.gmra.mrb[26].mxu1 %v11960_v30  ;;  %v10124_v30 = vsub.f32 %v4982_v31, %v10109_v59  ;;  %v10142_v31 = vsub.f32 %v4985_v46, %v10126_v23 }
 0x331   : > { %2869 = vmatprep.mubr.f32.mxu1 %v11996_v42  ;;  %v10112_v4 = vpop.f32.mrb[46].mxu0 }
 0x332   : > { %12037 = vst [vmem:[#allocation79_spill] sm:$0xff] %v10112_v4  ;;  %3565 = vmatmul.mubr.f32.gmra.mrb[76].mxu0 %v9639_v24  ;;  %v10116_v60 = vpop.f32.mrb[47].mxu0  ;;  %12039 = vst [vmem:[#allocation81_spill] sm:$0xff] %v10124_v30  ;;  %v4988_v24 = vsel %vm197_vm0, %v7120_v34, 0  ;;  %v4991_v34 = vsel %vm197_vm0, %v7121_v37, 0  ;;  %v11736_v57 = vand.u32 4294901760, %v10142_v31 }
 0x333   : > { %12038 = vst [vmem:[#allocation80_spill] sm:$0xff] %v10116_v60  ;;  %3570 = vmatprep.mubr.f32.mxu0 %v11996_v42  ;;  %12042 = vst [vmem:[#allocation84_spill] sm:$0xff] %v10142_v31  ;;  %v10144_v41 = vand.u32 4294901760, %v4988_v24  ;;  %v10157_v46 = vand.u32 4294901760, %v4991_v34 }
 0x334   : > { %2871 = vmatmul.mubr.f32.gmra.mrb[28].mxu1 %v11961_v1  ;;  %v11731_v1 = vand.u32 4294901760, %v10124_v30 }
 0x335   : > { %2876 = vmatprep.mubr.f32.mxu1 %v11996_v42  ;;  %v10129_v8 = vpop.f32.mrb[48].mxu0 }
 0x336   : > { %12040 = vst [vmem:[#allocation82_spill] sm:$0xff] %v10129_v8  ;;  %3572 = vmatmul.mubr.f32.gmra.mrb[78].mxu0 %v9660_v20  ;;  %v10136_v38 = vpop.f32.mrb[49].mxu0  ;;  %v7122_v20 = vld [vmem:[%s11578_s2 + $0x1e0] sm:$0xff]  ;;  %v5137_v37 = vsub.f32 %v10124_v30, %v11731_v1  ;;  %v10179_v1 = vsub.f32 %v4991_v34, %v10157_v46  ;;  %v12056_v8 = vld [vmem:[#allocation19_spill] sm:$0xff] }
 0x337   : > { %12041 = vst [vmem:[#allocation83_spill] sm:$0xff] %v10136_v38  ;;  %3577 = vmatprep.mubr.f32.mxu0 %v11996_v42  ;;  %v4994_v38 = vsel %vm197_vm0, %v7122_v20, 0 }
 0x338   : > { %2878 = vmatmul.mubr.f32.gmra.mrb[30].mxu1 %v11962_v50  ;;  %12048 = vst [vmem:[#allocation90_spill] sm:$0xff] %v10179_v1  ;;  %v5138_v20 = vand.u32 4294901760, %v5137_v37  ;;  %v12055_v37 = vld [vmem:[#allocation24_spill] sm:$0xff] }
 0x339   : > { %2883 = vmatprep.mubr.f32.mxu1 %v11996_v42  ;;  %v10148_v61 = vpop.f32.mrb[50].mxu0 }
 0x33a   : > { %12043 = vst [vmem:[#allocation85_spill] sm:$0xff] %v10148_v61  ;;  %3579 = vmatmul.mubr.f32.gmra.mrb[80].mxu0 %v9680_v2  ;;  %v10154_v50 = vpop.f32.mrb[51].mxu0  ;;  %v10165_v61 = vsub.f32 %v4988_v24, %v10144_v41  ;;  %v10181_v24 = vand.u32 4294901760, %v4994_v38 }
 0x33b   : > { %12044 = vst [vmem:[#allocation86_spill] sm:$0xff] %v10154_v50  ;;  %3584 = vmatprep.mubr.f32.mxu0 %v11996_v42 }
 0x33c   : > { %2885 = vmatmul.mubr.f32.gmra.mrb[32].mxu1 %v9301_v43  ;;  %12045 = vst [vmem:[#allocation87_spill] sm:$0xff] %v10165_v61  ;;  %v7123_v43 = vld [vmem:[%s11578_s2 + $0x1e8] sm:$0xff] }
 0x33d   : > { %2890 = vmatprep.mubr.f32.mxu1 %v11996_v42  ;;  %v10169_v2 = vpop.f32.mrb[52].mxu0 }
 0x33e   : > { %12046 = vst [vmem:[#allocation88_spill] sm:$0xff] %v10169_v2  ;;  %3586 = vmatmul.mubr.f32.gmra.mrb[82].mxu0 %v9696_v22  ;;  %v10172_v50 = vpop.f32.mrb[53].mxu0  ;;  %v5148_v22 = vsub.f32 %v10142_v31, %v11736_v57  ;;  %v4997_v2 = vsel %vm197_vm0, %v7123_v43, 0  ;;  %v10201_v57 = vsub.f32 %v4994_v38, %v10181_v24  ;;  %v12052_v31 = vand.u32 4294901760, %v10165_v61 }
 0x33f   : > { %12047 = vst [vmem:[#allocation89_spill] sm:$0xff] %v10172_v50  ;;  %3591 = vmatprep.mubr.f32.mxu0 %v11996_v42  ;;  %v12057_v38 = vpack.c.bf16 %v12055_v37, %v12056_v8 }
 0x340   : > { %2892 = vmatmul.mubr.f32.gmra.mrb[34].mxu1 %v9314_v53  ;;  %v7124_v53 = vld [vmem:[%s11578_s2 + $0x1f0] sm:$0xff]  ;;  %12051 = vst [vmem:[#allocation93_spill] sm:$0xff] %v10201_v57  ;;  %v5149_v30 = vand.u32 4294901760, %v5148_v22  ;;  %v5159_v43 = vsub.f32 %v10165_v61, %v12052_v31  ;;  %v7125_v31 = vld [vmem:[%s11578_s2 + $0x1f8] sm:$0xff] }
 0x341   : > { %5133 = vmatprep.mubr.f32.mxu1 %v11996_v42  ;;  %v10189_v50 = vpop.f32.mrb[54].mxu0  ;;  %v5000_v19 = vsel %vm197_vm0, %v7124_v53, 0  ;;  %v11751_v53 = vand.u32 4294901760, %v10201_v57 }
 0x342   : > { %12049 = vst [vmem:[#allocation91_spill] sm:$0xff] %v10189_v50  ;;  %3593 = vmatmul.mubr.f32.gmra.mrb[84].mxu0 %v9705_v44  ;;  %v10193_v34 = vpop.f32.mrb[55].mxu0  ;;  %v10206_v44 = vand.u32 4294901760, %v4997_v2  ;;  %v5160_v61 = vand.u32 4294901760, %v5159_v43  ;;  %v10230_v37 = vand.u32 4294901760, %v5000_v19 }
 0x343   : > { %12050 = vst [vmem:[#allocation92_spill] sm:$0xff] %v10193_v34  ;;  %3598 = vmatprep.mubr.f32.mxu0 %v11996_v42  ;;  %v12053_v34 = vld [vmem:[#allocation28_spill] sm:$0xff] }
 0x344   : > { %5139 = vmatmul.mubr.f32.vlgmr.msra.gmra.mrb[56].mxu1 %v5138_v20  ;;  %v12059_v20 = vand.u32 4294901760, %v10179_v1  ;;  %v10228_v8 = vsub.f32 %v4997_v2, %v10206_v44 }
 0x345   : > { %7284 = vmatpush1.bf16.msra.mxu1 %v12053_v34  ;;  %5144 = vmatprep.mubr.f32.mxu1 %v11996_v42  ;;  %v10210_v50 = vpop.f32.mrb[56].mxu0 }
 0x346   : > { %12054 = vst [vmem:[#allocation28_spill] sm:$0xff] %v10210_v50  ;;  %7286 = vmatprep.subr.bf16.mxu1 %v12057_v38  ;;  %3600 = vmatmul.mubr.f32.gmra.mrb[86].mxu0 %v9724_v40  ;;  %v10217_v22 = vpop.f32.mrb[57].mxu0  ;;  %v5170_v34 = vsub.f32 %v10179_v1, %v12059_v20  ;;  %12060 = vst [vmem:[#allocation19_spill] sm:$0xff] %v10228_v8  ;;  %v5003_v40 = vsel %vm197_vm0, %v7125_v31, 0  ;;  %v11756_v43 = vand.u32 4294901760, %v10228_v8 }
 0x347   : > { %12058 = vst [vmem:[#allocation24_spill] sm:$0xff] %v10217_v22  ;;  %3605 = vmatprep.mubr.f32.mxu0 %v11996_v42  ;;  %v7126_v22 = vld [vmem:[%s11578_s2 + $0x200] sm:$0xff]  ;;  %v10248_v31 = vsub.f32 %v5000_v19, %v10230_v37  ;;  %v10250_v1 = vand.u32 4294901760, %v5003_v40 }
 0x348   : > { %5150 = vmatmul.mubr.f32.gmra.mrb[58].mxu1 %v5149_v30  ;;  %v5171_v2 = vand.u32 4294901760, %v5170_v34  ;;  %v5181_v30 = vsub.f32 %v10201_v57, %v11751_v53  ;;  %v7127_v34 = vld [vmem:[%s11578_s2 + $0x208] sm:$0xff] }
 0x349   : > { %5155 = vmatprep.mubr.f32.mxu1 %v11996_v42  ;;  %v10233_v38 = vpop.f32.mrb[58].mxu0  ;;  %12063 = vst [vmem:[#allocation96_spill] sm:$0xff] %v10248_v31  ;;  %v11761_v57 = vand.u32 4294901760, %v10248_v31 }
 0x34a   : > { %12061 = vst [vmem:[#allocation94_spill] sm:$0xff] %v10233_v38  ;;  %3607 = vmatmul.mubr.f32.gmra.mrb[88].mxu0 %v9744_v10  ;;  %v10240_v20 = vpop.f32.mrb[59].mxu0  ;;  %v5006_v38 = vsel %vm197_vm0, %v7126_v22, 0  ;;  %v5182_v19 = vand.u32 4294901760, %v5181_v30  ;;  %v5192_v22 = vsub.f32 %v10228_v8, %v11756_v43 }
 0x34b   : > { %12062 = vst [vmem:[#allocation95_spill] sm:$0xff] %v10240_v20  ;;  %3612 = vmatprep.mubr.f32.mxu0 %v11996_v42  ;;  %v10263_v53 = vand.u32 4294901760, %v5006_v38  ;;  %v5009_v20 = vsel %vm197_vm0, %v7127_v34, 0  ;;  %v5203_v8 = vsub.f32 %v10248_v31, %v11761_v57 }
 0x34c   : > { %5161 = vmatmul.mubr.f32.gmra.mrb[60].mxu1 %v5160_v61  ;;  %v5193_v34 = vand.u32 4294901760, %v5192_v22 }
 0x34d   : > { %5166 = vmatprep.mubr.f32.mxu1 %v11996_v42  ;;  %v10254_v10 = vpop.f32.mrb[60].mxu0  ;;  %v10284_v43 = vsub.f32 %v5006_v38, %v10263_v53 }
 0x34e   : > { %12064 = vst [vmem:[#allocation97_spill] sm:$0xff] %v10254_v10  ;;  %3614 = vmatmul.mubr.f32.gmra.mrb[90].mxu0 %v9760_v36  ;;  %v10260_v61 = vpop.f32.mrb[61].mxu0  ;;  %v10270_v10 = vsub.f32 %v5003_v40, %v10250_v1  ;;  %v10286_v40 = vand.u32 4294901760, %v5009_v20 }
 0x34f   : > { %12065 = vst [vmem:[#allocation98_spill] sm:$0xff] %v10260_v61  ;;  %3619 = vmatprep.mubr.f32.mxu0 %v11996_v42  ;;  %12069 = vst [vmem:[#allocation102_spill] sm:$0xff] %v10284_v43  ;;  %v7131_v61 = vld [vmem:[%s11578_s2 + $0x228] sm:$0xff] }
 0x350   : > { %5172 = vmatmul.mubr.f32.gmra.mrb[62].mxu1 %v5171_v2  ;;  %12066 = vst [vmem:[#allocation99_spill] sm:$0xff] %v10270_v10  ;;  %v7128_v2 = vld [vmem:[%s11578_s2 + $0x210] sm:$0xff]  ;;  %v10305_v57 = vsub.f32 %v5009_v20, %v10286_v40  ;;  %v12073_v31 = vand.u32 4294901760, %v10270_v10  ;;  %v12077_v20 = vand.u32 4294901760, %v10284_v43  ;;  %v5021_v50 = vsel %vm197_vm0, %v7131_v61, 0 }
 0x351   : > { %5177 = vmatprep.mubr.f32.mxu1 %v11996_v42  ;;  %v10274_v36 = vpop.f32.mrb[62].mxu0 }
 0x352   : > { %12067 = vst [vmem:[#allocation100_spill] sm:$0xff] %v10274_v36  ;;  %3621 = vmatmul.mubr.f32.gmra.mrb[92].mxu0 %v9776_v45  ;;  %v10277_v30 = vpop.f32.mrb[63].mxu0  ;;  %v5012_v36 = vsel %vm197_vm0, %v7128_v2, 0  ;;  %12072 = vst [vmem:[#allocation105_spill] sm:$0xff] %v10305_v57  ;;  %v5204_v45 = vand.u32 4294901760, %v5203_v8  ;;  %v5214_v2 = vsub.f32 %v10270_v10, %v12073_v31  ;;  %v7130_v8 = vld [vmem:[%s11578_s2 + $0x220] sm:$0xff]  ;;  %v5225_v31 = vsub.f32 %v10284_v43, %v12077_v20 }
 0x353   : > { %12068 = vst [vmem:[#allocation101_spill] sm:$0xff] %v10277_v30  ;;  %3626 = vmatprep.mubr.f32.mxu0 %v11996_v42 }
 0x354   : > { %5183 = vmatmul.mubr.f32.gmra.mrb[64].mxu1 %v5182_v19  ;;  %v7129_v19 = vld [vmem:[%s11578_s2 + $0x218] sm:$0xff]  ;;  %v5215_v10 = vand.u32 4294901760, %v5214_v2 }
 0x355   : > { %5188 = vmatprep.mubr.f32.mxu1 %v11996_v42  ;;  %v10293_v30 = vpop.f32.mrb[64].mxu0 }
 0x356   : > { %12070 = vst [vmem:[#allocation103_spill] sm:$0xff] %v10293_v30  ;;  %3628 = vmatmul.mubr.f32.gmra.mrb[94].mxu0 %v9785_v14  ;;  %v10297_v38 = vpop.f32.mrb[65].mxu0  ;;  %v10310_v14 = vand.u32 4294901760, %v5012_v36  ;;  %v5015_v30 = vsel %vm197_vm0, %v7129_v19, 0 }
 0x357   : > { %12071 = vst [vmem:[#allocation104_spill] sm:$0xff] %v10297_v38  ;;  %3633 = vmatprep.mubr.f32.mxu0 %v11996_v42 }
 0x358   : > { %5194 = vmatmul.mubr.f32.gmra.mrb[66].mxu1 %v5193_v34  ;;  %12074 = vst [vmem:[#allocation106_spill] sm:$0xff] %v10310_v14  ;;  %v11774_v34 = vand.u32 4294901760, %v10305_v57  ;;  %v10328_v19 = vsub.f32 %v5012_v36, %v10310_v14  ;;  %v5226_v36 = vand.u32 4294901760, %v5225_v31  ;;  %v7132_v31 = vld [vmem:[%s11578_s2 + $0x230] sm:$0xff] }
 0x359   : > { %v10312_v38 = vpop.f32.mrb[66].mxu0  ;;  %5199 = vmatprep.mubr.f32.mxu1 %v11996_v42  ;;  %v5024_v4 = vsel %vm197_vm0, %v7132_v31, 0 }
 0x35a   : > { %12075 = vst [vmem:[#allocation107_spill] sm:$0xff] %v10312_v38  ;;  %3635 = vmatmul.mubr.f32.gmra.mrb[96].mxu0 %v9811_v3  ;;  %v10317_v22 = vpop.f32.mrb[67].mxu0  ;;  %12078 = vst [vmem:[#allocation109_spill] sm:$0xff] %v10328_v19  ;;  %v10330_v3 = vand.u32 4294901760, %v5015_v30  ;;  %v5018_v38 = vsel %vm197_vm0, %v7130_v8, 0  ;;  %v11779_v2 = vand.u32 4294901760, %v10328_v19 }
 0x35b   : > { %12076 = vst [vmem:[#allocation108_spill] sm:$0xff] %v10317_v22  ;;  %3640 = vmatprep.mubr.f32.mxu0 %v11996_v42  ;;  %v10350_v43 = vand.u32 4294901760, %v5018_v38 }
 0x35c   : > { %5205 = vmatmul.mubr.f32.gmra.mrb[68].mxu1 %v5204_v45  ;;  %12079 = vst [vmem:[#allocation110_spill] sm:$0xff] %v10330_v3  ;;  %v5236_v45 = vsub.f32 %v10305_v57, %v11774_v34  ;;  %v10348_v8 = vsub.f32 %v5015_v30, %v10330_v3  ;;  %v10363_v30 = vand.u32 4294901760, %v5021_v50  ;;  %v5247_v61 = vsub.f32 %v10328_v19, %v11779_v2 }
 0x35d   : > { %v10332_v22 = vpop.f32.mrb[12].mxu0  ;;  %5210 = vmatprep.mubr.f32.mxu1 %v11996_v42  ;;  %12081 = vst [vmem:[#allocation112_spill] sm:$0xff] %v10350_v43  ;;  %v10370_v57 = vsub.f32 %v5018_v38, %v10350_v43  ;;  %v10386_v38 = vand.u32 4294901760, %v5024_v4 }
 0x35e   : > { %v10339_v20 = vpop.f32.mrb[13].mxu0  ;;  %3642 = vmatmul.mubr.f32.gmra.mrb[98].mxu0 %v9832_v16  ;;  %12080 = vst [vmem:[#allocation111_spill] sm:$0xff] %v10348_v8  ;;  %12082 = vst [vmem:[#allocation113_spill] sm:$0xff] %v10363_v30  ;;  %v11786_v34 = vand.u32 4294901760, %v10348_v8  ;;  %v5248_v31 = vand.u32 4294901760, %v5247_v61 }
 0x35f   : > { %3647 = vmatprep.mubr.f32.mxu0 %v11996_v42  ;;  %12083 = vst [vmem:[#allocation114_spill] sm:$0xff] %v10370_v57  ;;  %12085 = vst [vmem:[#allocation116_spill] sm:$0xff] %v10386_v38  ;;  %v11793_v19 = vand.u32 4294901760, %v10370_v57  ;;  %v10405_v61 = vsub.f32 %v5024_v4, %v10386_v38  ;;  %v7135_v4 = vld [vmem:[%s11578_s2 + $0x248] sm:$0xff] }
 0x360   : > { %5216 = vmatmul.mubr.f32.gmra.mrb[70].mxu1 %v5215_v10  ;;  %v5237_v10 = vand.u32 4294901760, %v5236_v45  ;;  %v10384_v45 = vsub.f32 %v5021_v50, %v10363_v30  ;;  %v5258_v2 = vsub.f32 %v10348_v8, %v11786_v34  ;;  %v7134_v50 = vld [vmem:[%s11578_s2 + $0x240] sm:$0xff]  ;;  %v5033_v38 = vsel %vm197_vm0, %v7135_v4, 0 }
 0x361   : > { %v10353_v60 = vpop.f32.mrb[14].mxu0  ;;  %5221 = vmatprep.mubr.f32.mxu1 %v11996_v42  ;;  %12086 = vst [vmem:[#allocation117_spill] sm:$0xff] %v10405_v61  ;;  %v5030_v30 = vsel %vm197_vm0, %v7134_v50, 0 }
 0x362   : > { %v10359_v16 = vpop.f32.mrb[15].mxu0  ;;  %3649 = vmatmul.mubr.f32.gmra.mrb[100].mxu0 %v9848_v58  ;;  %12084 = vst [vmem:[#allocation115_spill] sm:$0xff] %v10384_v45  ;;  %v5259_v34 = vand.u32 4294901760, %v5258_v2 }
 0x363   : > { %3654 = vmatprep.mubr.f32.mxu0 %v11996_v42 }
 0x364   : > { %5227 = vmatmul.mubr.f32.gmra.mrb[72].mxu1 %v5226_v36  ;;  %v7133_v36 = vld [vmem:[%s11578_s2 + $0x238] sm:$0xff] }
 0x365   : > { %v10373_v48 = vpop.f32.mrb[16].mxu0  ;;  %5232 = vmatprep.mubr.f32.mxu1 %v11996_v42  ;;  %v5027_v39 = vsel %vm197_vm0, %v7133_v36, 0  ;;  %v5269_v36 = vsub.f32 %v10370_v57, %v11793_v19  ;;  %v10430_v57 = vand.u32 4294901760, %v5030_v30 }
 0x366   : > { %v10376_v58 = vpop.f32.mrb[17].mxu0  ;;  %3656 = vmatmul.mubr.f32.gmra.mrb[102].mxu0 %v9864_v56  ;;  %v10410_v8 = vand.u32 4294901760, %v5027_v39 }
 0x367   : > { %3661 = vmatprep.mubr.f32.mxu0 %v11996_v42  ;;  %v5270_v19 = vand.u32 4294901760, %v5269_v36  ;;  %12089 = vst [vmem:[#allocation120_spill] sm:$0xff] %v10430_v57  ;;  %v10448_v4 = vsub.f32 %v5030_v30, %v10430_v57 }
 0x368   : > { %5238 = vmatmul.mubr.f32.gmra.mrb[74].mxu1 %v5237_v10  ;;  %v11800_v10 = vand.u32 4294901760, %v10384_v45  ;;  %12087 = vst [vmem:[#allocation118_spill] sm:$0xff] %v10410_v8  ;;  %v10428_v50 = vsub.f32 %v5027_v39, %v10410_v8  ;;  %v5036_v8 = vsel %vm197_vm0, %v7136_v49, 0 }
 0x369   : > { %v10392_v56 = vpop.f32.mrb[18].mxu0  ;;  %5243 = vmatprep.mubr.f32.mxu1 %v11996_v42  ;;  %12090 = vst [vmem:[#allocation121_spill] sm:$0xff] %v10448_v4  ;;  %v10463_v30 = vand.u32 4294901760, %v5036_v8 }
 0x36a   : > { %v10396_v43 = vpop.f32.mrb[19].mxu0  ;;  %3663 = vmatmul.mubr.f32.gmra.mrb[104].mxu0 %v9873_v15  ;;  %v5280_v2 = vsub.f32 %v10384_v45, %v11800_v10  ;;  %12088 = vst [vmem:[#allocation119_spill] sm:$0xff] %v10428_v50  ;;  %v11816_v36 = vand.u32 4294901760, %v10428_v50  ;;  %v10450_v45 = vand.u32 4294901760, %v5033_v38 }
 0x36b   : > { %3668 = vmatprep.mubr.f32.mxu0 %v11996_v42  ;;  %12092 = vst [vmem:[#allocation123_spill] sm:$0xff] %v10463_v30 }
 0x36c   : > { %5249 = vmatmul.mubr.f32.gmra.mrb[76].mxu1 %v5248_v31  ;;  %v11809_v31 = vand.u32 4294901760, %v10405_v61  ;;  %v5281_v39 = vand.u32 4294901760, %v5280_v2  ;;  %12091 = vst [vmem:[#allocation122_spill] sm:$0xff] %v10450_v45  ;;  %v7137_v2 = vld [vmem:[%s11578_s2 + $0x258] sm:$0xff]  ;;  %v5302_v49 = vsub.f32 %v10428_v50, %v11816_v36 }
 0x36d   : > { %v10412_v15 = vpop.f32.mrb[20].mxu0  ;;  %5254 = vmatprep.mubr.f32.mxu1 %v11996_v42  ;;  %v5039_v57 = vsel %vm197_vm0, %v7137_v2, 0 }
 0x36e   : > { %v10416_v17 = vpop.f32.mrb[21].mxu0  ;;  %3670 = vmatmul.mubr.f32.gmra.mrb[106].mxu0 %v9892_v25  ;;  %v5303_v2 = vand.u32 4294901760, %v5302_v49 }
 0x36f   : > { %3675 = vmatprep.mubr.f32.mxu0 %v11996_v42 }
 0x370   : > { %5260 = vmatmul.mubr.f32.gmra.mrb[78].mxu1 %v5259_v34  ;;  %v5291_v34 = vsub.f32 %v10405_v61, %v11809_v31  ;;  %v11823_v31 = vand.u32 4294901760, %v10448_v4  ;;  %v10470_v61 = vsub.f32 %v5033_v38, %v10450_v45  ;;  %v10486_v38 = vand.u32 4294901760, %v5039_v57 }
 0x371   : > { %v10432_v25 = vpop.f32.mrb[22].mxu0  ;;  %5265 = vmatprep.mubr.f32.mxu1 %v11996_v42 }
 0x372   : > { %v10439_v10 = vpop.f32.mrb[23].mxu0  ;;  %3677 = vmatmul.mubr.f32.gmra.mrb[108].mxu0 %v9912_v7  ;;  %12093 = vst [vmem:[#allocation124_spill] sm:$0xff] %v10470_v61  ;;  %12095 = vst [vmem:[#allocation126_spill] sm:$0xff] %v10486_v38  ;;  %v5313_v36 = vsub.f32 %v10448_v4, %v11823_v31  ;;  %v11832_v50 = vand.u32 4294901760, %v10470_v61  ;;  %v10505_v49 = vsub.f32 %v5039_v57, %v10486_v38  ;;  %v7140_v57 = vld [vmem:[%s11578_s2 + $0x270] sm:$0xff]  ;;  %v7141_v38 = vld [vmem:[%s11578_s2 + $0x278] sm:$0xff] }
 0x373   : > { %3682 = vmatprep.mubr.f32.mxu0 %v11996_v42 }
 0x374   : > { %5271 = vmatmul.mubr.f32.gmra.mrb[80].mxu1 %v5270_v19  ;;  %v5292_v19 = vand.u32 4294901760, %v5291_v34  ;;  %v10484_v34 = vsub.f32 %v5036_v8, %v10463_v30  ;;  %v7139_v8 = vld [vmem:[%s11578_s2 + $0x268] sm:$0xff]  ;;  %12096 = vst [vmem:[#allocation127_spill] sm:$0xff] %v10505_v49  ;;  %v5314_v31 = vand.u32 4294901760, %v5313_v36 }
 0x375   : > { %v10453_v3 = vpop.f32.mrb[24].mxu0  ;;  %5276 = vmatprep.mubr.f32.mxu1 %v11996_v42  ;;  %v5045_v30 = vsel %vm197_vm0, %v7139_v8, 0 }
 0x376   : > { %v10459_v7 = vpop.f32.mrb[25].mxu0  ;;  %3684 = vmatmul.mubr.f32.gmra.mrb[110].mxu0 %v9928_v12  ;;  %12094 = vst [vmem:[#allocation125_spill] sm:$0xff] %v10484_v34 }
 0x377   : > { %3689 = vmatprep.mubr.f32.mxu0 %v11996_v42 }
 0x378   : > { %5282 = vmatmul.mubr.f32.gmra.mrb[82].mxu1 %v5281_v39  ;;  %v7138_v39 = vld [vmem:[%s11578_s2 + $0x260] sm:$0xff] }
 0x379   : > { %v10473_v51 = vpop.f32.mrb[26].mxu0  ;;  %5287 = vmatprep.mubr.f32.mxu1 %v11996_v42  ;;  %v5042_v45 = vsel %vm197_vm0, %v7138_v39, 0  ;;  %v5324_v39 = vsub.f32 %v10470_v61, %v11832_v50  ;;  %v10530_v61 = vand.u32 4294901760, %v5045_v30 }
 0x37a   : > { %v10476_v12 = vpop.f32.mrb[27].mxu0  ;;  %3691 = vmatmul.mubr.f32.gmra.mrb[112].mxu0 %v9944_v52  ;;  %v10510_v4 = vand.u32 4294901760, %v5042_v45 }
 0x37b   : > { %3696 = vmatprep.mubr.f32.mxu0 %v11996_v42  ;;  %v5325_v50 = vand.u32 4294901760, %v5324_v39  ;;  %v10544_v39 = vsub.f32 %v5045_v30, %v10530_v61 }
 0x37c   : > { %5293 = vmatmul.mubr.f32.gmra.mrb[84].mxu1 %v5292_v19  ;;  %v11839_v19 = vand.u32 4294901760, %v10484_v34  ;;  %v10528_v8 = vsub.f32 %v5042_v45, %v10510_v4 }
 0x37d   : > { %v10492_v52 = vpop.f32.mrb[28].mxu0  ;;  %5298 = vmatprep.mubr.f32.mxu1 %v11996_v42  ;;  %12098 = vst [vmem:[#allocation129_spill] sm:$0xff] %v10544_v39 }
 0x37e   : > { %v10496_v26 = vpop.f32.mrb[29].mxu0  ;;  %3698 = vmatmul.mubr.f32.gmra.mrb[114].mxu0 %v9953_v63  ;;  %v5335_v36 = vsub.f32 %v10484_v34, %v11839_v19  ;;  %12097 = vst [vmem:[#allocation128_spill] sm:$0xff] %v10528_v8  ;;  %v5051_v34 = vsel %vm197_vm0, %v7141_v38, 0  ;;  %v11852_v38 = vand.u32 4294901760, %v10544_v39 }
 0x37f   : > { %3703 = vmatprep.mubr.f32.mxu0 %v11996_v42 }
 0x380   : > { %5304 = vmatmul.mubr.f32.gmra.mrb[86].mxu1 %v5303_v2  ;;  %v11842_v2 = vand.u32 4294901760, %v10505_v49  ;;  %v5336_v19 = vand.u32 4294901760, %v5335_v36  ;;  %v7142_v36 = vld [vmem:[%s11578_s2 + $0x280] sm:$0xff] }
 0x381   : > { %v10512_v63 = vpop.f32.mrb[30].mxu0  ;;  %5309 = vmatprep.mubr.f32.mxu1 %v11996_v42 }
 0x382   : > { %v10516_v14 = vpop.f32.mrb[31].mxu0  ;;  %3705 = vmatmul.mubr.f32.gmra.mrb[116].mxu0 %v9976_v35  ;;  %v5048_v35 = vsel %vm197_vm0, %v7140_v57, 0  ;;  %v5346_v45 = vsub.f32 %v10505_v49, %v11842_v2 }
 0x383   : > { %3710 = vmatprep.mubr.f32.mxu0 %v11996_v42  ;;  %v10546_v57 = vand.u32 4294901760, %v5048_v35 }
 0x384   : > { %5315 = vmatmul.mubr.f32.gmra.mrb[88].mxu1 %v5314_v31  ;;  %v11847_v31 = vand.u32 4294901760, %v10528_v8  ;;  %v5347_v2 = vand.u32 4294901760, %v5346_v45 }
 0x385   : > { %5320 = vmatprep.mubr.f32.mxu1 %v11996_v42  ;;  %12099 = vst [vmem:[#allocation130_spill] sm:$0xff] %v10546_v57 }
 0x386   : > { %3712 = vmatmul.mubr.f32.gmra.mrb[118].mxu0 %v9992_v32  ;;  %v5357_v30 = vsub.f32 %v10528_v8, %v11847_v31  ;;  %v10562_v32 = vsub.f32 %v5048_v35, %v10546_v57  ;;  %v5368_v35 = vsub.f32 %v10544_v39, %v11852_v38 }
 0x387   : > { %3717 = vmatprep.mubr.f32.mxu0 %v11996_v42 }
 0x388   : > { %5326 = vmatmul.mubr.f32.gmra.mrb[90].mxu1 %v5325_v50  ;;  %v10555_v50 = vand.u32 4294901760, %v5051_v34  ;;  %12101 = vst [vmem:[#allocation132_spill] sm:$0xff] %v10562_v32  ;;  %v5358_v31 = vand.u32 4294901760, %v5357_v30  ;;  %v11858_v8 = vand.u32 4294901760, %v10562_v32  ;;  %v12104_v30 = vld [vmem:[#allocation21_spill] sm:$0xff]  ;;  %v5369_v38 = vand.u32 4294901760, %v5368_v35 }
 0x389   : > { %5331 = vmatprep.mubr.f32.mxu1 %v11996_v42 }
 0x38a   : > { %3719 = vmatmul.mubr.f32.gmra.mrb[120].mxu0 %v10008_v33  ;;  %12100 = vst [vmem:[#allocation131_spill] sm:$0xff] %v10555_v50  ;;  %v5054_v33 = vsel %vm197_vm0, %v7142_v36, 0  ;;  %v10572_v45 = vsub.f32 %v5051_v34, %v10555_v50  ;;  %v7144_v34 = vld [vmem:[%s11578_s2 + $0x290] sm:$0xff] }
 0x38b   : > { %3724 = vmatprep.mubr.f32.mxu0 %v11996_v42  ;;  %v10578_v36 = vand.u32 4294901760, %v5054_v33 }
 0x38c   : > { %5337 = vmatmul.mubr.f32.gmra.mrb[92].mxu1 %v5336_v19  ;;  %v7143_v19 = vld [vmem:[%s11578_s2 + $0x288] sm:$0xff]  ;;  %12102 = vst [vmem:[#allocation133_spill] sm:$0xff] %v10572_v45 }
 0x38d   : > { %5342 = vmatprep.mubr.f32.mxu1 %v11996_v42  ;;  %12103 = vst [vmem:[#allocation134_spill] sm:$0xff] %v10578_v36  ;;  %v10594_v39 = vsub.f32 %v5054_v33, %v10578_v36  ;;  %v12109_v36 = vld [vmem:[#allocation33_spill] sm:$0xff] }
 0x38e   : > { %3726 = vmatmul.mubr.f32.gmra.mrb[122].mxu0 %v10021_v21  ;;  %v5057_v21 = vsel %vm197_vm0, %v7143_v19, 0  ;;  %v5379_v19 = vsub.f32 %v10562_v32, %v11858_v8 }
 0x38f   : > { %3804 = vmatprep.mubr.f32.mxu0 %v11996_v42  ;;  %12105 = vst [vmem:[#allocation21_spill] sm:$0xff] %v10594_v39  ;;  %v10596_v49 = vand.u32 4294901760, %v5057_v21 }
 0x390   : > { %5348 = vmatmul.mubr.f32.gmra.mrb[94].mxu1 %v5347_v2  ;;  %v11865_v2 = vand.u32 4294901760, %v10572_v45  ;;  %v5380_v33 = vand.u32 4294901760, %v5379_v19 }
 0x391   : > { %5353 = vmatprep.mubr.f32.mxu1 %v11996_v42  ;;  %12106 = vst [vmem:[#allocation135_spill] sm:$0xff] %v10596_v49  ;;  %v10610_v8 = vsub.f32 %v5057_v21, %v10596_v49 }
 0x392   : > { %3807 = vmatmul.mubr.f32.vlgmr.msra.gmra.mrb[68].mxu0 %v9594_v11  ;;  %v5390_v35 = vsub.f32 %v10572_v45, %v11865_v2  ;;  %v7305_v45 = vadd.f32 0.06550218, %v10339_v20  ;;  %v12115_v20 = vld [vmem:[#allocation14_spill] sm:$0xff] }
 0x393   : > { %7268 = vmatpush1.bf16.msra.mxu0 %v11963_v28  ;;  %3812 = vmatprep.mubr.f32.mxu0 %v11996_v42  ;;  %v5060_v28 = vsel %vm197_vm0, %v7144_v34, 0  ;;  %12107 = vst [vmem:[#allocation136_spill] sm:$0xff] %v10610_v8  ;;  %v11869_v21 = vand.u32 4294901760, %v10610_v8 }
 0x394   : > { %7270 = vmatprep.subr.bf16.mxu0 %v12104_v30  ;;  %5359 = vmatmul.mubr.f32.gmra.mrb[96].mxu1 %v5358_v31  ;;  %v7145_v31 = vld [vmem:[%s11578_s2 + $0x298] sm:$0xff]  ;;  %v11866_v30 = vand.u32 4294901760, %v10594_v39  ;;  %v10612_v34 = vand.u32 4294901760, %v5060_v28  ;;  %v5391_v50 = vand.u32 4294901760, %v5390_v35 }
 0x395   : > { %5364 = vmatprep.mubr.f32.mxu1 %v11996_v42  ;;  %v5063_v32 = vsel %vm197_vm0, %v7145_v31, 0  ;;  %v12112_v31 = vld [vmem:[#allocation34_spill] sm:$0xff] }
 0x396   : > { %3815 = vmatmul.mubr.f32.gmra.mrb[70].mxu0 %v9608_v54  ;;  %12108 = vst [vmem:[#allocation137_spill] sm:$0xff] %v10612_v34  ;;  %v10623_v19 = vsub.f32 %v5060_v28, %v10612_v34  ;;  %v10625_v2 = vand.u32 4294901760, %v5063_v32 }
 0x397   : > { %3820 = vmatprep.mubr.f32.mxu0 %v11996_v42 }
 0x398   : > { %5370 = vmatmul.mubr.f32.gmra.mrb[98].mxu1 %v5369_v38  ;;  %v5401_v38 = vsub.f32 %v10594_v39, %v11866_v30  ;;  %12110 = vst [vmem:[#allocation33_spill] sm:$0xff] %v10623_v19  ;;  %12111 = vst [vmem:[#allocation138_spill] sm:$0xff] %v10625_v2  ;;  %v11878_v30 = vand.u32 4294901760, %v10623_v19  ;;  %v10636_v28 = vsub.f32 %v5063_v32, %v10625_v2  ;;  %v12113_v39 = vld [vmem:[#allocation36_spill] sm:$0xff]  ;;  %v7303_v32 = vadd.f32 0.06550218, %v10332_v22 }
 0x399   : > { %5375 = vmatprep.mubr.f32.mxu1 %v11996_v42  ;;  %v7307_v22 = vadd.f32 0.06550218, %v10353_v60 }
 0x39a   : > { %3823 = vmatmul.mubr.f32.gmra.mrb[72].mxu0 %v12109_v36  ;;  %v5402_v35 = vand.u32 4294901760, %v5401_v38  ;;  %v5423_v38 = vsub.f32 %v10623_v19, %v11878_v30 }
 0x39b   : > { %3828 = vmatprep.mubr.f32.mxu0 %v11996_v42 }
 0x39c   : > { %5381 = vmatmul.mubr.f32.gmra.mrb[100].mxu1 %v5380_v33  ;;  %v5412_v33 = vsub.f32 %v10610_v8, %v11869_v21  ;;  %v11881_v21 = vand.u32 4294901760, %v10636_v28  ;;  %v12114_v8 = vld [vmem:[#allocation15_spill] sm:$0xff] }
 0x39d   : > { %5386 = vmatprep.mubr.f32.mxu1 %v11996_v42 }
 0x39e   : > { %3831 = vmatmul.mubr.f32.gmra.mrb[74].mxu0 %v12112_v31  ;;  %v5434_v30 = vsub.f32 %v10636_v28, %v11881_v21  ;;  %v12161_v21 = vld [vmem:[#allocation123_spill] sm:$0xff] }
 0x39f   : > { %3836 = vmatprep.mubr.f32.mxu0 %v11996_v42 }
 0x3a0   : > { %5392 = vmatmul.mubr.f32.gmra.mrb[102].mxu1 %v5391_v50  ;;  %v5413_v50 = vand.u32 4294901760, %v5412_v33  ;;  %v5424_v33 = vand.u32 4294901760, %v5423_v38  ;;  %v5435_v60 = vand.u32 4294901760, %v5434_v30 }
 0x3a1   : > { %5397 = vmatprep.mubr.f32.mxu1 %v11996_v42 }
 0x3a2   : > { %3839 = vmatmul.mubr.f32.gmra.mrb[76].mxu0 %v12113_v39 }
 0x3a3   : > { %3844 = vmatprep.mubr.f32.mxu0 %v11996_v42 }
 0x3a4   : > { %5403 = vmatmul.mubr.f32.gmra.mrb[104].mxu1 %v5402_v35 }
 0x3a5   : > { %5408 = vmatprep.mubr.f32.mxu1 %v11996_v42 }
 0x3a6   : > { %3847 = vmatmul.mubr.f32.gmra.mrb[78].mxu0 %v12114_v8 }
 0x3a7   : > { %v2704_v2 = vpop.f32.mrb[36].mxu1  ;;  %3852 = vmatprep.mubr.f32.mxu0 %v11996_v42 }
 0x3a8   : > { %v7304_v34 = vadd.f32 %v7303_v32, %v2704_v2  ;;  %v2706_v35 = vpop.f32.mrb[37].mxu1  ;;  %5414 = vmatmul.mubr.f32.gmra.mrb[106].mxu1 %v5413_v50  ;;  %v7309_v2 = vadd.f32 0.06550218, %v10359_v16  ;;  %v7313_v16 = vadd.f32 0.06550218, %v10376_v58 }
 0x3a9   : > { %v7306_v19 = vadd.f32 %v7305_v45, %v2706_v35  ;;  %5419 = vmatprep.mubr.f32.mxu1 %v11996_v42  ;;  %v12116_v35 = vld [vmem:[#allocation40_spill] sm:$0xff]  ;;  %v7317_v58 = vadd.f32 0.06550218, %v10396_v43  ;;  %v12121_v43 = vld [vmem:[#allocation22_spill] sm:$0xff] }
 0x3aa   : > { %2898 = vst [vmem:[%s10657_s8] sm:$0xff] %v7304_v34  ;;  %3855 = vmatmul.mubr.f32.gmra.mrb[80].mxu0 %v12115_v20  ;;  %v7311_v34 = vadd.f32 0.06550218, %v10373_v48  ;;  %v7315_v48 = vadd.f32 0.06550218, %v10392_v56  ;;  %v7319_v56 = vadd.f32 0.06550218, %v10412_v15 }
 0x3ab   : > { %2899 = vst.msk [vmem:[%s10657_s8 + $0x8] sm:$0xff] %vm953_vm1, %v7306_v19  ;;  %v2711_v50 = vpop.f32.mrb[38].mxu1  ;;  %3860 = vmatprep.mubr.f32.mxu0 %v11996_v42  ;;  %v7323_v15 = vadd.f32 0.06550218, %v10432_v25  ;;  %v7327_v25 = vadd.f32 0.06550218, %v10453_v3 }
 0x3ac   : > { %v7308_v45 = vadd.f32 %v7307_v22, %v2711_v50  ;;  %v2713_v38 = vpop.f32.mrb[39].mxu1  ;;  %5425 = vmatmul.mubr.f32.gmra.mrb[108].mxu1 %v5424_v33  ;;  %v7331_v3 = vadd.f32 0.06550218, %v10473_v51  ;;  %v7335_v51 = vadd.f32 0.06550218, %v10492_v52 }
 0x3ad   : > { %v7310_v32 = vadd.f32 %v7309_v2, %v2713_v38  ;;  %5430 = vmatprep.mubr.f32.mxu1 %v11996_v42  ;;  %v12117_v2 = vld [vmem:[#allocation41_spill] sm:$0xff]  ;;  %v7339_v52 = vadd.f32 0.06550218, %v10512_v63  ;;  %v7343_v63 = vadd.f32 0.06550218, %v10043_v27 }
 0x3ae   : > { %2900 = vst [vmem:[%s10657_s8 + $0x10] sm:$0xff] %v7308_v45  ;;  %3863 = vmatmul.mubr.f32.gmra.mrb[82].mxu0 %v12116_v35  ;;  %v7347_v27 = vadd.f32 0.06550218, %v10053_v0  ;;  %v7351_v0 = vadd.f32 0.06550218, %v10060_v6 }
 0x3af   : > { %2901 = vst.msk [vmem:[%s10657_s8 + $0x18] sm:$0xff] %vm953_vm1, %v7310_v32  ;;  %v2718_v19 = vpop.f32.mrb[40].mxu1  ;;  %3868 = vmatprep.mubr.f32.mxu0 %v11996_v42  ;;  %v12118_v32 = vld [vmem:[#allocation23_spill] sm:$0xff]  ;;  %v7355_v6 = vadd.f32 0.06550218, %v10067_v55  ;;  %v12130_v55 = vld [vmem:[#allocation12_spill] sm:$0xff] }
 0x3b0   : > { %v7312_v22 = vadd.f32 %v7311_v34, %v2718_v19  ;;  %v2720_v33 = vpop.f32.mrb[41].mxu1  ;;  %5436 = vmatmul.mubr.f32.gmra.mrb[110].mxu1 %v5435_v60  ;;  %v12119_v34 = vld [vmem:[#allocation18_spill] sm:$0xff]  ;;  %v12122_v19 = vld [vmem:[#allocation43_spill] sm:$0xff] }
 0x3b1   : > { %v7314_v30 = vadd.f32 %v7313_v16, %v2720_v33  ;;  %5526 = vmatprep.mubr.f32.mxu1 %v11996_v42  ;;  %v12120_v16 = vpack.c.bf16 %v12118_v32, %v12119_v34 }
 0x3b2   : > { %2902 = vst [vmem:[%s10657_s8 + $0x20] sm:$0xff] %v7312_v22  ;;  %3871 = vmatmul.mubr.f32.gmra.mrb[84].mxu0 %v12117_v2  ;;  %v7321_v22 = vadd.f32 0.06550218, %v10416_v17  ;;  %v7325_v17 = vadd.f32 0.06550218, %v10439_v10 }
 0x3b3   : > { %2903 = vst.msk [vmem:[%s10657_s8 + $0x28] sm:$0xff] %vm953_vm1, %v7314_v30  ;;  %v2725_v50 = vpop.f32.mrb[42].mxu1  ;;  %3876 = vmatprep.mubr.f32.mxu0 %v11996_v42  ;;  %v7329_v10 = vadd.f32 0.06550218, %v10459_v7  ;;  %v7333_v7 = vadd.f32 0.06550218, %v10476_v12 }
 0x3b4   : > { %v7316_v45 = vadd.f32 %v7315_v48, %v2725_v50  ;;  %v2727_v38 = vpop.f32.mrb[43].mxu1  ;;  %5528 = vmatmul.mubr.f32.vlgmr.msra.gmra.mrb[56].mxu1 %v10109_v59  ;;  %v7337_v12 = vadd.f32 0.06550218, %v10496_v26  ;;  %v7341_v26 = vadd.f32 0.06550218, %v10516_v14 }
 0x3b5   : > { %v7318_v60 = vadd.f32 %v7317_v58, %v2727_v38  ;;  %7288 = vmatpush1.bf16.msra.mxu1 %v12120_v16  ;;  %5533 = vmatprep.mubr.f32.mxu1 %v11996_v42  ;;  %v7345_v14 = vadd.f32 0.06550218, %v10048_v9  ;;  %v7349_v9 = vadd.f32 0.06550218, %v10055_v47  ;;  %v7353_v47 = vadd.f32 0.06550218, %v10062_v18 }
 0x3b6   : > { %2904 = vst [vmem:[%s10657_s8 + $0x30] sm:$0xff] %v7316_v45  ;;  %7290 = vmatprep.subr.bf16.mxu1 %v12121_v43  ;;  %3879 = vmatmul.mubr.f32.gmra.mrb[86].mxu0 %v12122_v19  ;;  %v7357_v18 = vadd.f32 0.06550218, %v10070_v62  ;;  %v12132_v62 = vld [vmem:[#allocation10_spill] sm:$0xff] }
 0x3b7   : > { %2905 = vst.msk [vmem:[%s10657_s8 + $0x38] sm:$0xff] %vm953_vm1, %v7318_v60  ;;  %v2732_v33 = vpop.f32.mrb[44].mxu1  ;;  %3884 = vmatprep.mubr.f32.mxu0 %v11996_v42 }
 0x3b8   : > { %v7320_v30 = vadd.f32 %v7319_v56, %v2732_v33  ;;  %v2734_v48 = vpop.f32.mrb[45].mxu1  ;;  %5535 = vmatmul.mubr.f32.gmra.mrb[58].mxu1 %v10126_v23 }
 0x3b9   : > { %v7322_v58 = vadd.f32 %v7321_v22, %v2734_v48  ;;  %5540 = vmatprep.mubr.f32.mxu1 %v11996_v42 }
 0x3ba   : > { %2906 = vst [vmem:[%s10657_s8 + $0x40] sm:$0xff] %v7320_v30  ;;  %3887 = vmatmul.mubr.f32.gmra.mrb[88].mxu0 %v9758_v13 }
 0x3bb   : > { %2907 = vst.msk [vmem:[%s10657_s8 + $0x48] sm:$0xff] %vm953_vm1, %v7322_v58  ;;  %v2739_v50 = vpop.f32.mrb[46].mxu1  ;;  %3892 = vmatprep.mubr.f32.mxu0 %v11996_v42  ;;  %v12123_v58 = vld [vmem:[#allocation20_spill] sm:$0xff] }
 0x3bc   : > { %v7324_v45 = vadd.f32 %v7323_v15, %v2739_v50  ;;  %v2741_v38 = vpop.f32.mrb[47].mxu1  ;;  %5542 = vmatmul.mubr.f32.gmra.mrb[60].mxu1 %v10144_v41 }
 0x3bd   : > { %v7326_v60 = vadd.f32 %v7325_v17, %v2741_v38  ;;  %5547 = vmatprep.mubr.f32.mxu1 %v11996_v42  ;;  %v12124_v38 = vld [vmem:[#allocation29_spill] sm:$0xff] }
 0x3be   : > { %2908 = vst [vmem:[%s10657_s8 + $0x50] sm:$0xff] %v7324_v45  ;;  %3895 = vmatmul.mubr.f32.gmra.mrb[90].mxu0 %v9774_v5 }
 0x3bf   : > { %2909 = vst.msk [vmem:[%s10657_s8 + $0x58] sm:$0xff] %vm953_vm1, %v7326_v60  ;;  %v2746_v32 = vpop.f32.mrb[48].mxu1  ;;  %3900 = vmatprep.mubr.f32.mxu0 %v11996_v42 }
 0x3c0   : > { %v7328_v34 = vadd.f32 %v7327_v25, %v2746_v32  ;;  %v2748_v16 = vpop.f32.mrb[49].mxu1  ;;  %5549 = vmatmul.mubr.f32.gmra.mrb[62].mxu1 %v10157_v46 }
 0x3c1   : > { %v7330_v56 = vadd.f32 %v7329_v10, %v2748_v16  ;;  %5554 = vmatprep.mubr.f32.mxu1 %v11996_v42 }
 0x3c2   : > { %2910 = vst [vmem:[%s10657_s8 + $0x60] sm:$0xff] %v7328_v34  ;;  %3903 = vmatmul.mubr.f32.gmra.mrb[92].mxu0 %v9792_v29  ;;  %v12125_v34 = vld [vmem:[#allocation50_spill] sm:$0xff] }
 0x3c3   : > { %2911 = vst.msk [vmem:[%s10657_s8 + $0x68] sm:$0xff] %vm953_vm1, %v7330_v56  ;;  %v2753_v22 = vpop.f32.mrb[50].mxu1  ;;  %3908 = vmatprep.mubr.f32.mxu0 %v11996_v42 }
 0x3c4   : > { %v7332_v33 = vadd.f32 %v7331_v3, %v2753_v22  ;;  %v2755_v30 = vpop.f32.mrb[51].mxu1  ;;  %5556 = vmatmul.mubr.f32.gmra.mrb[64].mxu1 %v10181_v24  ;;  %v12126_v22 = vld [vmem:[#allocation52_spill] sm:$0xff] }
 0x3c5   : > { %v7334_v48 = vadd.f32 %v7333_v7, %v2755_v30  ;;  %5561 = vmatprep.mubr.f32.mxu1 %v11996_v42 }
 0x3c6   : > { %2912 = vst [vmem:[%s10657_s8 + $0x70] sm:$0xff] %v7332_v33  ;;  %3911 = vmatmul.mubr.f32.gmra.mrb[94].mxu0 %v12123_v58 }
 0x3c7   : > { %2913 = vst.msk [vmem:[%s10657_s8 + $0x78] sm:$0xff] %vm953_vm1, %v7334_v48  ;;  %v2760_v15 = vpop.f32.mrb[52].mxu1  ;;  %3916 = vmatprep.mubr.f32.mxu0 %v11996_v42 }
 0x3c8   : > { %v7336_v17 = vadd.f32 %v7335_v51, %v2760_v15  ;;  %v2762_v50 = vpop.f32.mrb[53].mxu1  ;;  %5563 = vmatmul.mubr.f32.gmra.mrb[66].mxu1 %v10206_v44 }
 0x3c9   : > { %v7338_v45 = vadd.f32 %v7337_v12, %v2762_v50  ;;  %5568 = vmatprep.mubr.f32.mxu1 %v11996_v42  ;;  %v12127_v12 = vld [vmem:[#allocation55_spill] sm:$0xff] }
 0x3ca   : > { %2914 = vst [vmem:[%s10657_s8 + $0x80] sm:$0xff] %v7336_v17  ;;  %3919 = vmatmul.mubr.f32.gmra.mrb[96].mxu0 %v12124_v38 }
 0x3cb   : > { %2915 = vst.msk [vmem:[%s10657_s8 + $0x88] sm:$0xff] %vm953_vm1, %v7338_v45  ;;  %v2767_v60 = vpop.f32.mrb[54].mxu1  ;;  %3924 = vmatprep.mubr.f32.mxu0 %v11996_v42 }
 0x3cc   : > { %v7340_v25 = vadd.f32 %v7339_v52, %v2767_v60  ;;  %v2769_v10 = vpop.f32.mrb[55].mxu1  ;;  %5570 = vmatmul.mubr.f32.gmra.mrb[68].mxu1 %v10230_v37  ;;  %v12128_v52 = vld [vmem:[#allocation56_spill] sm:$0xff] }
 0x3cd   : > { %v7342_v32 = vadd.f32 %v7341_v26, %v2769_v10  ;;  %5575 = vmatprep.mubr.f32.mxu1 %v11996_v42  ;;  %v12129_v10 = vld [vmem:[#allocation106_spill] sm:$0xff] }
 0x3ce   : > { %2916 = vst [vmem:[%s10657_s8 + $0x90] sm:$0xff] %v7340_v25  ;;  %3927 = vmatmul.mubr.f32.gmra.mrb[98].mxu0 %v12125_v34 }
 0x3cf   : > { %2917 = vst.msk [vmem:[%s10657_s8 + $0x98] sm:$0xff] %vm953_vm1, %v7342_v32  ;;  %v2774_v16 = vpop.f32.mrb[0].mxu1  ;;  %3932 = vmatprep.mubr.f32.mxu0 %v11996_v42 }
 0x3d0   : > { %v7344_v56 = vadd.f32 %v7343_v63, %v2774_v16  ;;  %v2776_v3 = vpop.f32.mrb[1].mxu1  ;;  %5577 = vmatmul.mubr.f32.gmra.mrb[70].mxu1 %v10250_v1  ;;  %v7359_v63 = vadd.f32 0.06550218, %v12130_v55  ;;  %v7361_v16 = vadd.f32 0.06550218, %v12132_v62  ;;  %v12141_v62 = vld [vmem:[#allocation113_spill] sm:$0xff] }
 0x3d1   : > { %v7346_v7 = vadd.f32 %v7345_v14, %v2776_v3  ;;  %5582 = vmatprep.mubr.f32.mxu1 %v11996_v42  ;;  %v12131_v14 = vld [vmem:[#allocation58_spill] sm:$0xff] }
 0x3d2   : > { %2918 = vst [vmem:[%s10657_s8 + $0xa0] sm:$0xff] %v7344_v56  ;;  %3935 = vmatmul.mubr.f32.gmra.mrb[100].mxu0 %v12126_v22 }
 0x3d3   : > { %2919 = vst.msk [vmem:[%s10657_s8 + $0xa8] sm:$0xff] %vm953_vm1, %v7346_v7  ;;  %v2781_v33 = vpop.f32.mrb[2].mxu1  ;;  %3940 = vmatprep.mubr.f32.mxu0 %v11996_v42 }
 0x3d4   : > { %v7348_v30 = vadd.f32 %v7347_v27, %v2781_v33  ;;  %v2783_v48 = vpop.f32.mrb[3].mxu1  ;;  %5584 = vmatmul.mubr.f32.gmra.mrb[72].mxu1 %v10263_v53  ;;  %v12133_v27 = vld [vmem:[#allocation110_spill] sm:$0xff]  ;;  %v12134_v33 = vld [vmem:[#allocation75_spill] sm:$0xff] }
 0x3d5   : > { %v7350_v51 = vadd.f32 %v7349_v9, %v2783_v48  ;;  %5589 = vmatprep.mubr.f32.mxu1 %v11996_v42  ;;  %v12135_v48 = vld [vmem:[#allocation60_spill] sm:$0xff] }
 0x3d6   : > { %2920 = vst [vmem:[%s10657_s8 + $0xb0] sm:$0xff] %v7348_v30  ;;  %3943 = vmatmul.mubr.f32.gmra.mrb[102].mxu0 %v12127_v12  ;;  %v7363_v30 = vadd.f32 0.06550218, %v12134_v33 }
 0x3d7   : > { %2921 = vst.msk [vmem:[%s10657_s8 + $0xb8] sm:$0xff] %vm953_vm1, %v7350_v51  ;;  %v2788_v15 = vpop.f32.mrb[4].mxu1  ;;  %3948 = vmatprep.mubr.f32.mxu0 %v11996_v42  ;;  %v12136_v51 = vld [vmem:[#allocation76_spill] sm:$0xff] }
 0x3d8   : > { %v7352_v17 = vadd.f32 %v7351_v0, %v2788_v15  ;;  %v2790_v50 = vpop.f32.mrb[5].mxu1  ;;  %5591 = vmatmul.mubr.f32.gmra.mrb[74].mxu1 %v10286_v40  ;;  %v7365_v0 = vadd.f32 0.06550218, %v12136_v51 }
 0x3d9   : > { %v7354_v45 = vadd.f32 %v7353_v47, %v2790_v50  ;;  %5596 = vmatprep.mubr.f32.mxu1 %v11996_v42  ;;  %v12137_v50 = vld [vmem:[#allocation112_spill] sm:$0xff] }
 0x3da   : > { %2922 = vst [vmem:[%s10657_s8 + $0xc0] sm:$0xff] %v7352_v17  ;;  %3951 = vmatmul.mubr.f32.gmra.mrb[104].mxu0 %v12128_v52 }
 0x3db   : > { %2923 = vst.msk [vmem:[%s10657_s8 + $0xc8] sm:$0xff] %vm953_vm1, %v7354_v45  ;;  %v2795_v26 = vpop.f32.mrb[6].mxu1  ;;  %3956 = vmatprep.mubr.f32.mxu0 %v11996_v42 }
 0x3dc   : > { %v7356_v60 = vadd.f32 %v7355_v6, %v2795_v26  ;;  %v2797_v25 = vpop.f32.mrb[7].mxu1  ;;  %5598 = vmatmul.mubr.f32.gmra.mrb[76].mxu1 %v12129_v10  ;;  %v12138_v6 = vld [vmem:[#allocation77_spill] sm:$0xff]  ;;  %v12139_v26 = vld [vmem:[#allocation62_spill] sm:$0xff] }
 0x3dd   : > { %v7358_v32 = vadd.f32 %v7357_v18, %v2797_v25  ;;  %5603 = vmatprep.mubr.f32.mxu1 %v11996_v42  ;;  %v7367_v18 = vadd.f32 0.06550218, %v12138_v6  ;;  %v12147_v6 = vld [vmem:[#allocation66_spill] sm:$0xff] }
 0x3de   : > { %2924 = vst [vmem:[%s10657_s8 + $0xd0] sm:$0xff] %v7356_v60  ;;  %3959 = vmatmul.mubr.f32.gmra.mrb[106].mxu0 %v12131_v14  ;;  %v12140_v60 = vld [vmem:[#allocation78_spill] sm:$0xff] }
 0x3df   : > { %2925 = vst.msk [vmem:[%s10657_s8 + $0xd8] sm:$0xff] %vm953_vm1, %v7358_v32  ;;  %v2802_v56 = vpop.f32.mrb[8].mxu1  ;;  %3964 = vmatprep.mubr.f32.mxu0 %v11996_v42  ;;  %v7369_v25 = vadd.f32 0.06550218, %v12140_v60 }
 0x3e0   : > { %v7360_v3 = vadd.f32 %v7359_v63, %v2802_v56  ;;  %v2804_v7 = vpop.f32.mrb[9].mxu1  ;;  %5605 = vmatmul.mubr.f32.gmra.mrb[78].mxu1 %v12133_v27  ;;  %v12142_v56 = vld [vmem:[#allocation79_spill] sm:$0xff] }
 0x3e1   : > { %v7362_v9 = vadd.f32 %v7361_v16, %v2804_v7  ;;  %5610 = vmatprep.mubr.f32.mxu1 %v11996_v42  ;;  %v12143_v7 = vld [vmem:[#allocation65_spill] sm:$0xff] }
 0x3e2   : > { %2926 = vst [vmem:[%s10657_s8 + $0xe0] sm:$0xff] %v7360_v3  ;;  %3967 = vmatmul.mubr.f32.gmra.mrb[108].mxu0 %v12135_v48  ;;  %v7371_v3 = vadd.f32 0.06550218, %v12142_v56  ;;  %v12150_v56 = vld [vmem:[#allocation85_spill] sm:$0xff] }
 0x3e3   : > { %2927 = vst.msk [vmem:[%s10657_s8 + $0xe8] sm:$0xff] %vm953_vm1, %v7362_v9  ;;  %v2809_v47 = vpop.f32.mrb[10].mxu1  ;;  %3972 = vmatprep.mubr.f32.mxu0 %v11996_v42  ;;  %v12144_v9 = vld [vmem:[#allocation80_spill] sm:$0xff] }
 0x3e4   : > { %v7364_v15 = vadd.f32 %v7363_v30, %v2809_v47  ;;  %v2811_v17 = vpop.f32.mrb[11].mxu1  ;;  %5612 = vmatmul.mubr.f32.gmra.mrb[80].mxu1 %v12137_v50  ;;  %v7373_v33 = vadd.f32 0.06550218, %v12144_v9  ;;  %v12145_v47 = vld [vmem:[#allocation116_spill] sm:$0xff] }
 0x3e5   : > { %v7366_v45 = vadd.f32 %v7365_v0, %v2811_v17  ;;  %5617 = vmatprep.mubr.f32.mxu1 %v11996_v42  ;;  %v12146_v17 = vld [vmem:[#allocation82_spill] sm:$0xff]  ;;  %v12151_v9 = vld [vmem:[#allocation68_spill] sm:$0xff] }
 0x3e6   : > { %2928 = vst [vmem:[%s10657_s8 + $0xf0] sm:$0xff] %v7364_v15  ;;  %3975 = vmatmul.mubr.f32.gmra.mrb[110].mxu0 %v12139_v26 }
 0x3e7   : > { %2929 = vst.msk [vmem:[%s10657_s8 + $0xf8] sm:$0xff] %vm953_vm1, %v7366_v45  ;;  %v2816_v32 = vpop.f32.mrb[12].mxu1  ;;  %3980 = vmatprep.mubr.f32.mxu0 %v11996_v42  ;;  %v7375_v45 = vadd.f32 0.06550218, %v12146_v17  ;;  %v12153_v17 = vld [vmem:[#allocation120_spill] sm:$0xff] }
 0x3e8   : > { %v7368_v55 = vadd.f32 %v7367_v18, %v2816_v32  ;;  %v2818_v63 = vpop.f32.mrb[13].mxu1  ;;  %5619 = vmatmul.mubr.f32.gmra.mrb[82].mxu1 %v12141_v62  ;;  %v12148_v18 = vld [vmem:[#allocation83_spill] sm:$0xff] }
 0x3e9   : > { %v7370_v16 = vadd.f32 %v7369_v25, %v2818_v63  ;;  %5624 = vmatprep.mubr.f32.mxu1 %v11996_v42  ;;  %v7377_v60 = vadd.f32 0.06550218, %v12148_v18  ;;  %v12149_v63 = vld [vmem:[#allocation118_spill] sm:$0xff]  ;;  %v12154_v18 = vld [vmem:[#allocation88_spill] sm:$0xff] }
 0x3ea   : > { %2930 = vst [vmem:[%s10657_s8 + $0x100] sm:$0xff] %v7368_v55  ;;  %3983 = vmatmul.mubr.f32.gmra.mrb[112].mxu0 %v12143_v7 }
 0x3eb   : > { %2931 = vst.msk [vmem:[%s10657_s8 + $0x108] sm:$0xff] %vm953_vm1, %v7370_v16  ;;  %v2823_v30 = vpop.f32.mrb[14].mxu1  ;;  %3988 = vmatprep.mubr.f32.mxu0 %v11996_v42 }
 0x3ec   : > { %v7372_v51 = vadd.f32 %v7371_v3, %v2823_v30  ;;  %v2825_v0 = vpop.f32.mrb[15].mxu1  ;;  %5626 = vmatmul.mubr.f32.gmra.mrb[84].mxu1 %v12145_v47  ;;  %v7379_v3 = vadd.f32 0.06550218, %v12150_v56 }
 0x3ed   : > { %v7374_v15 = vadd.f32 %v7373_v33, %v2825_v0  ;;  %5631 = vmatprep.mubr.f32.mxu1 %v11996_v42  ;;  %v12152_v33 = vld [vmem:[#allocation86_spill] sm:$0xff] }
 0x3ee   : > { %2932 = vst [vmem:[%s10657_s8 + $0x110] sm:$0xff] %v7372_v51  ;;  %3991 = vmatmul.mubr.f32.gmra.mrb[114].mxu0 %v12147_v6  ;;  %v7381_v30 = vadd.f32 0.06550218, %v12152_v33  ;;  %v12157_v33 = vld [vmem:[#allocation122_spill] sm:$0xff] }
 0x3ef   : > { %2933 = vst.msk [vmem:[%s10657_s8 + $0x118] sm:$0xff] %vm953_vm1, %v7374_v15  ;;  %v2830_v25 = vpop.f32.mrb[16].mxu1  ;;  %3996 = vmatprep.mubr.f32.mxu0 %v11996_v42 }
 0x3f0   : > { %v7376_v32 = vadd.f32 %v7375_v45, %v2830_v25  ;;  %v2832_v55 = vpop.f32.mrb[17].mxu1  ;;  %5633 = vmatmul.mubr.f32.gmra.mrb[86].mxu1 %v12149_v63  ;;  %v12155_v25 = vld [vmem:[#allocation70_spill] sm:$0xff] }
 0x3f1   : > { %v7378_v16 = vadd.f32 %v7377_v60, %v2832_v55  ;;  %5638 = vmatprep.mubr.f32.mxu1 %v11996_v42  ;;  %v7383_v60 = vadd.f32 0.06550218, %v12154_v18  ;;  %v12160_v18 = vld [vmem:[#allocation92_spill] sm:$0xff] }
 0x3f2   : > { %2934 = vst [vmem:[%s10657_s8 + $0x120] sm:$0xff] %v7376_v32  ;;  %3999 = vmatmul.mubr.f32.gmra.mrb[116].mxu0 %v12151_v9  ;;  %v12156_v32 = vld [vmem:[#allocation89_spill] sm:$0xff] }
 0x3f3   : > { %2935 = vst.msk [vmem:[%s10657_s8 + $0x128] sm:$0xff] %vm953_vm1, %v7378_v16  ;;  %v2837_v51 = vpop.f32.mrb[18].mxu1  ;;  %4004 = vmatprep.mubr.f32.mxu0 %v11996_v42  ;;  %v7385_v55 = vadd.f32 0.06550218, %v12156_v32  ;;  %v7389_v32 = vadd.f32 0.06550218, %v12160_v18 }
 0x3f4   : > { %v7380_v0 = vadd.f32 %v7379_v3, %v2837_v51  ;;  %v2839_v15 = vpop.f32.mrb[19].mxu1  ;;  %5640 = vmatmul.mubr.f32.gmra.mrb[88].mxu1 %v12153_v17  ;;  %v12158_v51 = vld [vmem:[#allocation91_spill] sm:$0xff]  ;;  %v12164_v18 = vld [vmem:[#allocation24_spill] sm:$0xff]  ;;  %v12169_v17 = vld [vmem:[#allocation13_spill] sm:$0xff] }
 0x3f5   : > { %v7382_v45 = vadd.f32 %v7381_v30, %v2839_v15  ;;  %5645 = vmatprep.mubr.f32.mxu1 %v11996_v42  ;;  %v7387_v15 = vadd.f32 0.06550218, %v12158_v51 }
 0x3f6   : > { %2936 = vst [vmem:[%s10657_s8 + $0x130] sm:$0xff] %v7380_v0  ;;  %4007 = vmatmul.mubr.f32.gmra.mrb[118].mxu0 %v12155_v25  ;;  %v12159_v0 = vld [vmem:[#allocation72_spill] sm:$0xff] }
 0x3f7   : > { %2937 = vst.msk [vmem:[%s10657_s8 + $0x138] sm:$0xff] %vm953_vm1, %v7382_v45  ;;  %v2844_v16 = vpop.f32.mrb[20].mxu1  ;;  %4012 = vmatprep.mubr.f32.mxu0 %v11996_v42 }
 0x3f8   : > { %v7384_v56 = vadd.f32 %v7383_v60, %v2844_v16  ;;  %v2846_v3 = vpop.f32.mrb[21].mxu1  ;;  %5647 = vmatmul.mubr.f32.gmra.mrb[90].mxu1 %v12157_v33  ;;  %v7393_v33 = vadd.f32 0.06550218, %v12164_v18  ;;  %v12168_v18 = vld [vmem:[#allocation95_spill] sm:$0xff] }
 0x3f9   : > { %v7386_v30 = vadd.f32 %v7385_v55, %v2846_v3  ;;  %5652 = vmatprep.mubr.f32.mxu1 %v11996_v42  ;;  %v12162_v3 = vld [vmem:[#allocation28_spill] sm:$0xff] }
 0x3fa   : > { %2938 = vst [vmem:[%s10657_s8 + $0x140] sm:$0xff] %v7384_v56  ;;  %4015 = vmatmul.mubr.f32.gmra.mrb[120].mxu0 %v12159_v0  ;;  %v7391_v51 = vadd.f32 0.06550218, %v12162_v3  ;;  %v12163_v56 = vld [vmem:[#allocation74_spill] sm:$0xff] }
 0x3fb   : > { %2939 = vst.msk [vmem:[%s10657_s8 + $0x148] sm:$0xff] %vm953_vm1, %v7386_v30  ;;  %v2851_v45 = vpop.f32.mrb[22].mxu1  ;;  %4020 = vmatprep.mubr.f32.mxu0 %v11996_v42 }
 0x3fc   : > { %v7388_v60 = vadd.f32 %v7387_v15, %v2851_v45  ;;  %v2853_v16 = vpop.f32.mrb[23].mxu1  ;;  %5654 = vmatmul.mubr.f32.gmra.mrb[92].mxu1 %v12161_v21  ;;  %v12165_v21 = vld [vmem:[#allocation126_spill] sm:$0xff] }
 0x3fd   : > { %v7390_v55 = vadd.f32 %v7389_v32, %v2853_v16  ;;  %5659 = vmatprep.mubr.f32.mxu1 %v11996_v42  ;;  %v12166_v16 = vld [vmem:[#allocation94_spill] sm:$0xff] }
 0x3fe   : > { %2940 = vst [vmem:[%s10657_s8 + $0x150] sm:$0xff] %v7388_v60  ;;  %4023 = vmatmul.mubr.f32.gmra.mrb[122].mxu0 %v12163_v56  ;;  %v7395_v3 = vadd.f32 0.06550218, %v12166_v16  ;;  %v12167_v60 = vand.u32 4294901760, %v9594_v11  ;;  %v12171_v11 = vld [vmem:[#allocation97_spill] sm:$0xff] }
 0x3ff   : > { %2941 = vst.msk [vmem:[%s10657_s8 + $0x158] sm:$0xff] %vm953_vm1, %v7390_v55  ;;  %v2858_v30 = vpop.f32.mrb[24].mxu1  ;;  %4097 = vmatprep.mubr.f32.mxu0 %v11996_v42  ;;  %v7397_v55 = vadd.f32 0.06550218, %v12168_v18  ;;  %v7399_v16 = vadd.f32 0.06550218, %v12171_v11 }
 0x400   : > { %v7392_v15 = vadd.f32 %v7391_v51, %v2858_v30  ;;  %v2860_v45 = vpop.f32.mrb[25].mxu1  ;;  %5661 = vmatmul.mubr.f32.gmra.mrb[94].mxu1 %v12165_v21  ;;  %v12170_v30 = vld [vmem:[#allocation37_spill] sm:$0xff] }
 0x401   : > { %v7394_v32 = vadd.f32 %v7393_v33, %v2860_v45  ;;  %5666 = vmatprep.mubr.f32.mxu1 %v11996_v42 }
 0x402   : > { %2942 = vst [vmem:[%s10657_s8 + $0x160] sm:$0xff] %v7392_v15  ;;  %4101 = vmatmul.mubr.f32.vlgmr.msra.gmra.mrb[68].mxu0 %v12167_v60 }
 0x403   : > { %2943 = vst.msk [vmem:[%s10657_s8 + $0x168] sm:$0xff] %vm953_vm1, %v7394_v32  ;;  %7272 = vmatpush1.bf16.msra.mxu0 %v12169_v17  ;;  %v2865_v51 = vpop.f32.mrb[26].mxu1  ;;  %4106 = vmatprep.mubr.f32.mxu0 %v11996_v42  ;;  %v12172_v32 = vand.u32 4294901760, %v9608_v54  ;;  %v12173_v17 = vld [vmem:[#allocation98_spill] sm:$0xff]  ;;  %v12175_v54 = vand.u32 4294901760, %v12109_v36  ;;  %v12178_v36 = vand.u32 4294901760, %v12112_v31 }
 0x404   : > { %v7396_v33 = vadd.f32 %v7395_v3, %v2865_v51  ;;  %7274 = vmatprep.subr.bf16.mxu0 %v12170_v30  ;;  %v2867_v45 = vpop.f32.mrb[27].mxu1  ;;  %5668 = vmatmul.mubr.f32.gmra.mrb[96].mxu1 %v10510_v4  ;;  %v7401_v60 = vadd.f32 0.06550218, %v12173_v17  ;;  %v12174_v30 = vld [vmem:[#allocation100_spill] sm:$0xff]  ;;  %v12182_v31 = vand.u32 4294901760, %v12113_v39  ;;  %v12186_v39 = vand.u32 4294901760, %v12115_v20 }
 0x405   : > { %v7398_v15 = vadd.f32 %v7397_v55, %v2867_v45  ;;  %5673 = vmatprep.mubr.f32.mxu1 %v11996_v42  ;;  %v12176_v45 = vld [vmem:[#allocation101_spill] sm:$0xff] }
 0x406   : > { %2944 = vst [vmem:[%s10657_s8 + $0x170] sm:$0xff] %v7396_v33  ;;  %4110 = vmatmul.mubr.f32.gmra.mrb[70].mxu0 %v12172_v32  ;;  %v7403_v33 = vadd.f32 0.06550218, %v12174_v30  ;;  %v12191_v20 = vld [vmem:[#allocation81_spill] sm:$0xff] }
 0x407   : > { %2945 = vst.msk [vmem:[%s10657_s8 + $0x178] sm:$0xff] %vm953_vm1, %v7398_v15  ;;  %v2872_v3 = vpop.f32.mrb[28].mxu1  ;;  %4115 = vmatprep.mubr.f32.mxu0 %v11996_v42  ;;  %v7405_v15 = vadd.f32 0.06550218, %v12176_v45 }
 0x408   : > { %v7400_v18 = vadd.f32 %v7399_v16, %v2872_v3  ;;  %v2874_v51 = vpop.f32.mrb[29].mxu1  ;;  %5675 = vmatmul.mubr.f32.gmra.mrb[98].mxu1 %v10530_v61 }
 0x409   : > { %v7402_v55 = vadd.f32 %v7401_v60, %v2874_v51  ;;  %5680 = vmatprep.mubr.f32.mxu1 %v11996_v42  ;;  %v12177_v60 = vld [vmem:[#allocation103_spill] sm:$0xff] }
 0x40a   : > { %2946 = vst [vmem:[%s10657_s8 + $0x180] sm:$0xff] %v7400_v18  ;;  %4119 = vmatmul.mubr.f32.gmra.mrb[72].mxu0 %v12175_v54  ;;  %v7407_v3 = vadd.f32 0.06550218, %v12177_v60  ;;  %v12179_v18 = vld [vmem:[#allocation104_spill] sm:$0xff]  ;;  %v12180_v54 = vld [vmem:[#allocation131_spill] sm:$0xff] }
 0x40b   : > { %2947 = vst.msk [vmem:[%s10657_s8 + $0x188] sm:$0xff] %vm953_vm1, %v7402_v55  ;;  %v2879_v11 = vpop.f32.mrb[30].mxu1  ;;  %4124 = vmatprep.mubr.f32.mxu0 %v11996_v42  ;;  %v7409_v51 = vadd.f32 0.06550218, %v12179_v18 }
 0x40c   : > { %v7404_v16 = vadd.f32 %v7403_v33, %v2879_v11  ;;  %v2881_v32 = vpop.f32.mrb[31].mxu1  ;;  %5682 = vmatmul.mubr.f32.gmra.mrb[100].mxu1 %v10546_v57  ;;  %v12253_v57 = vld [vmem:[#allocation44_spill] sm:$0xff] }
 0x40d   : > { %v7406_v17 = vadd.f32 %v7405_v15, %v2881_v32  ;;  %5687 = vmatprep.mubr.f32.mxu1 %v11996_v42  ;;  %v12181_v15 = vld [vmem:[#allocation107_spill] sm:$0xff] }
 0x40e   : > { %2948 = vst [vmem:[%s10657_s8 + $0x190] sm:$0xff] %v7404_v16  ;;  %4128 = vmatmul.mubr.f32.gmra.mrb[74].mxu0 %v12178_v36  ;;  %v7411_v11 = vadd.f32 0.06550218, %v12181_v15  ;;  %v12183_v16 = vld [vmem:[#allocation108_spill] sm:$0xff]  ;;  %v12184_v36 = vld [vmem:[#allocation134_spill] sm:$0xff]  ;;  %v12193_v15 = vld [vmem:[#allocation27_spill] sm:$0xff] }
 0x40f   : > { %2949 = vst.msk [vmem:[%s10657_s8 + $0x198] sm:$0xff] %vm953_vm1, %v7406_v17  ;;  %v2886_v55 = vpop.f32.mrb[32].mxu1  ;;  %4133 = vmatprep.mubr.f32.mxu0 %v11996_v42  ;;  %v7413_v32 = vadd.f32 0.06550218, %v12183_v16  ;;  %v12198_v16 = vand.u32 4294901760, %v9774_v5  ;;  %v12203_v5 = vld [vmem:[#allocation19_spill] sm:$0xff] }
 0x410   : > { %v7408_v30 = vadd.f32 %v7407_v3, %v2886_v55  ;;  %v2888_v33 = vpop.f32.mrb[33].mxu1  ;;  %5689 = vmatmul.mubr.f32.gmra.mrb[102].mxu1 %v12180_v54  ;;  %v12187_v55 = vld [vmem:[#allocation137_spill] sm:$0xff] }
 0x411   : > { %v7410_v45 = vadd.f32 %v7409_v51, %v2888_v33  ;;  %5694 = vmatprep.mubr.f32.mxu1 %v11996_v42  ;;  %v12185_v51 = vand.u32 4294901760, %v12114_v8  ;;  %v12188_v8 = vand.u32 4294901760, %v12116_v35  ;;  %v12190_v33 = vand.u32 4294901760, %v12117_v2 }
 0x412   : > { %2950 = vst [vmem:[%s10657_s8 + $0x1a0] sm:$0xff] %v7408_v30  ;;  %4137 = vmatmul.mubr.f32.gmra.mrb[76].mxu0 %v12182_v31  ;;  %v12189_v30 = vld [vmem:[#allocation138_spill] sm:$0xff]  ;;  %v12194_v35 = vand.u32 4294901760, %v12122_v19  ;;  %v12196_v2 = vand.u32 4294901760, %v9758_v13  ;;  %v12197_v31 = vld [vmem:[#allocation87_spill] sm:$0xff]  ;;  %v12201_v13 = vld [vmem:[#allocation93_spill] sm:$0xff] }
 0x413   : > { %2951 = vst.msk [vmem:[%s10657_s8 + $0x1a8] sm:$0xff] %vm953_vm1, %v7410_v45  ;;  %v2893_v17 = vpop.f32.mrb[34].mxu1  ;;  %4142 = vmatprep.mubr.f32.mxu0 %v11996_v42  ;;  %v12192_v45 = vld [vmem:[#allocation17_spill] sm:$0xff]  ;;  %v12199_v19 = vld [vmem:[#allocation90_spill] sm:$0xff] }
 0x414   : > { %v7412_v60 = vadd.f32 %v7411_v11, %v2893_v17  ;;  %v2895_v3 = vpop.f32.mrb[35].mxu1  ;;  %5696 = vmatmul.mubr.f32.gmra.mrb[104].mxu1 %v12184_v36  ;;  %v12195_v11 = vld [vmem:[#allocation84_spill] sm:$0xff]  ;;  %v12202_v17 = vand.u32 4294901760, %v12123_v58  ;;  %v12207_v58 = vld [vmem:[#allocation99_spill] sm:$0xff]  ;;  %v12251_v36 = vld [vmem:[#allocation42_spill] sm:$0xff] }
 0x415   : > { %v7414_v18 = vadd.f32 %v7413_v32, %v2895_v3  ;;  %5701 = vmatprep.mubr.f32.mxu1 %v11996_v42  ;;  %v12200_v32 = vand.u32 4294901760, %v9792_v29  ;;  %v12205_v29 = vld [vmem:[#allocation96_spill] sm:$0xff]  ;;  %v12206_v3 = vand.u32 4294901760, %v12125_v34  ;;  %v12211_v34 = vld [vmem:[#allocation105_spill] sm:$0xff]  ;;  %v12252_v54 = vand.u32 4294901760, %v12195_v11 }
 0x416   : > { %2952 = vst [vmem:[%s10657_s8 + $0x1b0] sm:$0xff] %v7412_v60  ;;  %4146 = vmatmul.mubr.f32.gmra.mrb[78].mxu0 %v12185_v51  ;;  %v12204_v60 = vand.u32 4294901760, %v12124_v38  ;;  %v12209_v38 = vld [vmem:[#allocation102_spill] sm:$0xff]  ;;  %v12210_v51 = vand.u32 4294901760, %v12127_v12  ;;  %v12215_v12 = vld [vmem:[#allocation111_spill] sm:$0xff] }
 0x417   : > { %2953 = vst.msk [vmem:[%s10657_s8 + $0x1b8] sm:$0xff] %vm953_vm1, %v7414_v18  ;;  %4151 = vmatprep.mubr.f32.mxu0 %v11996_v42  ;;  %v12208_v18 = vand.u32 4294901760, %v12126_v22  ;;  %v12213_v22 = vld [vmem:[#allocation109_spill] sm:$0xff] }
 0x418   : > { %5703 = vmatmul.mubr.f32.gmra.mrb[106].mxu1 %v10596_v49  ;;  %v12250_v49 = vld [vmem:[#allocation26_spill] sm:$0xff] }
 0x419   : > { %5708 = vmatprep.mubr.f32.mxu1 %v11996_v42 }
 0x41a   : > { %4155 = vmatmul.mubr.f32.gmra.mrb[80].mxu0 %v12186_v39  ;;  %v12212_v39 = vand.u32 4294901760, %v12128_v52  ;;  %v12217_v52 = vld [vmem:[#allocation114_spill] sm:$0xff] }
 0x41b   : > { %4160 = vmatprep.mubr.f32.mxu0 %v11996_v42 }
 0x41c   : > { %5710 = vmatmul.mubr.f32.gmra.mrb[108].mxu1 %v12187_v55  ;;  %v12249_v55 = vand.u32 4294901760, %v12191_v20 }
 0x41d   : > { %5715 = vmatprep.mubr.f32.mxu1 %v11996_v42 }
 0x41e   : > { %4164 = vmatmul.mubr.f32.gmra.mrb[82].mxu0 %v12188_v8  ;;  %v12214_v8 = vand.u32 4294901760, %v12131_v14  ;;  %v12219_v14 = vld [vmem:[#allocation115_spill] sm:$0xff] }
 0x41f   : > { %4169 = vmatprep.mubr.f32.mxu0 %v11996_v42 }
 0x420   : > { %5717 = vmatmul.mubr.f32.gmra.mrb[110].mxu1 %v12189_v30  ;;  %v12248_v30 = vld [vmem:[#allocation39_spill] sm:$0xff] }
 0x421   : > { %5795 = vmatprep.mubr.f32.mxu1 %v11996_v42 }
 0x422   : > { %4173 = vmatmul.mubr.f32.gmra.mrb[84].mxu0 %v12190_v33  ;;  %v12216_v33 = vand.u32 4294901760, %v12135_v48  ;;  %v12221_v48 = vld [vmem:[#allocation117_spill] sm:$0xff] }
 0x423   : > { %4178 = vmatprep.mubr.f32.mxu0 %v11996_v42 }
 0x424   : > { %5798 = vmatmul.mubr.f32.vlgmr.msra.gmra.mrb[56].mxu1 %v12191_v20  ;;  %v12258_v20 = vand.u32 4294901760, %v12201_v13 }
 0x425   : > { %7292 = vmatpush1.bf16.msra.mxu1 %v12192_v45  ;;  %5803 = vmatprep.mubr.f32.mxu1 %v11996_v42 }
 0x426   : > { %7294 = vmatprep.subr.bf16.mxu1 %v12193_v15  ;;  %4182 = vmatmul.mubr.f32.gmra.mrb[86].mxu0 %v12194_v35  ;;  %v12218_v15 = vand.u32 4294901760, %v12139_v26  ;;  %v12220_v35 = vand.u32 4294901760, %v12143_v7  ;;  %v12223_v26 = vld [vmem:[#allocation119_spill] sm:$0xff]  ;;  %v12225_v7 = vld [vmem:[#allocation121_spill] sm:$0xff] }
 0x427   : > { %4187 = vmatprep.mubr.f32.mxu0 %v11996_v42 }
 0x428   : > { %5806 = vmatmul.mubr.f32.gmra.mrb[58].mxu1 %v12195_v11  ;;  %v12259_v11 = vld [vmem:[#allocation47_spill] sm:$0xff] }
 0x429   : > { %5811 = vmatprep.mubr.f32.mxu1 %v11996_v42 }
 0x42a   : > { %4191 = vmatmul.mubr.f32.gmra.mrb[88].mxu0 %v12196_v2  ;;  %v12222_v2 = vand.u32 4294901760, %v12147_v6  ;;  %v12227_v6 = vld [vmem:[#allocation124_spill] sm:$0xff] }
 0x42b   : > { %4196 = vmatprep.mubr.f32.mxu0 %v11996_v42 }
 0x42c   : > { %5814 = vmatmul.mubr.f32.gmra.mrb[60].mxu1 %v12197_v31 }
 0x42d   : > { %5819 = vmatprep.mubr.f32.mxu1 %v11996_v42 }
 0x42e   : > { %4200 = vmatmul.mubr.f32.gmra.mrb[90].mxu0 %v12198_v16  ;;  %v12224_v16 = vand.u32 4294901760, %v12151_v9  ;;  %v12229_v9 = vld [vmem:[#allocation125_spill] sm:$0xff] }
 0x42f   : > { %4205 = vmatprep.mubr.f32.mxu0 %v11996_v42 }
 0x430   : > { %5822 = vmatmul.mubr.f32.gmra.mrb[62].mxu1 %v12199_v19 }
 0x431   : > { %5827 = vmatprep.mubr.f32.mxu1 %v11996_v42 }
 0x432   : > { %4209 = vmatmul.mubr.f32.gmra.mrb[92].mxu0 %v12200_v32  ;;  %v12226_v32 = vand.u32 4294901760, %v12155_v25  ;;  %v12231_v25 = vld [vmem:[#allocation127_spill] sm:$0xff] }
 0x433   : > { %4214 = vmatprep.mubr.f32.mxu0 %v11996_v42 }
 0x434   : > { %5830 = vmatmul.mubr.f32.gmra.mrb[64].mxu1 %v12201_v13  ;;  %v12263_v13 = vld [vmem:[#allocation49_spill] sm:$0xff] }
 0x435   : > { %5835 = vmatprep.mubr.f32.mxu1 %v11996_v42 }
 0x436   : > { %4218 = vmatmul.mubr.f32.gmra.mrb[94].mxu0 %v12202_v17  ;;  %v12228_v17 = vand.u32 4294901760, %v12159_v0  ;;  %v12234_v0 = vld [vmem:[#allocation128_spill] sm:$0xff] }
 0x437   : > { %4223 = vmatprep.mubr.f32.mxu0 %v11996_v42 }
 0x438   : > { %5838 = vmatmul.mubr.f32.gmra.mrb[66].mxu1 %v12203_v5 }
 0x439   : > { %5843 = vmatprep.mubr.f32.mxu1 %v11996_v42 }
 0x43a   : > { %4227 = vmatmul.mubr.f32.gmra.mrb[96].mxu0 %v12204_v60  ;;  %v12230_v60 = vand.u32 4294901760, %v12163_v56  ;;  %v12236_v56 = vld [vmem:[#allocation129_spill] sm:$0xff] }
 0x43b   : > { %4232 = vmatprep.mubr.f32.mxu0 %v11996_v42 }
 0x43c   : > { %5846 = vmatmul.mubr.f32.gmra.mrb[68].mxu1 %v12205_v29 }
 0x43d   : > { %5851 = vmatprep.mubr.f32.mxu1 %v11996_v42 }
 0x43e   : > { %4236 = vmatmul.mubr.f32.gmra.mrb[98].mxu0 %v12206_v3  ;;  %v12232_v3 = vld [vmem:[#allocation9_spill] sm:$0xff] }
 0x43f   : > { %4241 = vmatprep.mubr.f32.mxu0 %v11996_v42 }
 0x440   : > { %5854 = vmatmul.mubr.f32.gmra.mrb[70].mxu1 %v12207_v58 }
 0x441   : > { %5859 = vmatprep.mubr.f32.mxu1 %v11996_v42 }
 0x442   : > { %4245 = vmatmul.mubr.f32.gmra.mrb[100].mxu0 %v12208_v18  ;;  %v12233_v18 = vld [vmem:[#allocation11_spill] sm:$0xff] }
 0x443   : > { %4250 = vmatprep.mubr.f32.mxu0 %v11996_v42 }
 0x444   : > { %5862 = vmatmul.mubr.f32.gmra.mrb[72].mxu1 %v12209_v38 }
 0x445   : > { %5867 = vmatprep.mubr.f32.mxu1 %v11996_v42 }
 0x446   : > { %4254 = vmatmul.mubr.f32.gmra.mrb[102].mxu0 %v12210_v51  ;;  %v12235_v51 = vld [vmem:[#allocation30_spill] sm:$0xff] }
 0x447   : > { %4259 = vmatprep.mubr.f32.mxu0 %v11996_v42 }
 0x448   : > { %5870 = vmatmul.mubr.f32.gmra.mrb[74].mxu1 %v12211_v34 }
 0x449   : > { %5875 = vmatprep.mubr.f32.mxu1 %v11996_v42 }
 0x44a   : > { %4263 = vmatmul.mubr.f32.gmra.mrb[104].mxu0 %v12212_v39  ;;  %v12237_v39 = vld [vmem:[#allocation31_spill] sm:$0xff] }
 0x44b   : > { %4268 = vmatprep.mubr.f32.mxu0 %v11996_v42 }
 0x44c   : > { %5878 = vmatmul.mubr.f32.gmra.mrb[76].mxu1 %v12213_v22 }
 0x44d   : > { %5883 = vmatprep.mubr.f32.mxu1 %v11996_v42 }
 0x44e   : > { %4272 = vmatmul.mubr.f32.gmra.mrb[106].mxu0 %v12214_v8  ;;  %v12238_v8 = vld [vmem:[#allocation132_spill] sm:$0xff] }
 0x44f   : > { %4277 = vmatprep.mubr.f32.mxu0 %v11996_v42 }
 0x450   : > { %5886 = vmatmul.mubr.f32.gmra.mrb[78].mxu1 %v12215_v12 }
 0x451   : > { %5891 = vmatprep.mubr.f32.mxu1 %v11996_v42 }
 0x452   : > { %4281 = vmatmul.mubr.f32.gmra.mrb[108].mxu0 %v12216_v33  ;;  %v12239_v33 = vld [vmem:[#allocation32_spill] sm:$0xff] }
 0x453   : > { %4286 = vmatprep.mubr.f32.mxu0 %v11996_v42 }
 0x454   : > { %5894 = vmatmul.mubr.f32.gmra.mrb[80].mxu1 %v12217_v52 }
 0x455   : > { %5899 = vmatprep.mubr.f32.mxu1 %v11996_v42 }
 0x456   : > { %4290 = vmatmul.mubr.f32.gmra.mrb[110].mxu0 %v12218_v15  ;;  %v12240_v15 = vld [vmem:[#allocation133_spill] sm:$0xff] }
 0x457   : > { %4295 = vmatprep.mubr.f32.mxu0 %v11996_v42 }
 0x458   : > { %5902 = vmatmul.mubr.f32.gmra.mrb[82].mxu1 %v12219_v14 }
 0x459   : > { %5907 = vmatprep.mubr.f32.mxu1 %v11996_v42 }
 0x45a   : > { %4299 = vmatmul.mubr.f32.gmra.mrb[112].mxu0 %v12220_v35  ;;  %v12241_v35 = vld [vmem:[#allocation35_spill] sm:$0xff] }
 0x45b   : > { %4304 = vmatprep.mubr.f32.mxu0 %v11996_v42 }
 0x45c   : > { %5910 = vmatmul.mubr.f32.gmra.mrb[84].mxu1 %v12221_v48 }
 0x45d   : > { %5915 = vmatprep.mubr.f32.mxu1 %v11996_v42 }
 0x45e   : > { %4308 = vmatmul.mubr.f32.gmra.mrb[114].mxu0 %v12222_v2  ;;  %v12242_v2 = vld [vmem:[#allocation21_spill] sm:$0xff] }
 0x45f   : > { %4313 = vmatprep.mubr.f32.mxu0 %v11996_v42 }
 0x460   : > { %5918 = vmatmul.mubr.f32.gmra.mrb[86].mxu1 %v12223_v26 }
 0x461   : > { %5923 = vmatprep.mubr.f32.mxu1 %v11996_v42 }
 0x462   : > { %4317 = vmatmul.mubr.f32.gmra.mrb[116].mxu0 %v12224_v16  ;;  %v12243_v16 = vld [vmem:[#allocation25_spill] sm:$0xff] }
 0x463   : > { %4322 = vmatprep.mubr.f32.mxu0 %v11996_v42 }
 0x464   : > { %5926 = vmatmul.mubr.f32.gmra.mrb[88].mxu1 %v12225_v7 }
 0x465   : > { %5931 = vmatprep.mubr.f32.mxu1 %v11996_v42 }
 0x466   : > { %4326 = vmatmul.mubr.f32.gmra.mrb[118].mxu0 %v12226_v32  ;;  %v12244_v32 = vld [vmem:[#allocation136_spill] sm:$0xff] }
 0x467   : > { %4331 = vmatprep.mubr.f32.mxu0 %v11996_v42 }
 0x468   : > { %5934 = vmatmul.mubr.f32.gmra.mrb[90].mxu1 %v12227_v6 }
 0x469   : > { %5939 = vmatprep.mubr.f32.mxu1 %v11996_v42 }
 0x46a   : > { %4335 = vmatmul.mubr.f32.gmra.mrb[120].mxu0 %v12228_v17  ;;  %v12245_v17 = vld [vmem:[#allocation16_spill] sm:$0xff] }
 0x46b   : > { %4340 = vmatprep.mubr.f32.mxu0 %v11996_v42 }
 0x46c   : > { %5942 = vmatmul.mubr.f32.gmra.mrb[92].mxu1 %v12229_v9 }
 0x46d   : > { %5947 = vmatprep.mubr.f32.mxu1 %v11996_v42 }
 0x46e   : > { %4344 = vmatmul.mubr.f32.gmra.mrb[122].mxu0 %v12230_v60  ;;  %v12246_v60 = vld [vmem:[#allocation33_spill] sm:$0xff] }
 0x46f   : > { %4426 = vmatprep.mubr.f32.mxu0 %v11996_v42 }
 0x470   : > { %5950 = vmatmul.mubr.f32.gmra.mrb[94].mxu1 %v12231_v25 }
 0x471   : > { %5955 = vmatprep.mubr.f32.mxu1 %v11996_v42 }
 0x472   : > { %4428 = vmatmul.mubr.f32.vlgmr.msra.gmra.mrb[68].mxu0 %v12232_v3 }
 0x473   : > { %7276 = vmatpush1.bf16.msra.mxu0 %v12233_v18  ;;  %4433 = vmatprep.mubr.f32.mxu0 %v11996_v42  ;;  %v12247_v18 = vld [vmem:[#allocation38_spill] sm:$0xff] }
 0x474   : > { %5958 = vmatmul.mubr.f32.gmra.mrb[96].mxu1 %v12234_v0 }
 0x475   : > { %5963 = vmatprep.mubr.f32.mxu1 %v11996_v42 }
 0x476   : > { %4435 = vmatmul.mubr.f32.gmra.mrb[70].mxu0 %v12235_v51 }
 0x477   : > { %4440 = vmatprep.mubr.f32.mxu0 %v11996_v42 }
 0x478   : > { %5966 = vmatmul.mubr.f32.gmra.mrb[98].mxu1 %v12236_v56 }
 0x479   : > { %5971 = vmatprep.mubr.f32.mxu1 %v11996_v42 }
 0x47a   : > { %4442 = vmatmul.mubr.f32.gmra.mrb[72].mxu0 %v12237_v39 }
 0x47b   : > { %4447 = vmatprep.mubr.f32.mxu0 %v11996_v42 }
 0x47c   : > { %5974 = vmatmul.mubr.f32.gmra.mrb[100].mxu1 %v12238_v8 }
 0x47d   : > { %5979 = vmatprep.mubr.f32.mxu1 %v11996_v42 }
 0x47e   : > { %4449 = vmatmul.mubr.f32.gmra.mrb[74].mxu0 %v12239_v33 }
 0x47f   : > { %4454 = vmatprep.mubr.f32.mxu0 %v11996_v42 }
 0x480   : > { %5982 = vmatmul.mubr.f32.gmra.mrb[102].mxu1 %v12240_v15 }
 0x481   : > { %5987 = vmatprep.mubr.f32.mxu1 %v11996_v42 }
 0x482   : > { %4456 = vmatmul.mubr.f32.gmra.mrb[76].mxu0 %v12241_v35 }
 0x483   : > { %4461 = vmatprep.mubr.f32.mxu0 %v11996_v42 }
 0x484   : > { %5990 = vmatmul.mubr.f32.gmra.mrb[104].mxu1 %v12242_v2 }
 0x485   : > { %5995 = vmatprep.mubr.f32.mxu1 %v11996_v42 }
 0x486   : > { %4463 = vmatmul.mubr.f32.gmra.mrb[78].mxu0 %v12243_v16 }
 0x487   : > { %4468 = vmatprep.mubr.f32.mxu0 %v11996_v42 }
 0x488   : > { %5998 = vmatmul.mubr.f32.gmra.mrb[106].mxu1 %v12244_v32 }
 0x489   : > { %6003 = vmatprep.mubr.f32.mxu1 %v11996_v42 }
 0x48a   : > { %4470 = vmatmul.mubr.f32.gmra.mrb[80].mxu0 %v12245_v17 }
 0x48b   : > { %4475 = vmatprep.mubr.f32.mxu0 %v11996_v42 }
 0x48c   : > { %6006 = vmatmul.mubr.f32.gmra.mrb[108].mxu1 %v12246_v60 }
 0x48d   : > { %6011 = vmatprep.mubr.f32.mxu1 %v11996_v42 }
 0x48e   : > { %4477 = vmatmul.mubr.f32.gmra.mrb[82].mxu0 %v12247_v18 }
 0x48f   : > { %4482 = vmatprep.mubr.f32.mxu0 %v11996_v42 }
 0x490   : > { %6014 = vmatmul.mubr.f32.gmra.mrb[110].mxu1 %v10636_v28 }
 0x491   : > { %6088 = vmatprep.mubr.f32.mxu1 %v11996_v42 }
 0x492   : > { %4484 = vmatmul.mubr.f32.gmra.mrb[84].mxu0 %v12248_v30 }
 0x493   : > { %4489 = vmatprep.mubr.f32.mxu0 %v11996_v42 }
 0x494   : > { %6092 = vmatmul.mubr.f32.vlgmr.msra.gmra.mrb[56].mxu1 %v12249_v55  ;;  %v12254_v55 = vand.u32 4294901760, %v12197_v31  ;;  %v12260_v31 = vand.u32 4294901760, %v12203_v5  ;;  %v12265_v5 = vld [vmem:[#allocation51_spill] sm:$0xff] }
 0x495   : > { %7296 = vmatpush1.bf16.msra.mxu1 %v12250_v49  ;;  %6097 = vmatprep.mubr.f32.mxu1 %v11996_v42  ;;  %v12255_v49 = vld [vmem:[#allocation45_spill] sm:$0xff] }
 0x496   : > { %7298 = vmatprep.subr.bf16.mxu1 %v12121_v43  ;;  %4491 = vmatmul.mubr.f32.gmra.mrb[86].mxu0 %v12251_v36  ;;  %v12256_v43 = vand.u32 4294901760, %v12199_v19  ;;  %v12261_v19 = vld [vmem:[#allocation48_spill] sm:$0xff] }
 0x497   : > { %4496 = vmatprep.mubr.f32.mxu0 %v11996_v42 }
 0x498   : > { %6101 = vmatmul.mubr.f32.gmra.mrb[58].mxu1 %v12252_v54  ;;  %v12257_v54 = vld [vmem:[#allocation46_spill] sm:$0xff] }
 0x499   : > { %6106 = vmatprep.mubr.f32.mxu1 %v11996_v42 }
 0x49a   : > { %4498 = vmatmul.mubr.f32.gmra.mrb[88].mxu0 %v12253_v57 }
 0x49b   : > { %4503 = vmatprep.mubr.f32.mxu0 %v11996_v42 }
 0x49c   : > { %6110 = vmatmul.mubr.f32.gmra.mrb[60].mxu1 %v12254_v55  ;;  %v12262_v55 = vand.u32 4294901760, %v12205_v29  ;;  %v12267_v29 = vld [vmem:[#allocation53_spill] sm:$0xff] }
 0x49d   : > { %6115 = vmatprep.mubr.f32.mxu1 %v11996_v42 }
 0x49e   : > { %4505 = vmatmul.mubr.f32.gmra.mrb[90].mxu0 %v12255_v49 }
 0x49f   : > { %4510 = vmatprep.mubr.f32.mxu0 %v11996_v42 }
 0x4a0   : > { %6119 = vmatmul.mubr.f32.gmra.mrb[62].mxu1 %v12256_v43  ;;  %v12264_v43 = vand.u32 4294901760, %v12207_v58  ;;  %v12269_v58 = vld [vmem:[#allocation54_spill] sm:$0xff] }
 0x4a1   : > { %6124 = vmatprep.mubr.f32.mxu1 %v11996_v42 }
 0x4a2   : > { %4512 = vmatmul.mubr.f32.gmra.mrb[92].mxu0 %v12257_v54 }
 0x4a3   : > { %4517 = vmatprep.mubr.f32.mxu0 %v11996_v42 }
 0x4a4   : > { %6128 = vmatmul.mubr.f32.gmra.mrb[64].mxu1 %v12258_v20  ;;  %v12266_v20 = vand.u32 4294901760, %v12209_v38  ;;  %v12271_v38 = vld [vmem:[#allocation57_spill] sm:$0xff] }
 0x4a5   : > { %6133 = vmatprep.mubr.f32.mxu1 %v11996_v42 }
 0x4a6   : > { %4519 = vmatmul.mubr.f32.gmra.mrb[94].mxu0 %v12259_v11 }
 0x4a7   : > { %4524 = vmatprep.mubr.f32.mxu0 %v11996_v42 }
 0x4a8   : > { %6137 = vmatmul.mubr.f32.gmra.mrb[66].mxu1 %v12260_v31  ;;  %v12268_v31 = vand.u32 4294901760, %v12211_v34  ;;  %v12273_v34 = vld [vmem:[#allocation59_spill] sm:$0xff] }
 0x4a9   : > { %6142 = vmatprep.mubr.f32.mxu1 %v11996_v42 }
 0x4aa   : > { %4526 = vmatmul.mubr.f32.gmra.mrb[96].mxu0 %v12261_v19 }
 0x4ab   : > { %4531 = vmatprep.mubr.f32.mxu0 %v11996_v42 }
 0x4ac   : > { %6146 = vmatmul.mubr.f32.gmra.mrb[68].mxu1 %v12262_v55  ;;  %v12270_v55 = vand.u32 4294901760, %v12213_v22  ;;  %v12275_v22 = vld [vmem:[#allocation61_spill] sm:$0xff] }
 0x4ad   : > { %6151 = vmatprep.mubr.f32.mxu1 %v11996_v42 }
 0x4ae   : > { %4533 = vmatmul.mubr.f32.gmra.mrb[98].mxu0 %v12263_v13 }
 0x4af   : > { %4538 = vmatprep.mubr.f32.mxu0 %v11996_v42 }
 0x4b0   : > { %6155 = vmatmul.mubr.f32.gmra.mrb[70].mxu1 %v12264_v43  ;;  %v12272_v43 = vand.u32 4294901760, %v12215_v12  ;;  %v12277_v12 = vld [vmem:[#allocation63_spill] sm:$0xff] }
 0x4b1   : > { %6160 = vmatprep.mubr.f32.mxu1 %v11996_v42 }
 0x4b2   : > { %4540 = vmatmul.mubr.f32.gmra.mrb[100].mxu0 %v12265_v5 }
 0x4b3   : > { %4545 = vmatprep.mubr.f32.mxu0 %v11996_v42 }
 0x4b4   : > { %6164 = vmatmul.mubr.f32.gmra.mrb[72].mxu1 %v12266_v20  ;;  %v12274_v20 = vand.u32 4294901760, %v12217_v52  ;;  %v12279_v52 = vld [vmem:[#allocation64_spill] sm:$0xff] }
 0x4b5   : > { %6169 = vmatprep.mubr.f32.mxu1 %v11996_v42 }
 0x4b6   : > { %4547 = vmatmul.mubr.f32.gmra.mrb[102].mxu0 %v12267_v29 }
 0x4b7   : > { %4552 = vmatprep.mubr.f32.mxu0 %v11996_v42 }
 0x4b8   : > { %6173 = vmatmul.mubr.f32.gmra.mrb[74].mxu1 %v12268_v31  ;;  %v12276_v31 = vand.u32 4294901760, %v12219_v14  ;;  %v12281_v14 = vld [vmem:[#allocation67_spill] sm:$0xff] }
 0x4b9   : > { %6178 = vmatprep.mubr.f32.mxu1 %v11996_v42 }
 0x4ba   : > { %4554 = vmatmul.mubr.f32.gmra.mrb[104].mxu0 %v12269_v58 }
 0x4bb   : > { %4559 = vmatprep.mubr.f32.mxu0 %v11996_v42 }
 0x4bc   : > { %6182 = vmatmul.mubr.f32.gmra.mrb[76].mxu1 %v12270_v55  ;;  %v12278_v55 = vand.u32 4294901760, %v12221_v48  ;;  %v12283_v48 = vld [vmem:[#allocation69_spill] sm:$0xff] }
 0x4bd   : > { %6187 = vmatprep.mubr.f32.mxu1 %v11996_v42 }
 0x4be   : > { %4561 = vmatmul.mubr.f32.gmra.mrb[106].mxu0 %v12271_v38 }
 0x4bf   : > { %4566 = vmatprep.mubr.f32.mxu0 %v11996_v42 }
 0x4c0   : > { %6191 = vmatmul.mubr.f32.gmra.mrb[78].mxu1 %v12272_v43  ;;  %v12280_v43 = vand.u32 4294901760, %v12223_v26  ;;  %v12285_v26 = vld [vmem:[#allocation71_spill] sm:$0xff] }
 0x4c1   : > { %6196 = vmatprep.mubr.f32.mxu1 %v11996_v42 }
 0x4c2   : > { %4568 = vmatmul.mubr.f32.gmra.mrb[108].mxu0 %v12273_v34 }
 0x4c3   : > { %4573 = vmatprep.mubr.f32.mxu0 %v11996_v42 }
 0x4c4   : > { %6200 = vmatmul.mubr.f32.gmra.mrb[80].mxu1 %v12274_v20  ;;  %v12282_v20 = vand.u32 4294901760, %v12225_v7  ;;  %v12287_v7 = vld [vmem:[#allocation73_spill] sm:$0xff] }
 0x4c5   : > { %6205 = vmatprep.mubr.f32.mxu1 %v11996_v42 }
 0x4c6   : > { %4575 = vmatmul.mubr.f32.gmra.mrb[110].mxu0 %v12275_v22 }
 0x4c7   : > { %4580 = vmatprep.mubr.f32.mxu0 %v11996_v42 }
 0x4c8   : > { %6209 = vmatmul.mubr.f32.gmra.mrb[82].mxu1 %v12276_v31  ;;  %v12284_v31 = vand.u32 4294901760, %v12227_v6  ;;  %v12289_v6 = vand.u32 4294901760, %v12234_v0  ;;  %v12293_v0 = vand.u32 4294901760, %v12242_v2 }
 0x4c9   : > { %6214 = vmatprep.mubr.f32.mxu1 %v11996_v42 }
 0x4ca   : > { %4582 = vmatmul.mubr.f32.gmra.mrb[112].mxu0 %v12277_v12 }
 0x4cb   : > { %4587 = vmatprep.mubr.f32.mxu0 %v11996_v42 }
 0x4cc   : > { %6218 = vmatmul.mubr.f32.gmra.mrb[84].mxu1 %v12278_v55  ;;  %v12286_v55 = vand.u32 4294901760, %v12229_v9  ;;  %v12290_v9 = vand.u32 4294901760, %v12236_v56  ;;  %v12295_v56 = vand.u32 4294901760, %v12246_v60 }
 0x4cd   : > { %6223 = vmatprep.mubr.f32.mxu1 %v11996_v42 }
 0x4ce   : > { %4589 = vmatmul.mubr.f32.gmra.mrb[114].mxu0 %v12279_v52 }
 0x4cf   : > { %4594 = vmatprep.mubr.f32.mxu0 %v11996_v42 }
 0x4d0   : > { %6227 = vmatmul.mubr.f32.gmra.mrb[86].mxu1 %v12280_v43  ;;  %v12288_v43 = vand.u32 4294901760, %v12231_v25  ;;  %v12291_v25 = vand.u32 4294901760, %v12238_v8  ;;  %v12302_v8 = vld [vmem:[#allocation134_spill] sm:$0xff] }
 0x4d1   : > { %6232 = vmatprep.mubr.f32.mxu1 %v11996_v42 }
 0x4d2   : > { %4596 = vmatmul.mubr.f32.gmra.mrb[116].mxu0 %v12281_v14 }
 0x4d3   : > { %4601 = vmatprep.mubr.f32.mxu0 %v11996_v42 }
 0x4d4   : > { %6236 = vmatmul.mubr.f32.gmra.mrb[88].mxu1 %v12282_v20 }
 0x4d5   : > { %6241 = vmatprep.mubr.f32.mxu1 %v11996_v42 }
 0x4d6   : > { %4603 = vmatmul.mubr.f32.gmra.mrb[118].mxu0 %v12283_v48 }
 0x4d7   : > { %4608 = vmatprep.mubr.f32.mxu0 %v11996_v42 }
 0x4d8   : > { %6245 = vmatmul.mubr.f32.gmra.mrb[90].mxu1 %v12284_v31 }
 0x4d9   : > { %6250 = vmatprep.mubr.f32.mxu1 %v11996_v42 }
 0x4da   : > { %4610 = vmatmul.mubr.f32.gmra.mrb[120].mxu0 %v12285_v26 }
 0x4db   : > { %4615 = vmatprep.mubr.f32.mxu0 %v11996_v42 }
 0x4dc   : > { %6254 = vmatmul.mubr.f32.gmra.mrb[92].mxu1 %v12286_v55 }
 0x4dd   : > { %6259 = vmatprep.mubr.f32.mxu1 %v11996_v42 }
 0x4de   : > { %4617 = vmatmul.mubr.f32.gmra.mrb[122].mxu0 %v12287_v7 }
 0x4df   : > { %4691 = vmatprep.mubr.f32.mxu0 %v11996_v42 }
 0x4e0   : > { %6263 = vmatmul.mubr.f32.gmra.mrb[94].mxu1 %v12288_v43 }
 0x4e1   : > { %6268 = vmatprep.mubr.f32.mxu1 %v11996_v42 }
 0x4e2   : > { %4693 = vmatmul.mubr.f32.vlgmr.msra.gmra.mrb[68].mxu0 %v12232_v3  ;;  %v12292_v3 = vand.u32 4294901760, %v12240_v15  ;;  %v12304_v15 = vld [vmem:[#allocation137_spill] sm:$0xff] }
 0x4e3   : > { %4698 = vmatprep.mubr.f32.mxu0 %v11996_v42 }
 0x4e4   : > { %6272 = vmatmul.mubr.f32.gmra.mrb[96].mxu1 %v12289_v6 }
 0x4e5   : > { %6277 = vmatprep.mubr.f32.mxu1 %v11996_v42 }
 0x4e6   : > { %4700 = vmatmul.mubr.f32.gmra.mrb[70].mxu0 %v12235_v51  ;;  %v12294_v51 = vand.u32 4294901760, %v12244_v32 }
 0x4e7   : > { %4705 = vmatprep.mubr.f32.mxu0 %v11996_v42 }
 0x4e8   : > { %6281 = vmatmul.mubr.f32.gmra.mrb[98].mxu1 %v12290_v9 }
 0x4e9   : > { %6286 = vmatprep.mubr.f32.mxu1 %v11996_v42 }
 0x4ea   : > { %4707 = vmatmul.mubr.f32.gmra.mrb[72].mxu0 %v12237_v39  ;;  %v12296_v39 = vand.u32 4294901760, %v10636_v28  ;;  %v12298_v28 = vld [vmem:[#allocation122_spill] sm:$0xff] }
 0x4eb   : > { %4712 = vmatprep.mubr.f32.mxu0 %v11996_v42 }
 0x4ec   : > { %6290 = vmatmul.mubr.f32.gmra.mrb[100].mxu1 %v12291_v25 }
 0x4ed   : > { %6295 = vmatprep.mubr.f32.mxu1 %v11996_v42 }
 0x4ee   : > { %4714 = vmatmul.mubr.f32.gmra.mrb[74].mxu0 %v12239_v33  ;;  %v12303_v33 = vld [vmem:[#allocation135_spill] sm:$0xff] }
 0x4ef   : > { %4719 = vmatprep.mubr.f32.mxu0 %v11996_v42 }
 0x4f0   : > { %6299 = vmatmul.mubr.f32.gmra.mrb[102].mxu1 %v12292_v3 }
 0x4f1   : > { %6304 = vmatprep.mubr.f32.mxu1 %v11996_v42 }
 0x4f2   : > { %4721 = vmatmul.mubr.f32.gmra.mrb[76].mxu0 %v12241_v35  ;;  %v12305_v35 = vld [vmem:[#allocation138_spill] sm:$0xff] }
 0x4f3   : > { %4726 = vmatprep.mubr.f32.mxu0 %v11996_v42 }
 0x4f4   : > { %6308 = vmatmul.mubr.f32.gmra.mrb[104].mxu1 %v12293_v0 }
 0x4f5   : > { %6313 = vmatprep.mubr.f32.mxu1 %v11996_v42 }
 0x4f6   : > { %4728 = vmatmul.mubr.f32.gmra.mrb[78].mxu0 %v12243_v16 }
 0x4f7   : > { %4733 = vmatprep.mubr.f32.mxu0 %v11996_v42 }
 0x4f8   : > { %6317 = vmatmul.mubr.f32.gmra.mrb[106].mxu1 %v12294_v51 }
 0x4f9   : > { %6322 = vmatprep.mubr.f32.mxu1 %v11996_v42 }
 0x4fa   : > { %4735 = vmatmul.mubr.f32.gmra.mrb[80].mxu0 %v12245_v17 }
 0x4fb   : > { %4740 = vmatprep.mubr.f32.mxu0 %v11996_v42 }
 0x4fc   : > { %6326 = vmatmul.mubr.f32.gmra.mrb[108].mxu1 %v12295_v56 }
 0x4fd   : > { %6331 = vmatprep.mubr.f32.mxu1 %v11996_v42 }
 0x4fe   : > { %4742 = vmatmul.mubr.f32.gmra.mrb[82].mxu0 %v12247_v18 }
 0x4ff   : > { %4747 = vmatprep.mubr.f32.mxu0 %v11996_v42 }
 0x500   : > { %6335 = vmatmul.mubr.f32.gmra.mrb[110].mxu1 %v12296_v39 }
 0x501   : > { %6417 = vmatprep.mubr.f32.mxu1 %v11996_v42 }
 0x502   : > { %4749 = vmatmul.mubr.f32.gmra.mrb[84].mxu0 %v12248_v30  ;;  %v12300_v30 = vld [vmem:[#allocation130_spill] sm:$0xff] }
 0x503   : > { %4754 = vmatprep.mubr.f32.mxu0 %v11996_v42 }
 0x504   : > { %6419 = vmatmul.mubr.f32.vlgmr.msra.gmra.mrb[56].mxu1 %v10109_v59 }
 0x505   : > { %7300 = vmatpush1.bf16.msra.mxu1 %v12192_v45  ;;  %6424 = vmatprep.mubr.f32.mxu1 %v11996_v42  ;;  %v12301_v45 = vld [vmem:[#allocation131_spill] sm:$0xff] }
 0x506   : > { %4756 = vmatmul.mubr.f32.gmra.mrb[86].mxu0 %v12251_v36  ;;  %v12299_v36 = vld [vmem:[#allocation123_spill] sm:$0xff] }
 0x507   : > { %4761 = vmatprep.mubr.f32.mxu0 %v11996_v42 }
 0x508   : > { %6426 = vmatmul.mubr.f32.gmra.mrb[58].mxu1 %v10126_v23 }
 0x509   : > { %6431 = vmatprep.mubr.f32.mxu1 %v11996_v42 }
 0x50a   : > { %4763 = vmatmul.mubr.f32.gmra.mrb[88].mxu0 %v12253_v57  ;;  %v12297_v57 = vld [vmem:[#allocation120_spill] sm:$0xff] }
 0x50b   : > { %4768 = vmatprep.mubr.f32.mxu0 %v11996_v42 }
 0x50c   : > { %6433 = vmatmul.mubr.f32.gmra.mrb[60].mxu1 %v10144_v41 }
 0x50d   : > { %6438 = vmatprep.mubr.f32.mxu1 %v11996_v42 }
 0x50e   : > { %4770 = vmatmul.mubr.f32.gmra.mrb[90].mxu0 %v12255_v49 }
 0x50f   : > { %4775 = vmatprep.mubr.f32.mxu0 %v11996_v42 }
 0x510   : > { %6440 = vmatmul.mubr.f32.gmra.mrb[62].mxu1 %v10157_v46 }
 0x511   : > { %6445 = vmatprep.mubr.f32.mxu1 %v11996_v42 }
 0x512   : > { %4777 = vmatmul.mubr.f32.gmra.mrb[92].mxu0 %v12257_v54 }
 0x513   : > { %4782 = vmatprep.mubr.f32.mxu0 %v11996_v42 }
 0x514   : > { %6447 = vmatmul.mubr.f32.gmra.mrb[64].mxu1 %v10181_v24 }
 0x515   : > { %6452 = vmatprep.mubr.f32.mxu1 %v11996_v42 }
 0x516   : > { %4784 = vmatmul.mubr.f32.gmra.mrb[94].mxu0 %v12259_v11 }
 0x517   : > { %4789 = vmatprep.mubr.f32.mxu0 %v11996_v42 }
 0x518   : > { %6454 = vmatmul.mubr.f32.gmra.mrb[66].mxu1 %v10206_v44 }
 0x519   : > { %6459 = vmatprep.mubr.f32.mxu1 %v11996_v42 }
 0x51a   : > { %4791 = vmatmul.mubr.f32.gmra.mrb[96].mxu0 %v12261_v19 }
 0x51b   : > { %4796 = vmatprep.mubr.f32.mxu0 %v11996_v42 }
 0x51c   : > { %6461 = vmatmul.mubr.f32.gmra.mrb[68].mxu1 %v10230_v37 }
 0x51d   : > { %6466 = vmatprep.mubr.f32.mxu1 %v11996_v42 }
 0x51e   : > { %4798 = vmatmul.mubr.f32.gmra.mrb[98].mxu0 %v12263_v13 }
 0x51f   : > { %4803 = vmatprep.mubr.f32.mxu0 %v11996_v42 }
 0x520   : > { %6468 = vmatmul.mubr.f32.gmra.mrb[70].mxu1 %v10250_v1 }
 0x521   : > { %6473 = vmatprep.mubr.f32.mxu1 %v11996_v42 }
 0x522   : > { %4805 = vmatmul.mubr.f32.gmra.mrb[100].mxu0 %v12265_v5 }
 0x523   : > { %4810 = vmatprep.mubr.f32.mxu0 %v11996_v42 }
 0x524   : > { %6475 = vmatmul.mubr.f32.gmra.mrb[72].mxu1 %v10263_v53 }
 0x525   : > { %6480 = vmatprep.mubr.f32.mxu1 %v11996_v42 }
 0x526   : > { %4812 = vmatmul.mubr.f32.gmra.mrb[102].mxu0 %v12267_v29 }
 0x527   : > { %4817 = vmatprep.mubr.f32.mxu0 %v11996_v42 }
 0x528   : > { %6482 = vmatmul.mubr.f32.gmra.mrb[74].mxu1 %v10286_v40 }
 0x529   : > { %6487 = vmatprep.mubr.f32.mxu1 %v11996_v42 }
 0x52a   : > { %4819 = vmatmul.mubr.f32.gmra.mrb[104].mxu0 %v12269_v58 }
 0x52b   : > { %4824 = vmatprep.mubr.f32.mxu0 %v11996_v42 }
 0x52c   : > { %6489 = vmatmul.mubr.f32.gmra.mrb[76].mxu1 %v12129_v10 }
 0x52d   : > { %6494 = vmatprep.mubr.f32.mxu1 %v11996_v42 }
 0x52e   : > { %4826 = vmatmul.mubr.f32.gmra.mrb[106].mxu0 %v12271_v38 }
 0x52f   : > { %4831 = vmatprep.mubr.f32.mxu0 %v11996_v42 }
 0x530   : > { %6496 = vmatmul.mubr.f32.gmra.mrb[78].mxu1 %v12133_v27 }
 0x531   : > { %6501 = vmatprep.mubr.f32.mxu1 %v11996_v42 }
 0x532   : > { %4833 = vmatmul.mubr.f32.gmra.mrb[108].mxu0 %v12273_v34 }
 0x533   : > { %4838 = vmatprep.mubr.f32.mxu0 %v11996_v42 }
 0x534   : > { %6503 = vmatmul.mubr.f32.gmra.mrb[80].mxu1 %v12137_v50 }
 0x535   : > { %6508 = vmatprep.mubr.f32.mxu1 %v11996_v42 }
 0x536   : > { %4840 = vmatmul.mubr.f32.gmra.mrb[110].mxu0 %v12275_v22 }
 0x537   : > { %4845 = vmatprep.mubr.f32.mxu0 %v11996_v42 }
 0x538   : > { %6510 = vmatmul.mubr.f32.gmra.mrb[82].mxu1 %v12141_v62 }
 0x539   : > { %6515 = vmatprep.mubr.f32.mxu1 %v11996_v42 }
 0x53a   : > { %4847 = vmatmul.mubr.f32.gmra.mrb[112].mxu0 %v12277_v12 }
 0x53b   : > { %4852 = vmatprep.mubr.f32.mxu0 %v11996_v42 }
 0x53c   : > { %6517 = vmatmul.mubr.f32.gmra.mrb[84].mxu1 %v12145_v47 }
 0x53d   : > { %6522 = vmatprep.mubr.f32.mxu1 %v11996_v42 }
 0x53e   : > { %4854 = vmatmul.mubr.f32.gmra.mrb[114].mxu0 %v12279_v52 }
 0x53f   : > { %4859 = vmatprep.mubr.f32.mxu0 %v11996_v42 }
 0x540   : > { %6524 = vmatmul.mubr.f32.gmra.mrb[86].mxu1 %v12149_v63 }
 0x541   : > { %6529 = vmatprep.mubr.f32.mxu1 %v11996_v42 }
 0x542   : > { %4861 = vmatmul.mubr.f32.gmra.mrb[116].mxu0 %v12281_v14 }
 0x543   : > { %4866 = vmatprep.mubr.f32.mxu0 %v11996_v42 }
 0x544   : > { %6531 = vmatmul.mubr.f32.gmra.mrb[88].mxu1 %v12297_v57 }
 0x545   : > { %6536 = vmatprep.mubr.f32.mxu1 %v11996_v42 }
 0x546   : > { %4868 = vmatmul.mubr.f32.gmra.mrb[118].mxu0 %v12283_v48 }
 0x547   : > { %4873 = vmatprep.mubr.f32.mxu0 %v11996_v42 }
 0x548   : > { %6538 = vmatmul.mubr.f32.gmra.mrb[90].mxu1 %v12298_v28 }
 0x549   : > { %6543 = vmatprep.mubr.f32.mxu1 %v11996_v42 }
 0x54a   : > { %4875 = vmatmul.mubr.f32.gmra.mrb[120].mxu0 %v12285_v26 }
 0x54b   : > { %4880 = vmatprep.mubr.f32.mxu0 %v11996_v42 }
 0x54c   : > { %6545 = vmatmul.mubr.f32.gmra.mrb[92].mxu1 %v12299_v36 }
 0x54d   : > { %6550 = vmatprep.mubr.f32.mxu1 %v11996_v42 }
 0x54e   : > { %4882 = vmatmul.mubr.f32.gmra.mrb[122].mxu0 %v12287_v7 }
 0x550   : > { %6552 = vmatmul.mubr.f32.gmra.mrb[94].mxu1 %v12165_v21 }
 0x551   : > { %6557 = vmatprep.mubr.f32.mxu1 %v11996_v42 }
 0x554   : > { %6559 = vmatmul.mubr.f32.gmra.mrb[96].mxu1 %v10510_v4 }
 0x555   : > { %6564 = vmatprep.mubr.f32.mxu1 %v11996_v42 }
 0x558   : > { %6566 = vmatmul.mubr.f32.gmra.mrb[98].mxu1 %v10530_v61 }
 0x559   : > { %6571 = vmatprep.mubr.f32.mxu1 %v11996_v42 }
 0x55c   : > { %6573 = vmatmul.mubr.f32.gmra.mrb[100].mxu1 %v12300_v30 }
 0x55d   : > { %6578 = vmatprep.mubr.f32.mxu1 %v11996_v42 }
 0x560   : > { %6580 = vmatmul.mubr.f32.gmra.mrb[102].mxu1 %v12301_v45 }
 0x561   : > { %6585 = vmatprep.mubr.f32.mxu1 %v11996_v42 }
 0x564   : > { %6587 = vmatmul.mubr.f32.gmra.mrb[104].mxu1 %v12302_v8 }
 0x565   : > { %6592 = vmatprep.mubr.f32.mxu1 %v11996_v42 }
 0x568   : > { %6594 = vmatmul.mubr.f32.gmra.mrb[106].mxu1 %v12303_v33 }
 0x569   : > { %6599 = vmatprep.mubr.f32.mxu1 %v11996_v42 }
 0x56c   : > { %6601 = vmatmul.mubr.f32.gmra.mrb[108].mxu1 %v12304_v15 }
 0x56d   : > { %6606 = vmatprep.mubr.f32.mxu1 %v11996_v42 }
 0x570   : > { %6608 = vmatmul.mubr.f32.gmra.mrb[110].mxu1 %v12305_v35 }
 0x571   : > { %6682 = vmatprep.mubr.f32.mxu1 %v11996_v42 }
 0x574   : > { %6684 = vmatmul.mubr.f32.vlgmr.msra.gmra.mrb[56].mxu1 %v10109_v59 }
 0x575   : > { %6689 = vmatprep.mubr.f32.mxu1 %v11996_v42 }
 0x578   : > { %6691 = vmatmul.mubr.f32.gmra.mrb[58].mxu1 %v10126_v23 }
 0x579   : > { %6696 = vmatprep.mubr.f32.mxu1 %v11996_v42 }
 0x57c   : > { %6698 = vmatmul.mubr.f32.gmra.mrb[60].mxu1 %v10144_v41 }
 0x57d   : > { %6703 = vmatprep.mubr.f32.mxu1 %v11996_v42 }
 0x580   : > { %6705 = vmatmul.mubr.f32.gmra.mrb[62].mxu1 %v10157_v46 }
 0x581   : > { %6710 = vmatprep.mubr.f32.mxu1 %v11996_v42 }
 0x584   : > { %6712 = vmatmul.mubr.f32.gmra.mrb[64].mxu1 %v10181_v24 }
 0x585   : > { %6717 = vmatprep.mubr.f32.mxu1 %v11996_v42 }
 0x588   : > { %6719 = vmatmul.mubr.f32.gmra.mrb[66].mxu1 %v10206_v44 }
 0x589   : > { %6724 = vmatprep.mubr.f32.mxu1 %v11996_v42 }
 0x58c   : > { %6726 = vmatmul.mubr.f32.gmra.mrb[68].mxu1 %v10230_v37 }
 0x58d   : > { %6731 = vmatprep.mubr.f32.mxu1 %v11996_v42 }
 0x590   : > { %6733 = vmatmul.mubr.f32.gmra.mrb[70].mxu1 %v10250_v1 }
 0x591   : > { %6738 = vmatprep.mubr.f32.mxu1 %v11996_v42 }
 0x594   : > { %6740 = vmatmul.mubr.f32.gmra.mrb[72].mxu1 %v10263_v53 }
 0x595   : > { %6745 = vmatprep.mubr.f32.mxu1 %v11996_v42 }
 0x598   : > { %6747 = vmatmul.mubr.f32.gmra.mrb[74].mxu1 %v10286_v40 }
 0x599   : > { %6752 = vmatprep.mubr.f32.mxu1 %v11996_v42 }
 0x59c   : > { %6754 = vmatmul.mubr.f32.gmra.mrb[76].mxu1 %v12129_v10 }
 0x59d   : > { %6759 = vmatprep.mubr.f32.mxu1 %v11996_v42 }
 0x5a0   : > { %6761 = vmatmul.mubr.f32.gmra.mrb[78].mxu1 %v12133_v27 }
 0x5a1   : > { %6766 = vmatprep.mubr.f32.mxu1 %v11996_v42 }
 0x5a4   : > { %6768 = vmatmul.mubr.f32.gmra.mrb[80].mxu1 %v12137_v50 }
 0x5a5   : > { %6773 = vmatprep.mubr.f32.mxu1 %v11996_v42 }
 0x5a8   : > { %6775 = vmatmul.mubr.f32.gmra.mrb[82].mxu1 %v12141_v62 }
 0x5a9   : > { %6780 = vmatprep.mubr.f32.mxu1 %v11996_v42 }
 0x5ac   : > { %6782 = vmatmul.mubr.f32.gmra.mrb[84].mxu1 %v12145_v47 }
 0x5ad   : > { %6787 = vmatprep.mubr.f32.mxu1 %v11996_v42 }
 0x5b0   : > { %6789 = vmatmul.mubr.f32.gmra.mrb[86].mxu1 %v12149_v63 }
 0x5b1   : > { %6794 = vmatprep.mubr.f32.mxu1 %v11996_v42 }
 0x5b4   : > { %6796 = vmatmul.mubr.f32.gmra.mrb[88].mxu1 %v12297_v57 }
 0x5b5   : > { %v4694_v23 = vpop.f32.mrb[68].mxu0  ;;  %6801 = vmatprep.mubr.f32.mxu1 %v11996_v42 }
 0x5b6   : > { %v7415_v59 = vadd.f32 0.19642857, %v4694_v23  ;;  %v4696_v44 = vpop.f32.mrb[69].mxu0 }
 0x5b7   : > { %v7416_v41 = vadd.f32 0.19642857, %v4696_v44 }
 0x5b8   : > { %7062 = vst [vmem:[%s10657_s8 + $0x1c0] sm:$0xff] %v7415_v59  ;;  %6803 = vmatmul.mubr.f32.gmra.mrb[90].mxu1 %v12298_v28 }
 0x5b9   : > { %7063 = vst.msk [vmem:[%s10657_s8 + $0x1c8] sm:$0xff] %vm953_vm1, %v7416_v41  ;;  %v4701_v1 = vpop.f32.mrb[70].mxu0  ;;  %6808 = vmatprep.mubr.f32.mxu1 %v11996_v42 }
 0x5ba   : > { %v7417_v46 = vadd.f32 0.19642857, %v4701_v1  ;;  %v4703_v24 = vpop.f32.mrb[71].mxu0 }
 0x5bb   : > { %v7418_v53 = vadd.f32 0.19642857, %v4703_v24 }
 0x5bc   : > { %7064 = vst [vmem:[%s10657_s8 + $0x1d0] sm:$0xff] %v7417_v46  ;;  %6810 = vmatmul.mubr.f32.gmra.mrb[92].mxu1 %v12299_v36 }
 0x5bd   : > { %7065 = vst.msk [vmem:[%s10657_s8 + $0x1d8] sm:$0xff] %vm953_vm1, %v7418_v53  ;;  %v4708_v37 = vpop.f32.mrb[72].mxu0  ;;  %6815 = vmatprep.mubr.f32.mxu1 %v11996_v42 }
 0x5be   : > { %v7419_v40 = vadd.f32 0.19642857, %v4708_v37  ;;  %v4710_v10 = vpop.f32.mrb[73].mxu0 }
 0x5bf   : > { %v7420_v27 = vadd.f32 0.19642857, %v4710_v10 }
 0x5c0   : > { %7066 = vst [vmem:[%s10657_s8 + $0x1e0] sm:$0xff] %v7419_v40  ;;  %6817 = vmatmul.mubr.f32.gmra.mrb[94].mxu1 %v12165_v21 }
 0x5c1   : > { %7067 = vst.msk [vmem:[%s10657_s8 + $0x1e8] sm:$0xff] %vm953_vm1, %v7420_v27  ;;  %v4715_v50 = vpop.f32.mrb[74].mxu0  ;;  %6822 = vmatprep.mubr.f32.mxu1 %v11996_v42 }
 0x5c2   : > { %v7421_v62 = vadd.f32 0.19642857, %v4715_v50  ;;  %v4717_v47 = vpop.f32.mrb[75].mxu0 }
 0x5c3   : > { %v7422_v63 = vadd.f32 0.19642857, %v4717_v47 }
 0x5c4   : > { %7068 = vst [vmem:[%s10657_s8 + $0x1f0] sm:$0xff] %v7421_v62  ;;  %6824 = vmatmul.mubr.f32.gmra.mrb[96].mxu1 %v10510_v4 }
 0x5c5   : > { %7069 = vst.msk [vmem:[%s10657_s8 + $0x1f8] sm:$0xff] %vm953_vm1, %v7422_v63  ;;  %v4722_v2 = vpop.f32.mrb[76].mxu0  ;;  %6829 = vmatprep.mubr.f32.mxu1 %v11996_v42 }
 0x5c6   : > { %v7423_v21 = vadd.f32 0.19642857, %v4722_v2  ;;  %v4724_v16 = vpop.f32.mrb[77].mxu0 }
 0x5c7   : > { %v7424_v32 = vadd.f32 0.19642857, %v4724_v16 }
 0x5c8   : > { %7070 = vst [vmem:[%s10657_s8 + $0x200] sm:$0xff] %v7423_v21  ;;  %6831 = vmatmul.mubr.f32.gmra.mrb[98].mxu1 %v10530_v61 }
 0x5c9   : > { %7071 = vst.msk [vmem:[%s10657_s8 + $0x208] sm:$0xff] %vm953_vm1, %v7424_v32  ;;  %v4729_v17 = vpop.f32.mrb[78].mxu0  ;;  %6836 = vmatprep.mubr.f32.mxu1 %v11996_v42 }
 0x5ca   : > { %v7425_v4 = vadd.f32 0.19642857, %v4729_v17  ;;  %v4731_v60 = vpop.f32.mrb[79].mxu0 }
 0x5cb   : > { %v7426_v18 = vadd.f32 0.19642857, %v4731_v60 }
 0x5cc   : > { %7072 = vst [vmem:[%s10657_s8 + $0x210] sm:$0xff] %v7425_v4  ;;  %6838 = vmatmul.mubr.f32.gmra.mrb[100].mxu1 %v12300_v30 }
 0x5cd   : > { %7073 = vst.msk [vmem:[%s10657_s8 + $0x218] sm:$0xff] %vm953_vm1, %v7426_v18  ;;  %v4736_v49 = vpop.f32.mrb[80].mxu0  ;;  %6843 = vmatprep.mubr.f32.mxu1 %v11996_v42 }
 0x5ce   : > { %v7427_v61 = vadd.f32 0.19642857, %v4736_v49  ;;  %v4738_v54 = vpop.f32.mrb[81].mxu0 }
 0x5cf   : > { %v7428_v11 = vadd.f32 0.19642857, %v4738_v54 }
 0x5d0   : > { %7074 = vst [vmem:[%s10657_s8 + $0x220] sm:$0xff] %v7427_v61  ;;  %6845 = vmatmul.mubr.f32.gmra.mrb[102].mxu1 %v12301_v45 }
 0x5d1   : > { %7075 = vst.msk [vmem:[%s10657_s8 + $0x228] sm:$0xff] %vm953_vm1, %v7428_v11  ;;  %v4743_v19 = vpop.f32.mrb[82].mxu0  ;;  %6850 = vmatprep.mubr.f32.mxu1 %v11996_v42 }
 0x5d2   : > { %v7429_v13 = vadd.f32 0.19642857, %v4743_v19  ;;  %v4745_v5 = vpop.f32.mrb[83].mxu0 }
 0x5d3   : > { %v7430_v29 = vadd.f32 0.19642857, %v4745_v5 }
 0x5d4   : > { %7076 = vst [vmem:[%s10657_s8 + $0x230] sm:$0xff] %v7429_v13  ;;  %6852 = vmatmul.mubr.f32.gmra.mrb[104].mxu1 %v12302_v8 }
 0x5d5   : > { %7077 = vst.msk [vmem:[%s10657_s8 + $0x238] sm:$0xff] %vm953_vm1, %v7430_v29  ;;  %v4750_v58 = vpop.f32.mrb[84].mxu0  ;;  %6857 = vmatprep.mubr.f32.mxu1 %v11996_v42 }
 0x5d6   : > { %v7431_v38 = vadd.f32 0.19642857, %v4750_v58  ;;  %v4752_v34 = vpop.f32.mrb[85].mxu0 }
 0x5d7   : > { %v7432_v22 = vadd.f32 0.19642857, %v4752_v34 }
 0x5d8   : > { %7078 = vst [vmem:[%s10657_s8 + $0x240] sm:$0xff] %v7431_v38  ;;  %6859 = vmatmul.mubr.f32.gmra.mrb[106].mxu1 %v12303_v33 }
 0x5d9   : > { %7079 = vst.msk [vmem:[%s10657_s8 + $0x248] sm:$0xff] %vm953_vm1, %v7432_v22  ;;  %v4757_v12 = vpop.f32.mrb[86].mxu0  ;;  %6864 = vmatprep.mubr.f32.mxu1 %v11996_v42 }
 0x5da   : > { %v7433_v52 = vadd.f32 0.19642857, %v4757_v12  ;;  %v4759_v14 = vpop.f32.mrb[87].mxu0 }
 0x5db   : > { %v7434_v20 = vadd.f32 0.19642857, %v4759_v14 }
 0x5dc   : > { %7080 = vst [vmem:[%s10657_s8 + $0x250] sm:$0xff] %v7433_v52  ;;  %6866 = vmatmul.mubr.f32.gmra.mrb[108].mxu1 %v12304_v15 }
 0x5dd   : > { %7081 = vst.msk [vmem:[%s10657_s8 + $0x258] sm:$0xff] %vm953_vm1, %v7434_v20  ;;  %v4764_v48 = vpop.f32.mrb[88].mxu0  ;;  %6871 = vmatprep.mubr.f32.mxu1 %v11996_v42 }
 0x5de   : > { %v7435_v31 = vadd.f32 0.19642857, %v4764_v48  ;;  %v4766_v26 = vpop.f32.mrb[89].mxu0 }
 0x5df   : > { %v7436_v55 = vadd.f32 0.19642857, %v4766_v26 }
 0x5e0   : > { %7082 = vst [vmem:[%s10657_s8 + $0x260] sm:$0xff] %v7435_v31  ;;  %6873 = vmatmul.mubr.f32.gmra.mrb[110].mxu1 %v12305_v35 }
 0x5e1   : > { %7083 = vst.msk [vmem:[%s10657_s8 + $0x268] sm:$0xff] %vm953_vm1, %v7436_v55  ;;  %v4771_v7 = vpop.f32.mrb[90].mxu0 }
 0x5e2   : > { %v7437_v43 = vadd.f32 0.19642857, %v4771_v7  ;;  %v4773_v6 = vpop.f32.mrb[91].mxu0 }
 0x5e3   : > { %v7438_v9 = vadd.f32 0.19642857, %v4773_v6 }
 0x5e4   : > { %7084 = vst [vmem:[%s10657_s8 + $0x270] sm:$0xff] %v7437_v43 }
 0x5e5   : > { %7085 = vst.msk [vmem:[%s10657_s8 + $0x278] sm:$0xff] %vm953_vm1, %v7438_v9  ;;  %v4778_v42 = vpop.f32.mrb[92].mxu0 }
 0x5e6   : > { %v7439_v25 = vadd.f32 0.19642857, %v4778_v42  ;;  %v4780_v3 = vpop.f32.mrb[93].mxu0 }
 0x5e7   : > { %v7440_v0 = vadd.f32 0.19642857, %v4780_v3 }
 0x5e8   : > { %7086 = vst [vmem:[%s10657_s8 + $0x280] sm:$0xff] %v7439_v25 }
 0x5e9   : > { %7087 = vst.msk [vmem:[%s10657_s8 + $0x288] sm:$0xff] %vm953_vm1, %v7440_v0  ;;  %v4785_v51 = vpop.f32.mrb[94].mxu0 }
 0x5ea   : > { %v7441_v56 = vadd.f32 0.19642857, %v4785_v51  ;;  %v4787_v39 = vpop.f32.mrb[95].mxu0 }
 0x5eb   : > { %v7442_v57 = vadd.f32 0.19642857, %v4787_v39 }
 0x5ec   : > { %7088 = vst [vmem:[%s10657_s8 + $0x290] sm:$0xff] %v7441_v56 }
 0x5ed   : > { %7089 = vst.msk [vmem:[%s10657_s8 + $0x298] sm:$0xff] %vm953_vm1, %v7442_v57  ;;  %v4792_v28 = vpop.f32.mrb[96].mxu0 }
 0x5ee   : > { %v7443_v36 = vadd.f32 0.19642857, %v4792_v28  ;;  %v4794_v30 = vpop.f32.mrb[97].mxu0 }
 0x5ef   : > { %v7444_v45 = vadd.f32 0.19642857, %v4794_v30 }
 0x5f0   : > { %7090 = vst [vmem:[%s10657_s8 + $0x2a0] sm:$0xff] %v7443_v36 }
 0x5f1   : > { %7091 = vst.msk [vmem:[%s10657_s8 + $0x2a8] sm:$0xff] %vm953_vm1, %v7444_v45  ;;  %v4799_v8 = vpop.f32.mrb[98].mxu0 }
 0x5f2   : > { %v7445_v33 = vadd.f32 0.19642857, %v4799_v8  ;;  %v4801_v15 = vpop.f32.mrb[99].mxu0 }
 0x5f3   : > { %v7446_v35 = vadd.f32 0.19642857, %v4801_v15 }
 0x5f4   : > { %7092 = vst [vmem:[%s10657_s8 + $0x2b0] sm:$0xff] %v7445_v33 }
 0x5f5   : > { %7093 = vst.msk [vmem:[%s10657_s8 + $0x2b8] sm:$0xff] %vm953_vm1, %v7446_v35  ;;  %v4806_v23 = vpop.f32.mrb[100].mxu0 }
 0x5f6   : > { %v7447_v59 = vadd.f32 0.19642857, %v4806_v23  ;;  %v4808_v44 = vpop.f32.mrb[101].mxu0 }
 0x5f7   : > { %v7448_v41 = vadd.f32 0.19642857, %v4808_v44 }
 0x5f8   : > { %7094 = vst [vmem:[%s10657_s8 + $0x2c0] sm:$0xff] %v7447_v59 }
 0x5f9   : > { %7095 = vst.msk [vmem:[%s10657_s8 + $0x2c8] sm:$0xff] %vm953_vm1, %v7448_v41  ;;  %v4813_v1 = vpop.f32.mrb[102].mxu0 }
 0x5fa   : > { %v7449_v46 = vadd.f32 0.19642857, %v4813_v1  ;;  %v4815_v24 = vpop.f32.mrb[103].mxu0 }
 0x5fb   : > { %v7450_v53 = vadd.f32 0.19642857, %v4815_v24 }
 0x5fc   : > { %7096 = vst [vmem:[%s10657_s8 + $0x2d0] sm:$0xff] %v7449_v46 }
 0x5fd   : > { %7097 = vst.msk [vmem:[%s10657_s8 + $0x2d8] sm:$0xff] %vm953_vm1, %v7450_v53  ;;  %v4820_v37 = vpop.f32.mrb[104].mxu0 }
 0x5fe   : > { %v7451_v40 = vadd.f32 0.19642857, %v4820_v37  ;;  %v4822_v10 = vpop.f32.mrb[105].mxu0 }
 0x5ff   : > { %v7452_v27 = vadd.f32 0.19642857, %v4822_v10 }
 0x600   : > { %7098 = vst [vmem:[%s10657_s8 + $0x2e0] sm:$0xff] %v7451_v40 }
 0x601   : > { %7099 = vst.msk [vmem:[%s10657_s8 + $0x2e8] sm:$0xff] %vm953_vm1, %v7452_v27  ;;  %v4827_v50 = vpop.f32.mrb[106].mxu0 }
 0x602   : > { %v7453_v62 = vadd.f32 0.19642857, %v4827_v50  ;;  %v4829_v47 = vpop.f32.mrb[107].mxu0 }
 0x603   : > { %v7454_v63 = vadd.f32 0.19642857, %v4829_v47 }
 0x604   : > { %7100 = vst [vmem:[%s10657_s8 + $0x2f0] sm:$0xff] %v7453_v62 }
 0x605   : > { %7101 = vst.msk [vmem:[%s10657_s8 + $0x2f8] sm:$0xff] %vm953_vm1, %v7454_v63  ;;  %v4834_v2 = vpop.f32.mrb[108].mxu0 }
 0x606   : > { %v7455_v21 = vadd.f32 0.19642857, %v4834_v2  ;;  %v4836_v16 = vpop.f32.mrb[109].mxu0 }
 0x607   : > { %v7456_v32 = vadd.f32 0.19642857, %v4836_v16 }
 0x608   : > { %7102 = vst [vmem:[%s10657_s8 + $0x300] sm:$0xff] %v7455_v21 }
 0x609   : > { %7103 = vst.msk [vmem:[%s10657_s8 + $0x308] sm:$0xff] %vm953_vm1, %v7456_v32  ;;  %v4841_v17 = vpop.f32.mrb[110].mxu0 }
 0x60a   : > { %v7457_v4 = vadd.f32 0.19642857, %v4841_v17  ;;  %v4843_v60 = vpop.f32.mrb[111].mxu0 }
 0x60b   : > { %v7458_v18 = vadd.f32 0.19642857, %v4843_v60 }
 0x60c   : > { %7104 = vst [vmem:[%s10657_s8 + $0x310] sm:$0xff] %v7457_v4 }
 0x60d   : > { %7105 = vst.msk [vmem:[%s10657_s8 + $0x318] sm:$0xff] %vm953_vm1, %v7458_v18  ;;  %v4848_v49 = vpop.f32.mrb[112].mxu0 }
 0x60e   : > { %v7459_v61 = vadd.f32 0.19642857, %v4848_v49  ;;  %v4850_v54 = vpop.f32.mrb[113].mxu0 }
 0x60f   : > { %v7460_v11 = vadd.f32 0.19642857, %v4850_v54 }
 0x610   : > { %7106 = vst [vmem:[%s10657_s8 + $0x320] sm:$0xff] %v7459_v61 }
 0x611   : > { %7107 = vst.msk [vmem:[%s10657_s8 + $0x328] sm:$0xff] %vm953_vm1, %v7460_v11  ;;  %v4855_v19 = vpop.f32.mrb[114].mxu0 }
 0x612   : > { %v7461_v13 = vadd.f32 0.19642857, %v4855_v19  ;;  %v4857_v5 = vpop.f32.mrb[115].mxu0 }
 0x613   : > { %v7462_v29 = vadd.f32 0.19642857, %v4857_v5 }
 0x614   : > { %7108 = vst [vmem:[%s10657_s8 + $0x330] sm:$0xff] %v7461_v13 }
 0x615   : > { %7109 = vst.msk [vmem:[%s10657_s8 + $0x338] sm:$0xff] %vm953_vm1, %v7462_v29  ;;  %v4862_v58 = vpop.f32.mrb[116].mxu0 }
 0x616   : > { %v7463_v38 = vadd.f32 0.19642857, %v4862_v58  ;;  %v4864_v34 = vpop.f32.mrb[117].mxu0 }
 0x617   : > { %v7464_v22 = vadd.f32 0.19642857, %v4864_v34 }
 0x618   : > { %7110 = vst [vmem:[%s10657_s8 + $0x340] sm:$0xff] %v7463_v38 }
 0x619   : > { %7111 = vst.msk [vmem:[%s10657_s8 + $0x348] sm:$0xff] %vm953_vm1, %v7464_v22  ;;  %v4869_v12 = vpop.f32.mrb[118].mxu0 }
 0x61a   : > { %v7465_v52 = vadd.f32 0.19642857, %v4869_v12  ;;  %v4871_v14 = vpop.f32.mrb[119].mxu0 }
 0x61b   : > { %v7466_v20 = vadd.f32 0.19642857, %v4871_v14 }
 0x61c   : > { %7112 = vst [vmem:[%s10657_s8 + $0x350] sm:$0xff] %v7465_v52 }
 0x61d   : > { %7113 = vst.msk [vmem:[%s10657_s8 + $0x358] sm:$0xff] %vm953_vm1, %v7466_v20  ;;  %v4876_v48 = vpop.f32.mrb[120].mxu0 }
 0x61e   : > { %v7467_v31 = vadd.f32 0.19642857, %v4876_v48  ;;  %v4878_v26 = vpop.f32.mrb[121].mxu0 }
 0x61f   : > { %v7468_v55 = vadd.f32 0.19642857, %v4878_v26 }
 0x620   : > { %7114 = vst [vmem:[%s10657_s8 + $0x360] sm:$0xff] %v7467_v31 }
 0x621   : > { %7115 = vst.msk [vmem:[%s10657_s8 + $0x368] sm:$0xff] %vm953_vm1, %v7468_v55  ;;  %v4883_v7 = vpop.f32.mrb[122].mxu0 }
 0x622   : > { %v7469_v43 = vadd.f32 0.19642857, %v4883_v7  ;;  %v4885_v6 = vpop.f32.mrb[123].mxu0 }
 0x623   : > { %v7470_v9 = vadd.f32 0.19642857, %v4885_v6 }
 0x624   : > { %7116 = vst [vmem:[%s10657_s8 + $0x370] sm:$0xff] %v7469_v43 }
 0x625   : > { %7117 = vst.msk [vmem:[%s10657_s8 + $0x378] sm:$0xff] %vm953_vm1, %v7470_v9 }
 0x647   : > { %v6685_v42 = vpop.f32.mrb[56].mxu1 }
 0x648   : > { %v7471_v25 = vadd.f32 0.41777778, %v6685_v42  ;;  %v6687_v3 = vpop.f32.mrb[57].mxu1 }
 0x649   : > { %v7472_v0 = vadd.f32 0.41777778, %v6687_v3 }
 0x64a   : > { %7146 = vst [vmem:[%s10657_s8 + $0x380] sm:$0xff] %v7471_v25 }
 0x64b   : > { %7147 = vst.msk [vmem:[%s10657_s8 + $0x388] sm:$0xff] %vm953_vm1, %v7472_v0  ;;  %v6692_v51 = vpop.f32.mrb[58].mxu1 }
 0x64c   : > { %v7473_v56 = vadd.f32 0.41777778, %v6692_v51  ;;  %v6694_v39 = vpop.f32.mrb[59].mxu1 }
 0x64d   : > { %v7474_v57 = vadd.f32 0.41777778, %v6694_v39 }
 0x64e   : > { %7148 = vst [vmem:[%s10657_s8 + $0x390] sm:$0xff] %v7473_v56 }
 0x64f   : > { %7149 = vst.msk [vmem:[%s10657_s8 + $0x398] sm:$0xff] %vm953_vm1, %v7474_v57  ;;  %v6699_v28 = vpop.f32.mrb[60].mxu1 }
 0x650   : > { %v7475_v36 = vadd.f32 0.41777778, %v6699_v28  ;;  %v6701_v30 = vpop.f32.mrb[61].mxu1 }
 0x651   : > { %v7476_v45 = vadd.f32 0.41777778, %v6701_v30 }
 0x652   : > { %7150 = vst [vmem:[%s10657_s8 + $0x3a0] sm:$0xff] %v7475_v36 }
 0x653   : > { %7151 = vst.msk [vmem:[%s10657_s8 + $0x3a8] sm:$0xff] %vm953_vm1, %v7476_v45  ;;  %v6706_v8 = vpop.f32.mrb[62].mxu1 }
 0x654   : > { %v7477_v33 = vadd.f32 0.41777778, %v6706_v8  ;;  %v6708_v15 = vpop.f32.mrb[63].mxu1 }
 0x655   : > { %v7478_v35 = vadd.f32 0.41777778, %v6708_v15 }
 0x656   : > { %7152 = vst [vmem:[%s10657_s8 + $0x3b0] sm:$0xff] %v7477_v33 }
 0x657   : > { %7153 = vst.msk [vmem:[%s10657_s8 + $0x3b8] sm:$0xff] %vm953_vm1, %v7478_v35  ;;  %v6713_v23 = vpop.f32.mrb[64].mxu1 }
 0x658   : > { %v7479_v59 = vadd.f32 0.41777778, %v6713_v23  ;;  %v6715_v44 = vpop.f32.mrb[65].mxu1 }
 0x659   : > { %v7480_v41 = vadd.f32 0.41777778, %v6715_v44 }
 0x65a   : > { %7154 = vst [vmem:[%s10657_s8 + $0x3c0] sm:$0xff] %v7479_v59 }
 0x65b   : > { %7155 = vst.msk [vmem:[%s10657_s8 + $0x3c8] sm:$0xff] %vm953_vm1, %v7480_v41  ;;  %v6720_v1 = vpop.f32.mrb[66].mxu1 }
 0x65c   : > { %v7481_v46 = vadd.f32 0.41777778, %v6720_v1  ;;  %v6722_v24 = vpop.f32.mrb[67].mxu1 }
 0x65d   : > { %v7482_v53 = vadd.f32 0.41777778, %v6722_v24 }
 0x65e   : > { %7156 = vst [vmem:[%s10657_s8 + $0x3d0] sm:$0xff] %v7481_v46 }
 0x65f   : > { %7157 = vst.msk [vmem:[%s10657_s8 + $0x3d8] sm:$0xff] %vm953_vm1, %v7482_v53  ;;  %v6727_v37 = vpop.f32.mrb[68].mxu1 }
 0x660   : > { %v7483_v40 = vadd.f32 0.41777778, %v6727_v37  ;;  %v6729_v10 = vpop.f32.mrb[69].mxu1 }
 0x661   : > { %v7484_v27 = vadd.f32 0.41777778, %v6729_v10 }
 0x662   : > { %7158 = vst [vmem:[%s10657_s8 + $0x3e0] sm:$0xff] %v7483_v40 }
 0x663   : > { %7159 = vst.msk [vmem:[%s10657_s8 + $0x3e8] sm:$0xff] %vm953_vm1, %v7484_v27  ;;  %v6734_v50 = vpop.f32.mrb[70].mxu1 }
 0x664   : > { %v7485_v62 = vadd.f32 0.41777778, %v6734_v50  ;;  %v6736_v47 = vpop.f32.mrb[71].mxu1 }
 0x665   : > { %v7486_v63 = vadd.f32 0.41777778, %v6736_v47 }
 0x666   : > { %7160 = vst [vmem:[%s10657_s8 + $0x3f0] sm:$0xff] %v7485_v62 }
 0x667   : > { %7161 = vst.msk [vmem:[%s10657_s8 + $0x3f8] sm:$0xff] %vm953_vm1, %v7486_v63  ;;  %v6741_v2 = vpop.f32.mrb[72].mxu1 }
 0x668   : > { %v7487_v21 = vadd.f32 0.41777778, %v6741_v2  ;;  %v6743_v16 = vpop.f32.mrb[73].mxu1 }
 0x669   : > { %v7488_v32 = vadd.f32 0.41777778, %v6743_v16 }
 0x66a   : > { %7162 = vst [vmem:[%s10657_s8 + $0x400] sm:$0xff] %v7487_v21 }
 0x66b   : > { %7163 = vst.msk [vmem:[%s10657_s8 + $0x408] sm:$0xff] %vm953_vm1, %v7488_v32  ;;  %v6748_v17 = vpop.f32.mrb[74].mxu1 }
 0x66c   : > { %v7489_v4 = vadd.f32 0.41777778, %v6748_v17  ;;  %v6750_v60 = vpop.f32.mrb[75].mxu1 }
 0x66d   : > { %v7490_v18 = vadd.f32 0.41777778, %v6750_v60 }
 0x66e   : > { %7164 = vst [vmem:[%s10657_s8 + $0x410] sm:$0xff] %v7489_v4 }
 0x66f   : > { %7165 = vst.msk [vmem:[%s10657_s8 + $0x418] sm:$0xff] %vm953_vm1, %v7490_v18  ;;  %v6755_v49 = vpop.f32.mrb[76].mxu1 }
 0x670   : > { %v7491_v61 = vadd.f32 0.41777778, %v6755_v49  ;;  %v6757_v54 = vpop.f32.mrb[77].mxu1 }
 0x671   : > { %v7492_v11 = vadd.f32 0.41777778, %v6757_v54 }
 0x672   : > { %7166 = vst [vmem:[%s10657_s8 + $0x420] sm:$0xff] %v7491_v61 }
 0x673   : > { %7167 = vst.msk [vmem:[%s10657_s8 + $0x428] sm:$0xff] %vm953_vm1, %v7492_v11  ;;  %v6762_v19 = vpop.f32.mrb[78].mxu1 }
 0x674   : > { %v7493_v13 = vadd.f32 0.41777778, %v6762_v19  ;;  %v6764_v5 = vpop.f32.mrb[79].mxu1 }
 0x675   : > { %v7494_v29 = vadd.f32 0.41777778, %v6764_v5 }
 0x676   : > { %7168 = vst [vmem:[%s10657_s8 + $0x430] sm:$0xff] %v7493_v13 }
 0x677   : > { %7169 = vst.msk [vmem:[%s10657_s8 + $0x438] sm:$0xff] %vm953_vm1, %v7494_v29  ;;  %v6769_v58 = vpop.f32.mrb[80].mxu1 }
 0x678   : > { %v7495_v38 = vadd.f32 0.41777778, %v6769_v58  ;;  %v6771_v34 = vpop.f32.mrb[81].mxu1 }
 0x679   : > { %v7496_v22 = vadd.f32 0.41777778, %v6771_v34 }
 0x67a   : > { %7170 = vst [vmem:[%s10657_s8 + $0x440] sm:$0xff] %v7495_v38 }
 0x67b   : > { %7171 = vst.msk [vmem:[%s10657_s8 + $0x448] sm:$0xff] %vm953_vm1, %v7496_v22  ;;  %v6776_v12 = vpop.f32.mrb[82].mxu1 }
 0x67c   : > { %v7497_v52 = vadd.f32 0.41777778, %v6776_v12  ;;  %v6778_v14 = vpop.f32.mrb[83].mxu1 }
 0x67d   : > { %v7498_v20 = vadd.f32 0.41777778, %v6778_v14 }
 0x67e   : > { %7172 = vst [vmem:[%s10657_s8 + $0x450] sm:$0xff] %v7497_v52 }
 0x67f   : > { %7173 = vst.msk [vmem:[%s10657_s8 + $0x458] sm:$0xff] %vm953_vm1, %v7498_v20  ;;  %v6783_v48 = vpop.f32.mrb[84].mxu1 }
 0x680   : > { %v7499_v31 = vadd.f32 0.41777778, %v6783_v48  ;;  %v6785_v26 = vpop.f32.mrb[85].mxu1 }
 0x681   : > { %v7500_v55 = vadd.f32 0.41777778, %v6785_v26 }
 0x682   : > { %7174 = vst [vmem:[%s10657_s8 + $0x460] sm:$0xff] %v7499_v31 }
 0x683   : > { %7175 = vst.msk [vmem:[%s10657_s8 + $0x468] sm:$0xff] %vm953_vm1, %v7500_v55  ;;  %v6790_v7 = vpop.f32.mrb[86].mxu1 }
 0x684   : > { %v7501_v43 = vadd.f32 0.41777778, %v6790_v7  ;;  %v6792_v6 = vpop.f32.mrb[87].mxu1 }
 0x685   : > { %v7502_v9 = vadd.f32 0.41777778, %v6792_v6 }
 0x686   : > { %7176 = vst [vmem:[%s10657_s8 + $0x470] sm:$0xff] %v7501_v43 }
 0x687   : > { %7177 = vst.msk [vmem:[%s10657_s8 + $0x478] sm:$0xff] %vm953_vm1, %v7502_v9  ;;  %v6797_v42 = vpop.f32.mrb[88].mxu1 }
 0x688   : > { %v7503_v25 = vadd.f32 0.41777778, %v6797_v42  ;;  %v6799_v3 = vpop.f32.mrb[89].mxu1 }
 0x689   : > { %v7504_v0 = vadd.f32 0.41777778, %v6799_v3 }
 0x68a   : > { %7178 = vst [vmem:[%s10657_s8 + $0x480] sm:$0xff] %v7503_v25 }
 0x68b   : > { %7179 = vst.msk [vmem:[%s10657_s8 + $0x488] sm:$0xff] %vm953_vm1, %v7504_v0  ;;  %v6804_v51 = vpop.f32.mrb[90].mxu1 }
 0x68c   : > { %v7505_v56 = vadd.f32 0.41777778, %v6804_v51  ;;  %v6806_v39 = vpop.f32.mrb[91].mxu1 }
 0x68d   : > { %v7506_v57 = vadd.f32 0.41777778, %v6806_v39 }
 0x68e   : > { %7180 = vst [vmem:[%s10657_s8 + $0x490] sm:$0xff] %v7505_v56 }
 0x68f   : > { %7181 = vst.msk [vmem:[%s10657_s8 + $0x498] sm:$0xff] %vm953_vm1, %v7506_v57  ;;  %v6811_v28 = vpop.f32.mrb[92].mxu1 }
 0x690   : > { %v7507_v36 = vadd.f32 0.41777778, %v6811_v28  ;;  %v6813_v30 = vpop.f32.mrb[93].mxu1 }
 0x691   : > { %v7508_v45 = vadd.f32 0.41777778, %v6813_v30 }
 0x692   : > { %7182 = vst [vmem:[%s10657_s8 + $0x4a0] sm:$0xff] %v7507_v36 }
 0x693   : > { %7183 = vst.msk [vmem:[%s10657_s8 + $0x4a8] sm:$0xff] %vm953_vm1, %v7508_v45  ;;  %v6818_v8 = vpop.f32.mrb[94].mxu1 }
 0x694   : > { %v7509_v33 = vadd.f32 0.41777778, %v6818_v8  ;;  %v6820_v15 = vpop.f32.mrb[95].mxu1 }
 0x695   : > { %v7510_v35 = vadd.f32 0.41777778, %v6820_v15 }
 0x696   : > { %7184 = vst [vmem:[%s10657_s8 + $0x4b0] sm:$0xff] %v7509_v33 }
 0x697   : > { %7185 = vst.msk [vmem:[%s10657_s8 + $0x4b8] sm:$0xff] %vm953_vm1, %v7510_v35  ;;  %v6825_v23 = vpop.f32.mrb[96].mxu1 }
 0x698   : > { %v7511_v59 = vadd.f32 0.41777778, %v6825_v23  ;;  %v6827_v44 = vpop.f32.mrb[97].mxu1 }
 0x699   : > { %v7512_v41 = vadd.f32 0.41777778, %v6827_v44 }
 0x69a   : > { %7186 = vst [vmem:[%s10657_s8 + $0x4c0] sm:$0xff] %v7511_v59 }
 0x69b   : > { %7187 = vst.msk [vmem:[%s10657_s8 + $0x4c8] sm:$0xff] %vm953_vm1, %v7512_v41  ;;  %v6832_v1 = vpop.f32.mrb[98].mxu1 }
 0x69c   : > { %v7513_v46 = vadd.f32 0.41777778, %v6832_v1  ;;  %v6834_v24 = vpop.f32.mrb[99].mxu1 }
 0x69d   : > { %v7514_v53 = vadd.f32 0.41777778, %v6834_v24 }
 0x69e   : > { %7188 = vst [vmem:[%s10657_s8 + $0x4d0] sm:$0xff] %v7513_v46 }
 0x69f   : > { %7189 = vst.msk [vmem:[%s10657_s8 + $0x4d8] sm:$0xff] %vm953_vm1, %v7514_v53  ;;  %v6839_v37 = vpop.f32.mrb[100].mxu1 }
 0x6a0   : > { %v7515_v40 = vadd.f32 0.41777778, %v6839_v37  ;;  %v6841_v10 = vpop.f32.mrb[101].mxu1 }
 0x6a1   : > { %v7516_v27 = vadd.f32 0.41777778, %v6841_v10 }
 0x6a2   : > { %7190 = vst [vmem:[%s10657_s8 + $0x4e0] sm:$0xff] %v7515_v40 }
 0x6a3   : > { %7191 = vst.msk [vmem:[%s10657_s8 + $0x4e8] sm:$0xff] %vm953_vm1, %v7516_v27  ;;  %v6846_v50 = vpop.f32.mrb[102].mxu1 }
 0x6a4   : > { %v7517_v62 = vadd.f32 0.41777778, %v6846_v50  ;;  %v6848_v47 = vpop.f32.mrb[103].mxu1 }
 0x6a5   : > { %v7518_v63 = vadd.f32 0.41777778, %v6848_v47 }
 0x6a6   : > { %7192 = vst [vmem:[%s10657_s8 + $0x4f0] sm:$0xff] %v7517_v62 }
 0x6a7   : > { %7193 = vst.msk [vmem:[%s10657_s8 + $0x4f8] sm:$0xff] %vm953_vm1, %v7518_v63  ;;  %v6853_v2 = vpop.f32.mrb[104].mxu1 }
 0x6a8   : > { %v7519_v21 = vadd.f32 0.41777778, %v6853_v2  ;;  %v6855_v16 = vpop.f32.mrb[105].mxu1 }
 0x6a9   : > { %v7520_v32 = vadd.f32 0.41777778, %v6855_v16 }
 0x6aa   : > { %7194 = vst [vmem:[%s10657_s8 + $0x500] sm:$0xff] %v7519_v21 }
 0x6ab   : > { %7195 = vst.msk [vmem:[%s10657_s8 + $0x508] sm:$0xff] %vm953_vm1, %v7520_v32  ;;  %v6860_v17 = vpop.f32.mrb[106].mxu1 }
 0x6ac   : > { %v7521_v4 = vadd.f32 0.41777778, %v6860_v17  ;;  %v6862_v60 = vpop.f32.mrb[107].mxu1 }
 0x6ad   : > { %v7522_v18 = vadd.f32 0.41777778, %v6862_v60 }
 0x6ae   : > { %7196 = vst [vmem:[%s10657_s8 + $0x510] sm:$0xff] %v7521_v4 }
 0x6af   : > { %7197 = vst.msk [vmem:[%s10657_s8 + $0x518] sm:$0xff] %vm953_vm1, %v7522_v18  ;;  %v6867_v49 = vpop.f32.mrb[108].mxu1 }
 0x6b0   : > { %v7523_v61 = vadd.f32 0.41777778, %v6867_v49  ;;  %v6869_v54 = vpop.f32.mrb[109].mxu1 }
 0x6b1   : > { %v7524_v11 = vadd.f32 0.41777778, %v6869_v54 }
 0x6b2   : > { %7198 = vst [vmem:[%s10657_s8 + $0x520] sm:$0xff] %v7523_v61 }
 0x6b3   : > { %7199 = vst.msk [vmem:[%s10657_s8 + $0x528] sm:$0xff] %vm953_vm1, %v7524_v11  ;;  %v6874_v19 = vpop.f32.mrb[110].mxu1 }
 0x6b4   : > { %v7525_v13 = vadd.f32 0.41777778, %v6874_v19  ;;  %v6876_v5 = vpop.f32.mrb[111].mxu1 }
 0x6b5   : > { %v7526_v29 = vadd.f32 0.41777778, %v6876_v5 }
 0x6b6   : > { %7200 = vst [vmem:[%s10657_s8 + $0x530] sm:$0xff] %v7525_v13 }
 0x6b7   : > { %7201 = vst.msk [vmem:[%s10657_s8 + $0x538] sm:$0xff] %vm953_vm1, %v7526_v29 }
 0x6b8   : > { %8470 = shalt.err (!%p8467_p7)
}
 0x6b9   : > { %s8471_s27 = scalar_lea.hbm %s11526_s19, 21504  ;;  %s8475_s30 = scalar_lea.hbm %s11579_s3, 43008 }
 0x6ba   : > { %p8472_p8 = scmp.ne.s32.totalorder %s11526_s19, %s8471_s27  ;;  %p8476_p1 = scmp.lt.u32.totalorder %s11526_s19, %s11579_s3 }
 0x6bb   : > { %p8477_p0 = scmp.lt.u32.totalorder %s8475_s30, %s8471_s27  ;;  %p8479_p6 = scmp.lt.u32.totalorder %s8471_s27, %s11526_s19 }
 0x6bc   : > { %p8473_p11 = pnand %p8472_p8, %p12306_p9 }
 0x6bd   : > { %p8478_p5 = por %p8477_p0, %p8476_p1 }
 0x6be   : > { %p8474_p13 = pneg %p8473_p11 }
 0x6bf   : > { %p8480_p10 = por %p8479_p6, %p8478_p5 }
 0x6c1   : > { %p8481_p12 = pnand %p8480_p10, %p8474_p13 }
 0x6c3   : > { %8484 = shalt.err (!%p8481_p12)
}
 0x6c4   : > { %s8530_s6 = smov 256   ;;  %s8531_s7 = smov 16  }
 0x6c5   : > { %8377 = dma.vmem_to_hbm [thread:$0]  (%p12306_p9), %s11528_s10, 21504, %s11526_s19, %s11535_s16, %s8530_s6, %s8530_s6, %s8531_s7  }
 0x6c6 PF: > { %p8390_p2 = scmp.ge.s32.totalorder %s8523_s15, 2  ;;  %s6966_s8 = sand.u32 1, %s8511_s12  }
 0x6c7   : > { %p12307_p3 = scmp.ne.s32.totalorder %s11887_s23, 0  ;;  %s6967_s9 = scalar_lea.sflag [#allocation5], %s6966_s8 }
 0x6c9   : > { %p8384_p4 = pnand %p8390_p2, %p12307_p3 }
 0x6cb   : > { %8506 = dma.done.wait (!%p8384_p4), %s6967_s9, 21504  }
 0x6cc   : > { %8508 = vsyncadd (!%p8384_p4), %s6967_s9, 4294945792  ;;  %p14_p7 = scmp.ge.s32.totalorder %s8577_s18, 4   ;;  %s12308_s12 = smov %s8515_s13 }
 0x6cd   : > { %s12309_s13 = smov %s8519_s14  ;;  %s12310_s14 = smov %s8588_s21 }
 0x6ce   : > { %s12311_s15 = smov %s8577_s18  ;;  %16 = sbr.rel (!%p14_p7) target bundleno = 4 (0x4), region = 79 }
 0x6d5   :  { %6972 = vsyncpa [#allocation4], 1 }
 0x6d6   :  { %6974 = vsyncpa [#allocation4 + $0x1], 1 }
 0x6d7   :  { %6975 = vsyncpa [#allocation5], 1 }
 0x6d8   :  { %6977 = vsyncpa [#allocation5 + $0x1], 1 }

</bundles_post_ra>
